<compile_context>
chip_gen: v6e
topology: v6e:2x2x1
jax: 0.10.0
libtpu: 0.0.40
codegen_flags: <defaults>
</compile_context>

<pallas_src>
import functools

import jax
import jax.numpy as jnp
from jax import lax
from jax.experimental import pallas as pl
from jax.experimental.pallas import tpu as pltpu

# torchvision vgg16.features configuration ('M' = MaxPool2d(2, 2))
VGG16_CFG = [64, 64, 'M', 128, 128, 'M', 256, 256, 256, 'M',
             512, 512, 512, 'M', 512, 512, 512, 'M']
CAPTURE_LAYERS = (1, 3, 6, 8, 11, 13, 15, 22, 29)   # all ReLU outputs

_IMAGENET_MEAN = (0.485, 0.456, 0.406)
_IMAGENET_STD = (0.229, 0.224, 0.225)


# ----------------------------------------------------------------------------
# Generation-aware sizing
# ----------------------------------------------------------------------------
@functools.lru_cache(maxsize=None)
def _vmem_limit_bytes():
    """~75% of physical VMEM: ~96 MiB on v5e/v6e (128 MiB), ~48 MiB on v7x (64 MiB)."""
    cap = None
    try:
        info = pltpu.get_tpu_info()
        cap = int(getattr(info, "vmem_capacity_bytes", 0)) or None
    except Exception:
        cap = None
    if cap is None:
        return 48 * 1024 * 1024          # conservative fallback, fits every gen
    return min(int(cap * 0.75), 100 * 1024 * 1024)


@functools.lru_cache(maxsize=None)
def _tpu_supports_wide_mxu():
    """True on v6e / v7x (256-wide MXU N); False on v5e and older (128-wide)."""
    try:
        kind = jax.devices()[0].device_kind.lower()
    except Exception:
        return True
    return not any(tag in kind for tag in ("v2", "v3", "v4", "v5"))


def _round_up(v, m):
    return (v + m - 1) // m * m


def _choose_conv_tiling(N, H, W, Wp, Cin, TCout, n_co, act_b, cd_b, out_b,
                        fuse_pool, budget):
    """Pick (TH, full_window): the largest row strip whose full working set
    (IO double buffers, im2col patches, f32 accumulator, epilogue temporaries)
    fits the VMEM budget.  full_window=True means the whole padded image is one
    block (no halo / no window scratch)."""

    def usage(th, full):
        M = th * Wp
        u = 2 * (th + (2 if full else 0)) * (Wp + 2) * Cin * act_b   # input (db)
        if not full:
            u += 2 * 2 * (Wp + 2) * Cin * act_b                      # 2-row halo (db)
            u += (th + 2) * (Wp + 2) * Cin * act_b                   # window scratch
        u += 2 * 9 * Cin * TCout * cd_b                              # weights (db)
        u += 2 * th * W * TCout * out_b                              # relu out (db)
        if fuse_pool:
            u += 2 * (th // 2) * (W // 2) * TCout * out_b            # pooled out (db)
            u += (th // 2) * W * TCout * out_b                       # row-max scratch
        u += 9 * M * Cin * cd_b          # im2col patches / K-pack scratch + live copies
        u += M * TCout * 4               # f32 accumulator
        u += M * TCout * (4 + out_b)     # epilogue temporaries (relu + cast)
        return u

    strip_divs = sorted((d for d in range(2, H, 2) if H % d == 0), reverse=True)
    choices = []
    if (not fuse_pool) or (H % 2 == 0):
        choices.append((H, True))
    choices += [(d, False) for d in strip_divs]
    if not choices:                       # odd tiny H with fuse requested (not used)
        choices = [(H, True)]

    pick = None
    for th, full in choices:              # largest first
        if usage(th, full) <= budget:
            pick = (th, full)
            break
    if pick is None:
        pick = choices[-1]                # nothing fits cleanly: smallest strip

    # v7x megacore: make sure there are >= 2 grid cells at batch 1 when possible.
    if N * (H // pick[0]) * n_co < 2:
        for d in strip_divs:
            if usage(d, False) <= budget:
                pick = (d, False)
                break
    return pick


def _choose_pool_rows(Ho, W, Wo, C, nbytes, budget):
    divs = sorted((d for d in range(1, Ho + 1) if Ho % d == 0), reverse=True)

    def usage(t):
        return (2 * (2 * t) * W * C          # input strip (db)
                + 2 * t * Wo * C             # output strip (db)
                + t * W * C                  # row-max scratch
                + 2 * t * Wo * C) * nbytes   # temporaries
    for d in divs:
        if usage(d) <= budget:
            return d
    return divs[-1]


# ----------------------------------------------------------------------------
# Pallas kernels
# ----------------------------------------------------------------------------
def _conv3x3_kernel(*refs, TH, W, Wp, Cin, TCout, compute_dtype,
                    use_halo, fuse_pool, fuse_k):
    """3x3 'same' conv + bias + ReLU (+ optional fused 2x2 maxpool) for one
    (image, row-strip, Cout-tile) grid cell.

    Ref order: x, [halo(2 rows)], w, b, relu_out, [pool_out],
               [xwin scratch], [rowmax scratch], [K-pack scratch].
    """
    it = iter(refs)
    x_ref = next(it)
    halo_ref = next(it) if use_halo else None
    w_ref = next(it)
    b_ref = next(it)
    o_ref = next(it)
    po_ref = next(it) if fuse_pool else None
    xwin_ref = next(it) if use_halo else None
    rm_ref = next(it) if fuse_pool else None
    pk_ref = next(it) if fuse_k else None

    if use_halo:
        # Assemble the (TH+2)-row haloed window in VMEM scratch.
        xwin_ref[pl.ds(0, TH), :, :] = x_ref[...]
        xwin_ref[pl.ds(TH, 2), :, :] = halo_ref[...]
        win = xwin_ref
    else:
        win = x_ref                       # already the full (TH+2)-row window

    M = TH * Wp
    bias = b_ref[...].astype(jnp.float32)            # (1, TCout), loaded once

    acc = None
    if fuse_k:
        # K-fused taps: one (M, 3*Cin) x (3*Cin, TCout) matmul per dy.
        for dy in range(3):
            for dx in range(3):
                pk_ref[:, :, pl.ds(dx * Cin, Cin)] = (
                    win[pl.ds(dy, TH), pl.ds(dx, Wp), :].astype(compute_dtype))
            p = pk_ref[...].reshape(M, 3 * Cin)
            d = jnp.dot(p, w_ref[dy, :, :].astype(compute_dtype),
                        preferred_element_type=jnp.float32)
            acc = d if acc is None else acc + d
    else:
        # Small-Cin path: 9 taps of (M, Cin) x (Cin, TCout).
        for dy in range(3):
            for dx in range(3):
                p = win[pl.ds(dy, TH), pl.ds(dx, Wp), :]
                p = p.reshape(M, Cin).astype(compute_dtype)
                d = jnp.dot(p, w_ref[dy, dx, :, :].astype(compute_dtype),
                            preferred_element_type=jnp.float32)
                acc = d if acc is None else acc + d

    y = jnp.maximum(acc + bias, 0.0).reshape(TH, Wp, TCout)
    o_ref[...] = y[:, :W, :].astype(o_ref.dtype)     # drop width padding

    if fuse_pool:
        Ho, Wo = TH // 2, W // 2
        # Row-pair max (stride-2 reads over the just-written ReLU strip), then
        # stride-2 column-pair max.  Rounding is monotonic, so pooling the
        # already-cast output is bit-identical to pooling in f32 then casting.
        rm_ref[...] = jnp.maximum(o_ref[pl.ds(0, Ho, 2), :, :],
                                  o_ref[pl.ds(1, Ho, 2), :, :])
        po_ref[...] = jnp.maximum(rm_ref[:, pl.ds(0, Wo, 2), :],
                                  rm_ref[:, pl.ds(1, Wo, 2), :])


def _maxpool2x2_kernel(x_ref, o_ref, rm_ref, *, THo, Wo):
    """Standalone 2x2 stride-2 max pool over a (2*THo)-row input strip."""
    rm_ref[...] = jnp.maximum(x_ref[pl.ds(0, THo, 2), :, :],
                              x_ref[pl.ds(1, THo, 2), :, :])
    o_ref[...] = jnp.maximum(rm_ref[:, pl.ds(0, Wo, 2), :],
                             rm_ref[:, pl.ds(1, Wo, 2), :])


def _normalize_kernel(x_ref, o_ref, *, mean, inv_std):
    """x in [-1,1] -> ImageNet-normalized; NCHW block (3, H, W), W on lanes."""
    for c in range(3):
        o_ref[c, :, :] = ((x_ref[c, :, :] + 1.0) * 0.5 - mean[c]) * inv_std[c]


# ----------------------------------------------------------------------------
# Pallas wrappers
# ----------------------------------------------------------------------------
def conv3x3_relu(x, w_hwio, b, *, compute_dtype=jnp.bfloat16, out_dtype=None,
                 fuse_pool=False, _force_strip_rows=None):
    """x: (N,H,W,Cin) NHWC; w_hwio: (3,3,Cin,Cout); b: (Cout,) or (1,Cout).

    Returns relu_out (N,H,W,Cout), plus pooled (N,H//2,W//2,Cout) if fuse_pool.
    """
    N, H, W, Cin = x.shape
    Cout = w_hwio.shape[-1]
    if out_dtype is None:
        out_dtype = x.dtype
    if fuse_pool:
        assert H % 2 == 0 and W % 2 == 0, "fused pool needs even spatial dims"

    Wp = _round_up(W, 8)                 # pad width so (TH, Wp) flattens tile-free
    vmem_limit = _vmem_limit_bytes()
    budget = int(vmem_limit * 0.8)       # leave headroom for Mosaic internals

    mxu_n = 256 if _tpu_supports_wide_mxu() else 128
    TCout = Cout if Cout <= mxu_n else mxu_n
    n_co = Cout // TCout
    fuse_k = (Cin >= 128) and (Cin % 128 == 0)   # lane-aligned K packing only

    act_b = x.dtype.itemsize
    cd_b = jnp.dtype(compute_dtype).itemsize
    out_b = jnp.dtype(out_dtype).itemsize

    if _force_strip_rows is not None:    # testing hook: force the halo/strip path
        TH, full = int(_force_strip_rows), False
        assert H % TH == 0 and TH % 2 == 0
    else:
        TH, full = _choose_conv_tiling(N, H, W, Wp, Cin, TCout, n_co,
                                       act_b, cd_b, out_b, fuse_pool, budget)
    n_h = H // TH
    if not full:
        assert TH % 2 == 0               # required by the 2-row halo block index
    if fuse_pool:
        assert TH % 2 == 0

    # Zero pad: 1 row top/bottom, 1 col left, (1 + Wp - W) cols right.
    xp = jnp.pad(x, ((0, 0), (1, 1), (1, 1 + Wp - W), (0, 0)))

    if fuse_k:
        # (3,3,Cin,Cout) -> (3, 3*Cin, Cout): per dy, the dx taps are stacked
        # along K in the same order the kernel packs the patches.
        w_in = w_hwio.reshape(3, 3 * Cin, Cout)
        w_spec = pl.BlockSpec((3, 3 * Cin, TCout), lambda n, i, co: (0, 0, co))
    else:
        w_in = w_hwio
        w_spec = pl.BlockSpec((3, 3, Cin, TCout), lambda n, i, co: (0, 0, 0, co))
    b_row = jnp.asarray(b, jnp.float32).reshape(1, Cout)
    b_spec = pl.BlockSpec((1, TCout), lambda n, i, co: (0, co))

    kern = functools.partial(
        _conv3x3_kernel, TH=TH, W=W, Wp=Wp, Cin=Cin, TCout=TCout,
        compute_dtype=compute_dtype, use_halo=not full,
        fuse_pool=fuse_pool, fuse_k=fuse_k)

    in_specs, inputs, scratch = [], [], []
    if full:
        in_specs.append(pl.BlockSpec((None, H + 2, Wp + 2, Cin),
                                     lambda n, i, co: (n, 0, 0, 0)))
        inputs.append(xp)
    else:
        in_specs.append(pl.BlockSpec((None, TH, Wp + 2, Cin),
                                     lambda n, i, co: (n, i, 0, 0)))
        # 2-row halo block directly below the strip.  Block height is 2, so the
        # block index is the element row divided by 2 (valid: TH is even).
        in_specs.append(pl.BlockSpec((None, 2, Wp + 2, Cin),
                                     lambda n, i, co: (n, ((i + 1) * TH) // 2, 0, 0)))
        inputs.append(xp)
        inputs.append(xp)
        scratch.append(pltpu.VMEM((TH + 2, Wp + 2, Cin), x.dtype))
    in_specs += [w_spec, b_spec]
    inputs += [w_in, b_row]

    out_shapes = [jax.ShapeDtypeStruct((N, H, W, Cout), out_dtype)]
    out_specs = [pl.BlockSpec((None, TH, W, TCout), lambda n, i, co: (n, i, 0, co))]
    if fuse_pool:
        out_shapes.append(jax.ShapeDtypeStruct((N, H // 2, W // 2, Cout), out_dtype))
        out_specs.append(pl.BlockSpec((None, TH // 2, W // 2, TCout),
                                      lambda n, i, co: (n, i, 0, co)))
        scratch.append(pltpu.VMEM((TH // 2, W, TCout), out_dtype))
    if fuse_k:
        scratch.append(pltpu.VMEM((TH, Wp, 3 * Cin), compute_dtype))

    return pl.pallas_call(
        kern,
        out_shape=tuple(out_shapes) if fuse_pool else out_shapes[0],
        grid=(N, n_h, n_co),
        in_specs=in_specs,
        out_specs=tuple(out_specs) if fuse_pool else out_specs[0],
        scratch_shapes=scratch,
        compiler_params=pltpu.CompilerParams(
            dimension_semantics=("parallel", "parallel", "parallel"),
            vmem_limit_bytes=vmem_limit),
    )(*inputs)


def maxpool2x2(x):
    """Standalone 2x2/2 max pool (only used where the conv fusion is skipped)."""
    N, H, W, C = x.shape
    Ho, Wo = H // 2, W // 2
    vmem_limit = _vmem_limit_bytes()
    THo = _choose_pool_rows(Ho, W, Wo, C, x.dtype.itemsize, int(vmem_limit * 0.8))
    n_h = Ho // THo
    kern = functools.partial(_maxpool2x2_kernel, THo=THo, Wo=Wo)
    return pl.pallas_call(
        kern,
        out_shape=jax.ShapeDtypeStruct((N, Ho, Wo, C), x.dtype),
        grid=(N, n_h),
        in_specs=[pl.BlockSpec((None, 2 * THo, W, C), lambda n, i: (n, i, 0, 0))],
        out_specs=pl.BlockSpec((None, THo, Wo, C), lambda n, i: (n, i, 0, 0)),
        scratch_shapes=[pltpu.VMEM((THo, W, C), x.dtype)],
        compiler_params=pltpu.CompilerParams(
            dimension_semantics=("parallel", "parallel"),
            vmem_limit_bytes=vmem_limit),
    )(x)


def normalize_unit_to_vgg_nchw(x):
    """x: (N, 3, H, W) in [-1, 1] -> ImageNet-normalized, NCHW in / NCHW out."""
    N, C, H, W = x.shape
    assert C == 3
    kern = functools.partial(_normalize_kernel, mean=_IMAGENET_MEAN,
                             inv_std=tuple(1.0 / s for s in _IMAGENET_STD))
    return pl.pallas_call(
        kern,
        out_shape=jax.ShapeDtypeStruct(x.shape, x.dtype),
        grid=(N,),
        in_specs=[pl.BlockSpec((None, C, H, W), lambda n: (n, 0, 0, 0))],
        out_specs=pl.BlockSpec((None, C, H, W), lambda n: (n, 0, 0, 0)),
        compiler_params=pltpu.CompilerParams(
            dimension_semantics=("parallel",),
            vmem_limit_bytes=_vmem_limit_bytes()),
    )(x)


# ----------------------------------------------------------------------------
# Model
# ----------------------------------------------------------------------------
def init_vgg16_params(key):
    """Deterministic synthetic weights, torch OIHW layout + (Cout,) bias."""
    params = []
    cin = 3
    for v in VGG16_CFG:
        if v == 'M':
            continue
        key, kw, kb = jax.random.split(key, 3)
        fan_in = cin * 9
        w = jax.random.normal(kw, (v, cin, 3, 3), jnp.float32) * jnp.sqrt(2.0 / fan_in)
        b = jax.random.normal(kb, (v,), jnp.float32) * 0.01
        params.append((w, b))
        cin = v
    return params


class VGG16ExtractorPallas:
    """Mirror of the PyTorch VGG16Extractor.forward (feature-pyramid extractor)."""

    def __init__(self, space, params, compute_dtype=jnp.bfloat16,
                 act_dtype=jnp.bfloat16, feature_dtype=jnp.float32):
        self.space = space
        self.compute_dtype = compute_dtype
        self.act_dtype = act_dtype            # inter-layer activation storage dtype
        self.feature_dtype = feature_dtype    # dtype of the captured features
        self.capture_layers = set(CAPTURE_LAYERS)
        # Hoisted out of forward(): OIHW -> HWIO transpose + compute-dtype cast.
        self.prepared = []
        for w, b in params:
            self.prepared.append((
                jnp.transpose(w, (2, 3, 1, 0)).astype(compute_dtype),
                jnp.asarray(b, jnp.float32).reshape(1, -1),
            ))

    def forward(self, x_nchw, channels_last=False):
        """Returns [x_norm] + the 9 captured ReLU feature maps (NCHW, f32)."""
        if self.space != 'vgg':
            x_nchw = normalize_unit_to_vgg_nchw(x_nchw)

        def cap(t_nhwc):
            t = t_nhwc.astype(self.feature_dtype)
            return t if channels_last else jnp.transpose(t, (0, 3, 1, 2))

        x_nhwc = jnp.transpose(x_nchw, (0, 2, 3, 1))         # NCHW -> NHWC once
        feats = [x_nhwc if channels_last else x_nchw]        # feat[0] = normalized x
        x = x_nhwc.astype(self.act_dtype)                    # bf16 activation chain

        layer_idx = 0
        conv_idx = 0
        i = 0
        while i < len(VGG16_CFG):
            v = VGG16_CFG[i]
            if v == 'M':
                # only reached when the preceding conv was not fused (odd dims)
                x = maxpool2x2(x)
                layer_idx += 1
                i += 1
                continue
            w_hwio, b_row = self.prepared[conv_idx]
            conv_idx += 1
            H, W = x.shape[1], x.shape[2]
            next_is_pool = (i + 1 < len(VGG16_CFG)) and VGG16_CFG[i + 1] == 'M'
            fuse = next_is_pool and (H % 2 == 0) and (W % 2 == 0)
            if fuse:
                relu_out, pooled = conv3x3_relu(
                    x, w_hwio, b_row, compute_dtype=self.compute_dtype,
                    out_dtype=self.act_dtype, fuse_pool=True)
                if layer_idx + 1 in self.capture_layers:     # ReLU output
                    feats.append(cap(relu_out))
                x = pooled
                layer_idx += 3                               # conv, relu, pool
                i += 2                                       # consumed the 'M' too
            else:
                x = conv3x3_relu(x, w_hwio, b_row,
                                 compute_dtype=self.compute_dtype,
                                 out_dtype=self.act_dtype)
                if layer_idx + 1 in self.capture_layers:
                    feats.append(cap(x))
                layer_idx += 2
                i += 1
        return feats


# ----------------------------------------------------------------------------
# Pure-JAX references (sanity checks)
# ----------------------------------------------------------------------------
def ref_forward(x_nchw, params, space):
    x = x_nchw
    if space != 'vgg':
        mean = jnp.array(_IMAGENET_MEAN, jnp.float32).reshape(1, 3, 1, 1)
        std = jnp.array(_IMAGENET_STD, jnp.float32).reshape(1, 3, 1, 1)
        x = ((x + 1.0) / 2.0 - mean) / std
    feats = [x]
    layer_idx = 0
    conv_idx = 0
    capture = set(CAPTURE_LAYERS)
    for v in VGG16_CFG:
        if v == 'M':
            x = lax.reduce_window(x, -jnp.inf, lax.max,
                                  (1, 1, 2, 2), (1, 1, 2, 2), 'VALID')
            if layer_idx in capture:
                feats.append(x)
            layer_idx += 1
        else:
            w, b = params[conv_idx]
            conv_idx += 1
            x = lax.conv_general_dilated(
                x, w, window_strides=(1, 1), padding=((1, 1), (1, 1)),
                dimension_numbers=('NCHW', 'OIHW', 'NCHW'),
                precision=lax.Precision.HIGHEST) + b.reshape(1, -1, 1, 1)
            layer_idx += 1
            x = jnp.maximum(x, 0.0)
            if layer_idx in capture:
                feats.append(x)
            layer_idx += 1
    return feats


def _ref_conv3x3_relu_nhwc(x, w_hwio, b):
    y = lax.conv_general_dilated(
        x, w_hwio, window_strides=(1, 1), padding=((1, 1), (1, 1)),
        dimension_numbers=('NHWC', 'HWIO', 'NHWC'),
        precision=lax.Precision.HIGHEST)
    return jnp.maximum(y + jnp.reshape(b, (1, 1, 1, -1)), 0.0)


def _rel_err(a, b):
    a32 = a.astype(jnp.float32)
    b32 = b.astype(jnp.float32)
    num = float(jnp.linalg.norm((a32 - b32).ravel()))
    den = float(jnp.linalg.norm(b32.ravel())) + 1e-6
    return num / den


# ----------------------------------------------------------------------------
if __name__ == "__main__":
    key = jax.random.PRNGKey(0)
    keys = jax.random.split(key, 12)
    (kparams, kx, k1, k2, k3, k4, k5, k6, k7, k8, k9, k10) = keys

    # Inputs rounded to bf16-representable f32 so the strict checks below are
    # independent of the MXU ingest precision; only accumulation-order noise
    # remains -> tight 1e-5 tolerance is valid.
    def _bf16_round(a):
        return a.astype(jnp.bfloat16).astype(jnp.float32)

    # ---- conv unit test 1: small-Cin (9-tap) path, whole-image window -------
    xc = _bf16_round(jax.random.normal(k1, (2, 16, 16, 64), jnp.float32))
    wc = _bf16_round(jax.random.normal(k2, (3, 3, 64, 256), jnp.float32) * 0.05)
    bc = _bf16_round(jax.random.normal(k3, (256,), jnp.float32) * 0.1)
    out_c = jax.block_until_ready(conv3x3_relu(xc, wc, bc, compute_dtype=jnp.float32))
    err = _rel_err(out_c, _ref_conv3x3_relu_nhwc(xc, wc, bc))
    assert err < 1e-5, f"conv3x3_relu (9-tap) relative error {err}"

    # ---- conv unit test 2: K-fused path + Cout grid tiling -------------------
    xk = _bf16_round(jax.random.normal(k4, (2, 8, 8, 128), jnp.float32))
    wk = _bf16_round(jax.random.normal(k5, (3, 3, 128, 512), jnp.float32) * 0.03)
    bk = _bf16_round(jax.random.normal(k6, (512,), jnp.float32) * 0.1)
    out_k = jax.block_until_ready(conv3x3_relu(xk, wk, bk, compute_dtype=jnp.float32))
    err = _rel_err(out_k, _ref_conv3x3_relu_nhwc(xk, wk, bk))
    assert err < 1e-5, f"conv3x3_relu (K-fused) relative error {err}"

    # ---- conv unit test 3: strip + 2-row halo + fused 2x2 maxpool ------------
    xs = _bf16_round(jax.random.normal(k7, (2, 16, 16, 128), jnp.float32))
    ws = _bf16_round(jax.random.normal(k8, (3, 3, 128, 128), jnp.float32) * 0.05)
    bs = _bf16_round(jax.random.normal(k9, (128,), jnp.float32) * 0.1)
    relu_o, pool_o = conv3x3_relu(xs, ws, bs, compute_dtype=jnp.float32,
                                  fuse_pool=True, _force_strip_rows=4)
    jax.block_until_ready((relu_o, pool_o))
    ref_relu = _ref_conv3x3_relu_nhwc(xs, ws, bs)
    ref_pool = lax.reduce_window(ref_relu, -jnp.inf, lax.max,
                                 (1, 2, 2, 1), (1, 2, 2, 1), 'VALID')
    err = _rel_err(relu_o, ref_relu)
    assert err < 1e-5, f"fused conv (strip) relative error {err}"
    err = _rel_err(pool_o, ref_pool)
    assert err < 1e-5, f"fused pool relative error {err}"

    # ---- standalone maxpool ---------------------------------------------------
    xm = jax.random.normal(k10, (2, 16, 16, 128), jnp.float32)
    out_m = jax.block_until_ready(maxpool2x2(xm))
    ref_m = lax.reduce_window(xm, -jnp.inf, lax.max, (1, 2, 2, 1), (1, 2, 2, 1), 'VALID')
    assert bool(jnp.array_equal(out_m, ref_m)), "maxpool2x2 mismatch"

    # ---- normalization --------------------------------------------------------
    # Input in [-1, 1]; spatial 32 keeps all 5 VGG pools valid (32->16->...->1).
    xn = jax.random.uniform(kx, (2, 3, 32, 32), jnp.float32, minval=-1.0, maxval=1.0)
    out_n = jax.block_until_ready(normalize_unit_to_vgg_nchw(xn))
    mean = jnp.array(_IMAGENET_MEAN, jnp.float32).reshape(1, 3, 1, 1)
    std = jnp.array(_IMAGENET_STD, jnp.float32).reshape(1, 3, 1, 1)
    err = _rel_err(out_n, ((xn + 1.0) / 2.0 - mean) / std)
    assert err < 1e-5, f"normalize relative error {err}"

    # ---- end-to-end forward (bf16 MXU compute + bf16 activation storage) ------
    params = init_vgg16_params(kparams)
    model = VGG16ExtractorPallas(space='uniform', params=params,
                                 compute_dtype=jnp.bfloat16,
                                 act_dtype=jnp.bfloat16)
    feats = jax.block_until_ready(model.forward(xn))
    ref = ref_forward(xn, params, 'uniform')
    assert len(feats) == len(ref) == 1 + len(CAPTURE_LAYERS)
    for i, (a, r) in enumerate(zip(feats, ref)):
        assert a.shape == r.shape, (i, a.shape, r.shape)
        err = _rel_err(a, r)
        # bf16 MXU operands + bf16 inter-layer activation storage contribute a
        # few 1e-3 of relative rounding per conv over up to 13 layers; 0.2
        # bounds that with margin.  Exact layout / indexing correctness is
        # established by the f32 unit tests above.
        assert err < 0.2, f"feature {i}: relative error {err}"

    print("KERNEL_OK")
</pallas_src>

<mosaic_0001>
module attributes {stable_mosaic.version = 11 : i64} {
  func.func @_conv3x3_kernel(%arg0: i32, %arg1: i32, %arg2: i32, %arg3: memref<1x18x18x64xf32, #tpu.memory_space<vmem>>, %arg4: memref<3x3x64x256xf32, #tpu.memory_space<vmem>>, %arg5: memref<1x256xf32, #tpu.memory_space<vmem>>, %arg6: memref<1x16x16x256xf32, #tpu.memory_space<vmem>>) attributes {dimension_semantics = [#tpu.dimension_semantics<parallel>, #tpu.dimension_semantics<parallel>, #tpu.dimension_semantics<parallel>], iteration_bounds = array<i64: 2, 1, 1>, scalar_prefetch = 0 : i64, scratch_operands = 0 : i64, tpu.core_type = #tpu.core_type<tc>, window_params = [{transform_indices = @transform_0, window_bounds = array<i64: 1, 18, 18, 64>}, {transform_indices = @transform_1, window_bounds = array<i64: 3, 3, 64, 256>}, {transform_indices = @transform_2, window_bounds = array<i64: 1, 256>}, {transform_indices = @transform_3, window_bounds = array<i64: 1, 16, 16, 256>}]} {
    %c0 = arith.constant 0 : index
    %c0_0 = arith.constant 0 : index
    %0 = vector.load %arg5[%c0, %c0_0] : memref<1x256xf32, #tpu.memory_space<vmem>>, vector<1x256xf32>
    %c0_1 = arith.constant 0 : index
    %c0_2 = arith.constant 0 : index
    %c0_3 = arith.constant 0 : index
    %c0_4 = arith.constant 0 : index
    %1 = vector.load %arg3[%c0_1, %c0_2, %c0_3, %c0_4] : memref<1x18x18x64xf32, #tpu.memory_space<vmem>>, vector<1x16x16x64xf32>
    %2 = vector.shape_cast %1 : vector<1x16x16x64xf32> to vector<16x16x64xf32>
    %3 = vector.shape_cast %2 : vector<16x16x64xf32> to vector<256x64xf32>
    %c0_5 = arith.constant 0 : index
    %c0_6 = arith.constant 0 : index
    %c0_7 = arith.constant 0 : index
    %c0_8 = arith.constant 0 : index
    %4 = vector.load %arg4[%c0_5, %c0_6, %c0_7, %c0_8] : memref<3x3x64x256xf32, #tpu.memory_space<vmem>>, vector<1x1x64x256xf32>
    %5 = vector.shape_cast %4 : vector<1x1x64x256xf32> to vector<64x256xf32>
    %cst = arith.constant dense<0.000000e+00> : vector<256x256xf32>
    %6 = tpu.matmul %3, %5, %cst {dimension_numbers = #tpu.dot_dimension_numbers<[1], [0], [0], [1], [0, 0, 1, 1], [], []>} : vector<256x64xf32>, vector<64x256xf32>, vector<256x256xf32> -> vector<256x256xf32>
    %c0_9 = arith.constant 0 : index
    %c0_10 = arith.constant 0 : index
    %c1 = arith.constant 1 : index
    %c0_11 = arith.constant 0 : index
    %7 = vector.load %arg3[%c0_9, %c0_10, %c1, %c0_11] : memref<1x18x18x64xf32, #tpu.memory_space<vmem>>, vector<1x16x16x64xf32>
    %8 = vector.shape_cast %7 : vector<1x16x16x64xf32> to vector<16x16x64xf32>
    %9 = vector.shape_cast %8 : vector<16x16x64xf32> to vector<256x64xf32>
    %c0_12 = arith.constant 0 : index
    %c1_13 = arith.constant 1 : index
    %c0_14 = arith.constant 0 : index
    %c0_15 = arith.constant 0 : index
    %10 = vector.load %arg4[%c0_12, %c1_13, %c0_14, %c0_15] : memref<3x3x64x256xf32, #tpu.memory_space<vmem>>, vector<1x1x64x256xf32>
    %11 = vector.shape_cast %10 : vector<1x1x64x256xf32> to vector<64x256xf32>
    %cst_16 = arith.constant dense<0.000000e+00> : vector<256x256xf32>
    %12 = tpu.matmul %9, %11, %cst_16 {dimension_numbers = #tpu.dot_dimension_numbers<[1], [0], [0], [1], [0, 0, 1, 1], [], []>} : vector<256x64xf32>, vector<64x256xf32>, vector<256x256xf32> -> vector<256x256xf32>
    %13 = arith.addf %6, %12 : vector<256x256xf32>
    %c0_17 = arith.constant 0 : index
    %c0_18 = arith.constant 0 : index
    %c2 = arith.constant 2 : index
    %c0_19 = arith.constant 0 : index
    %14 = vector.load %arg3[%c0_17, %c0_18, %c2, %c0_19] : memref<1x18x18x64xf32, #tpu.memory_space<vmem>>, vector<1x16x16x64xf32>
    %15 = vector.shape_cast %14 : vector<1x16x16x64xf32> to vector<16x16x64xf32>
    %16 = vector.shape_cast %15 : vector<16x16x64xf32> to vector<256x64xf32>
    %c0_20 = arith.constant 0 : index
    %c2_21 = arith.constant 2 : index
    %c0_22 = arith.constant 0 : index
    %c0_23 = arith.constant 0 : index
    %17 = vector.load %arg4[%c0_20, %c2_21, %c0_22, %c0_23] : memref<3x3x64x256xf32, #tpu.memory_space<vmem>>, vector<1x1x64x256xf32>
    %18 = vector.shape_cast %17 : vector<1x1x64x256xf32> to vector<64x256xf32>
    %cst_24 = arith.constant dense<0.000000e+00> : vector<256x256xf32>
    %19 = tpu.matmul %16, %18, %cst_24 {dimension_numbers = #tpu.dot_dimension_numbers<[1], [0], [0], [1], [0, 0, 1, 1], [], []>} : vector<256x64xf32>, vector<64x256xf32>, vector<256x256xf32> -> vector<256x256xf32>
    %20 = arith.addf %13, %19 : vector<256x256xf32>
    %c0_25 = arith.constant 0 : index
    %c1_26 = arith.constant 1 : index
    %c0_27 = arith.constant 0 : index
    %c0_28 = arith.constant 0 : index
    %21 = vector.load %arg3[%c0_25, %c1_26, %c0_27, %c0_28] : memref<1x18x18x64xf32, #tpu.memory_space<vmem>>, vector<1x16x16x64xf32>
    %22 = vector.shape_cast %21 : vector<1x16x16x64xf32> to vector<16x16x64xf32>
    %23 = vector.shape_cast %22 : vector<16x16x64xf32> to vector<256x64xf32>
    %c1_29 = arith.constant 1 : index
    %c0_30 = arith.constant 0 : index
    %c0_31 = arith.constant 0 : index
    %c0_32 = arith.constant 0 : index
    %24 = vector.load %arg4[%c1_29, %c0_30, %c0_31, %c0_32] : memref<3x3x64x256xf32, #tpu.memory_space<vmem>>, vector<1x1x64x256xf32>
    %25 = vector.shape_cast %24 : vector<1x1x64x256xf32> to vector<64x256xf32>
    %cst_33 = arith.constant dense<0.000000e+00> : vector<256x256xf32>
    %26 = tpu.matmul %23, %25, %cst_33 {dimension_numbers = #tpu.dot_dimension_numbers<[1], [0], [0], [1], [0, 0, 1, 1], [], []>} : vector<256x64xf32>, vector<64x256xf32>, vector<256x256xf32> -> vector<256x256xf32>
    %27 = arith.addf %20, %26 : vector<256x256xf32>
    %c0_34 = arith.constant 0 : index
    %c1_35 = arith.constant 1 : index
    %c1_36 = arith.constant 1 : index
    %c0_37 = arith.constant 0 : index
    %28 = vector.load %arg3[%c0_34, %c1_35, %c1_36, %c0_37] : memref<1x18x18x64xf32, #tpu.memory_space<vmem>>, vector<1x16x16x64xf32>
    %29 = vector.shape_cast %28 : vector<1x16x16x64xf32> to vector<16x16x64xf32>
    %30 = vector.shape_cast %29 : vector<16x16x64xf32> to vector<256x64xf32>
    %c1_38 = arith.constant 1 : index
    %c1_39 = arith.constant 1 : index
    %c0_40 = arith.constant 0 : index
    %c0_41 = arith.constant 0 : index
    %31 = vector.load %arg4[%c1_38, %c1_39, %c0_40, %c0_41] : memref<3x3x64x256xf32, #tpu.memory_space<vmem>>, vector<1x1x64x256xf32>
    %32 = vector.shape_cast %31 : vector<1x1x64x256xf32> to vector<64x256xf32>
    %cst_42 = arith.constant dense<0.000000e+00> : vector<256x256xf32>
    %33 = tpu.matmul %30, %32, %cst_42 {dimension_numbers = #tpu.dot_dimension_numbers<[1], [0], [0], [1], [0, 0, 1, 1], [], []>} : vector<256x64xf32>, vector<64x256xf32>, vector<256x256xf32> -> vector<256x256xf32>
    %34 = arith.addf %27, %33 : vector<256x256xf32>
    %c0_43 = arith.constant 0 : index
    %c1_44 = arith.constant 1 : index
    %c2_45 = arith.constant 2 : index
    %c0_46 = arith.constant 0 : index
    %35 = vector.load %arg3[%c0_43, %c1_44, %c2_45, %c0_46] : memref<1x18x18x64xf32, #tpu.memory_space<vmem>>, vector<1x16x16x64xf32>
    %36 = vector.shape_cast %35 : vector<1x16x16x64xf32> to vector<16x16x64xf32>
    %37 = vector.shape_cast %36 : vector<16x16x64xf32> to vector<256x64xf32>
    %c1_47 = arith.constant 1 : index
    %c2_48 = arith.constant 2 : index
    %c0_49 = arith.constant 0 : index
    %c0_50 = arith.constant 0 : index
    %38 = vector.load %arg4[%c1_47, %c2_48, %c0_49, %c0_50] : memref<3x3x64x256xf32, #tpu.memory_space<vmem>>, vector<1x1x64x256xf32>
    %39 = vector.shape_cast %38 : vector<1x1x64x256xf32> to vector<64x256xf32>
    %cst_51 = arith.constant dense<0.000000e+00> : vector<256x256xf32>
    %40 = tpu.matmul %37, %39, %cst_51 {dimension_numbers = #tpu.dot_dimension_numbers<[1], [0], [0], [1], [0, 0, 1, 1], [], []>} : vector<256x64xf32>, vector<64x256xf32>, vector<256x256xf32> -> vector<256x256xf32>
    %41 = arith.addf %34, %40 : vector<256x256xf32>
    %c0_52 = arith.constant 0 : index
    %c2_53 = arith.constant 2 : index
    %c0_54 = arith.constant 0 : index
    %c0_55 = arith.constant 0 : index
    %42 = vector.load %arg3[%c0_52, %c2_53, %c0_54, %c0_55] : memref<1x18x18x64xf32, #tpu.memory_space<vmem>>, vector<1x16x16x64xf32>
    %43 = vector.shape_cast %42 : vector<1x16x16x64xf32> to vector<16x16x64xf32>
    %44 = vector.shape_cast %43 : vector<16x16x64xf32> to vector<256x64xf32>
    %c2_56 = arith.constant 2 : index
    %c0_57 = arith.constant 0 : index
    %c0_58 = arith.constant 0 : index
    %c0_59 = arith.constant 0 : index
    %45 = vector.load %arg4[%c2_56, %c0_57, %c0_58, %c0_59] : memref<3x3x64x256xf32, #tpu.memory_space<vmem>>, vector<1x1x64x256xf32>
    %46 = vector.shape_cast %45 : vector<1x1x64x256xf32> to vector<64x256xf32>
    %cst_60 = arith.constant dense<0.000000e+00> : vector<256x256xf32>
    %47 = tpu.matmul %44, %46, %cst_60 {dimension_numbers = #tpu.dot_dimension_numbers<[1], [0], [0], [1], [0, 0, 1, 1], [], []>} : vector<256x64xf32>, vector<64x256xf32>, vector<256x256xf32> -> vector<256x256xf32>
    %48 = arith.addf %41, %47 : vector<256x256xf32>
    %c0_61 = arith.constant 0 : index
    %c2_62 = arith.constant 2 : index
    %c1_63 = arith.constant 1 : index
    %c0_64 = arith.constant 0 : index
    %49 = vector.load %arg3[%c0_61, %c2_62, %c1_63, %c0_64] : memref<1x18x18x64xf32, #tpu.memory_space<vmem>>, vector<1x16x16x64xf32>
    %50 = vector.shape_cast %49 : vector<1x16x16x64xf32> to vector<16x16x64xf32>
    %51 = vector.shape_cast %50 : vector<16x16x64xf32> to vector<256x64xf32>
    %c2_65 = arith.constant 2 : index
    %c1_66 = arith.constant 1 : index
    %c0_67 = arith.constant 0 : index
    %c0_68 = arith.constant 0 : index
    %52 = vector.load %arg4[%c2_65, %c1_66, %c0_67, %c0_68] : memref<3x3x64x256xf32, #tpu.memory_space<vmem>>, vector<1x1x64x256xf32>
    %53 = vector.shape_cast %52 : vector<1x1x64x256xf32> to vector<64x256xf32>
    %cst_69 = arith.constant dense<0.000000e+00> : vector<256x256xf32>
    %54 = tpu.matmul %51, %53, %cst_69 {dimension_numbers = #tpu.dot_dimension_numbers<[1], [0], [0], [1], [0, 0, 1, 1], [], []>} : vector<256x64xf32>, vector<64x256xf32>, vector<256x256xf32> -> vector<256x256xf32>
    %55 = arith.addf %48, %54 : vector<256x256xf32>
    %c0_70 = arith.constant 0 : index
    %c2_71 = arith.constant 2 : index
    %c2_72 = arith.constant 2 : index
    %c0_73 = arith.constant 0 : index
    %56 = vector.load %arg3[%c0_70, %c2_71, %c2_72, %c0_73] : memref<1x18x18x64xf32, #tpu.memory_space<vmem>>, vector<1x16x16x64xf32>
    %57 = vector.shape_cast %56 : vector<1x16x16x64xf32> to vector<16x16x64xf32>
    %58 = vector.shape_cast %57 : vector<16x16x64xf32> to vector<256x64xf32>
    %c2_74 = arith.constant 2 : index
    %c2_75 = arith.constant 2 : index
    %c0_76 = arith.constant 0 : index
    %c0_77 = arith.constant 0 : index
    %59 = vector.load %arg4[%c2_74, %c2_75, %c0_76, %c0_77] : memref<3x3x64x256xf32, #tpu.memory_space<vmem>>, vector<1x1x64x256xf32>
    %60 = vector.shape_cast %59 : vector<1x1x64x256xf32> to vector<64x256xf32>
    %cst_78 = arith.constant dense<0.000000e+00> : vector<256x256xf32>
    %61 = tpu.matmul %58, %60, %cst_78 {dimension_numbers = #tpu.dot_dimension_numbers<[1], [0], [0], [1], [0, 0, 1, 1], [], []>} : vector<256x64xf32>, vector<64x256xf32>, vector<256x256xf32> -> vector<256x256xf32>
    %62 = arith.addf %55, %61 : vector<256x256xf32>
    %63 = vector.broadcast %0 : vector<1x256xf32> to vector<256x256xf32>
    %64 = arith.addf %62, %63 : vector<256x256xf32>
    %cst_79 = arith.constant 0.000000e+00 : f32
    %65 = vector.broadcast %cst_79 : f32 to vector<256x256xf32>
    %66 = arith.maximumf %64, %65 : vector<256x256xf32>
    %67 = vector.shape_cast %66 : vector<256x256xf32> to vector<16x16x256xf32>
    %c0_80 = arith.constant 0 : index
    %c0_81 = arith.constant 0 : index
    %c0_82 = arith.constant 0 : index
    %c0_83 = arith.constant 0 : index
    %68 = vector.load %arg6[%c0_80, %c0_81, %c0_82, %c0_83] : memref<1x16x16x256xf32, #tpu.memory_space<vmem>>, vector<1x16x16x256xf32>
    %69 = vector.shape_cast %68 : vector<1x16x16x256xf32> to vector<16x16x256xf32>
    %70 = vector.shape_cast %67 : vector<16x16x256xf32> to vector<1x16x16x256xf32>
    tpu.vector_store %arg6[%c0_80, %c0_81, %c0_82, %c0_83], %70 {strides = array<i32>} : memref<1x16x16x256xf32, #tpu.memory_space<vmem>>, vector<1x16x16x256xf32>,
    return
  }
  func.func @transform_0(%arg0: i32, %arg1: i32, %arg2: i32) -> (i32, i32, i32, i32) {
    %c0_i32 = arith.constant 0 : i32
    %c0_i32_0 = arith.constant 0 : i32
    %c0_i32_1 = arith.constant 0 : i32
    %c0_i32_2 = arith.constant 0 : i32
    return %arg0, %c0_i32, %c0_i32_0, %c0_i32_1 : i32, i32, i32, i32
  }
  func.func @transform_1(%arg0: i32, %arg1: i32, %arg2: i32) -> (i32, i32, i32, i32) {
    %c0_i32 = arith.constant 0 : i32
    %c0_i32_0 = arith.constant 0 : i32
    %c0_i32_1 = arith.constant 0 : i32
    %c0_i32_2 = arith.constant 0 : i32
    return %c0_i32, %c0_i32_0, %c0_i32_1, %arg2 : i32, i32, i32, i32
  }
  func.func @transform_2(%arg0: i32, %arg1: i32, %arg2: i32) -> (i32, i32) {
    %c0_i32 = arith.constant 0 : i32
    %c0_i32_0 = arith.constant 0 : i32
    return %c0_i32, %arg2 : i32, i32
  }
  func.func @transform_3(%arg0: i32, %arg1: i32, %arg2: i32) -> (i32, i32, i32, i32) {
    %c0_i32 = arith.constant 0 : i32
    %c0_i32_0 = arith.constant 0 : i32
    return %arg0, %arg1, %c0_i32, %arg2 : i32, i32, i32, i32
  }
}

</mosaic_0001>

<bundles_post_ra>
// kernel: tpu_custom_call.1
= control target key start
LH: loop header
LB: loop body
LE: loop exit
PB: predicated region body
PF: predicated region fallthrough
CT: control target
= control target key end

     0   :  { %8 = vsyncpa [#allocation3], 0  ;;  %s7981_s0 = inlined_call_operand.vmem [shape: f32[2,18,18,64], index: 0, kind: input, shape index: {}]   ;;  %s7982_s1 = inlined_call_operand.vmem [shape: f32[3,3,64,256], index: 1, kind: input, shape index: {}]   ;;  %s7983_s2 = inlined_call_operand.vmem [shape: f32[1,256], index: 2, kind: input, shape index: {}]   ;;  %s7984_s3 = inlined_call_operand.hbm [shape: f32[2,16,16,256], index: 3, kind: output, shape index: {}]  }
   0x1   :  { %10 = vsyncpa [#allocation3 + $0x1], 0  ;;  %s5431_s12 = smov 0   ;;  %s5433_s13 = smov 0  }
   0x2   :  { %s5435_s14 = smov 0   ;;  %s5437_s15 = smov 0  }
   0x3   :  { %s5439_s16 = smov 0   ;;  %s5441_s17 = smov 0  }
   0x4 LB: > { %s4631_s18 = sadd.s32 4294967295, %s5405_s17   ;;  %s4632_s19 = sadd.s32 4294967294, %s5405_s17   ;;  %s5405_s17 = sphi %s5441_s17, %s16_s17   ;;  %s5401_s16 = sphi %s5439_s16, %s8199_s16   ;;  %s5397_s15 = sphi %s5437_s15, %s8198_s15   ;;  %s5393_s14 = sphi %s5435_s14, %s8197_s14   ;;  %s5389_s13 = sphi %s5433_s13, %s8196_s13   ;;  %s5385_s12 = sphi %s5431_s12, %s8195_s12  }
   0x5   : > { %s35_s20 = sadd.s32 1, %s5401_s16  ;;  %s124_s21 = sadd.s32 1, %s5393_s14 }
   0x6   : > { %p37_p0 = scmp.ge.s32.totalorder %s35_s20, 2  ;;  %p134_p1 = scmp.ne.s32.totalorder %s5393_s14, %s5389_s13 }
   0x7   : > { %p135_p2 = scmp.eq.s32.totalorder %s4631_s18, 1  ;;  %p140_p3 = scmp.ne.s32.totalorder %s5389_s13, %s5385_s12 }
   0x8   : > { %s8201_s20 = smov (%p37_p0, %s35_s20), 0  ;;  %p141_p5 = scmp.eq.s32.totalorder %s4632_s19, 1 }
   0x9   : > { %p5471_p4 = por %p135_p2, %p134_p1  ;;  %s117_s23 = ssub.s32 %s5401_s16, %s8201_s20 }
   0xa   : > { %p4637_p6 = scmp.ge.s32.totalorder %s5405_s17, 1  ;;  %p122_p7 = scmp.eq.s32.totalorder %s117_s23, 0 }
   0xb   : > { %p5478_p8 = por %p141_p5, %p140_p3  ;;  %p184_p9 = scmp.lt.s32.totalorder %s5405_s17, 3 }
   0xc   : > { %s5484_s25 = scalar_select %p122_p7, %s5393_s14, %s124_s21  }
   0xd   : > { %p185_p10 = pnand %p4637_p6, %p184_p9 }
   0xf   : > { %188 = sbr.rel (%p185_p10) target bundleno = 827 (0x33b), region = 32 }
  0x14   : > { %v4655_v0 = vld [vmem:[%s7982_s1 + $0xf8] sm:$0xff]  ;;  %v4654_v1 = vld [vmem:[%s7982_s1 + $0xf0] sm:$0xff]  ;;  %v4653_v2 = vld [vmem:[%s7982_s1 + $0xe8] sm:$0xff]  ;;  %p217_p11 = scmp.lt.s32.totalorder %s5397_s15, 1  ;;  %vm333_vm0 = vcmask 523264   ;;  %v5407_v18 = vmov 0.0  }
  0x15   : > { %5254 = vmatprep.subr.mxu1 %v4655_v0  ;;  %446 = vmatprep.subr.mxu0 %v4655_v0  ;;  %v4652_v3 = vld [vmem:[%s7982_s1 + $0xe0] sm:$0xff]  ;;  %v4651_v4 = vld [vmem:[%s7982_s1 + $0xd8] sm:$0xff]  ;;  %v4650_v5 = vld [vmem:[%s7982_s1 + $0xd0] sm:$0xff]  ;;  %s214_s30 = sand.u32 1, %s5389_s13   ;;  %s5253_s6 = sshll.u32 %s5397_s15, 13 }
  0x16   : > { %5262 = vmatpush1.msra.mxu1 %v4654_v1  ;;  %447 = vmatpush1.msra.mxu0 %v4654_v1  ;;  %v4649_v6 = vld [vmem:[%s7982_s1 + $0xc8] sm:$0xff]  ;;  %s218_s19 = scalar_select %p217_p11, %s5397_s15, 1  ;;  %v4648_v7 = vld [vmem:[%s7982_s1 + $0xc0] sm:$0xff]  ;;  %v4647_v8 = vld [vmem:[%s7982_s1 + $0xb8] sm:$0xff] }
  0x17   : > { %5255 = vmatprep.subr.mxu1 %v4653_v2  ;;  %448 = vmatprep.subr.mxu0 %v4653_v2  ;;  %v4646_v9 = vld [vmem:[%s7982_s1 + $0xb0] sm:$0xff]  ;;  %v4645_v10 = vld [vmem:[%s7982_s1 + $0xa8] sm:$0xff]  ;;  %v4644_v11 = vld [vmem:[%s7982_s1 + $0xa0] sm:$0xff]  ;;  %s4638_s4 = sshll.u32 %s214_s30, 9  ;;  %s7928_s10 = scalar_lea.hbm %s7984_s3, %s5253_s6 }
  0x18   : > { %5263 = vmatpush1.msra.mxu1 %v4652_v3  ;;  %449 = vmatpush1.msra.mxu0 %v4652_v3  ;;  %s5270_s5 = smul.u32 432, %s218_s19  ;;  %v4643_v12 = vld [vmem:[%s7982_s1 + $0x98] sm:$0xff]  ;;  %v4642_v13 = vld [vmem:[%s7982_s1 + $0x90] sm:$0xff]  ;;  %v4641_v14 = vld [vmem:[%s7982_s1 + $0x88] sm:$0xff]  ;;  %s7936_s15 = scalar_lea.sflag [#allocation3], %s214_s30 }
  0x19   : > { %5256 = vmatprep.subr.mxu1 %v4651_v4  ;;  %450 = vmatprep.subr.mxu0 %v4651_v4  ;;  %v4640_v15 = vld [vmem:[%s7982_s1 + $0x80] sm:$0xff]  ;;  %v283_v17 = vld [vmem:[%s7982_s1 + $0x78] sm:$0xff]  ;;  %v282_v20 = vld [vmem:[%s7982_s1 + $0x70] sm:$0xff]  ;;  %s5408_s18 = smov [#allocation2]  }
  0x1a   : > { %5264 = vmatpush1.msra.mxu1 %v4650_v5  ;;  %451 = vmatpush1.msra.mxu0 %v4650_v5  ;;  %s5536_s26 = scalar_lea.vmem %s7981_s0, %s5270_s5  ;;  %v4735_v21 = vld [vmem:[%s7982_s1 + $0x178] sm:$0xff]  ;;  %v4734_v22 = vld [vmem:[%s7982_s1 + $0x170] sm:$0xff]  ;;  %v281_v24 = vld [vmem:[%s7982_s1 + $0x68] sm:$0xff]  ;;  %s7737_s5 = scalar_lea.vmem [#allocation2], %s4638_s4 }
  0x1b   : > { %5257 = vmatprep.subr.mxu1 %v4649_v6  ;;  %452 = vmatprep.subr.mxu0 %v4649_v6  ;;  %v300_v16 = vld [vmem:[%s5536_s26 + $0xc1] sm:$0xff]  ;;  %v301_v23 = vld [vmem:[%s5536_s26 + $0xc9] sm:$0xff]  ;;  %v279_v28 = vld [vmem:[%s7982_s1 + $0x58] sm:$0xff]  ;;  %s4526_s7 = sshll.u32 %s7737_s5, 4  ;;  %s5333_s19 = sshll.u32 %s5408_s18, 4  ;;  %s7930_s7 = int_to_ptr.vmem [resolvable:$true] %s4526_s7  ;;  %s5334_s19 = int_to_ptr.vmem [resolvable:$false] %s5333_s19 }
  0x1c   : > { %5265 = vmatpush1.msra.mxu1 %v4648_v7  ;;  %453 = vmatpush1.msra.mxu0 %v4648_v7  ;;  %v284_v19 = vld [vmem:[%s5536_s26 + $0x1] sm:$0xff]  ;;  %v285_v25 = vld [vmem:[%s5536_s26 + $0x9] sm:$0xff]  ;;  %v302_v29 = vld [vmem:[%s5536_s26 + $0xd9] sm:$0xff]  ;;  %s5329_s11 = scalar_lea.vmem %s7930_s7, 8192  ;;  %s5335_s21 = scalar_lea.vmem %s5334_s19, 16384 }
  0x1d   : > { %5258 = vmatprep.subr.mxu1 %v4647_v8  ;;  %454 = vmatprep.subr.mxu0 %v4647_v8  ;;  %v280_v26 = vld [vmem:[%s7982_s1 + $0x60] sm:$0xff]  ;;  %v4733_v27 = vld [vmem:[%s7982_s1 + $0x168] sm:$0xff]  ;;  %v278_v32 = vld [vmem:[%s7982_s1 + $0x50] sm:$0xff]  ;;  %p5330_p12 = scmp.ne.s32.totalorder %s7930_s7, %s5329_s11  ;;  %p5336_p1 = scmp.lt.s32.totalorder %s7930_s7, %s5334_s19 }
  0x1e   : > { %5266 = vmatpush1.msra.mxu1 %v4646_v9  ;;  %455 = vmatpush1.msra.mxu0 %v4646_v9  ;;  %v4732_v30 = vld [vmem:[%s7982_s1 + $0x160] sm:$0xff]  ;;  %v4731_v33 = vld [vmem:[%s7982_s1 + $0x158] sm:$0xff]  ;;  %v277_v34 = vld [vmem:[%s7982_s1 + $0x48] sm:$0xff]  ;;  %p5337_p2 = scmp.lt.s32.totalorder %s5335_s21, %s5329_s11 }
  0x1f   : > { %5259 = vmatprep.subr.mxu1 %v4645_v10  ;;  %456 = vmatprep.subr.mxu0 %v4645_v10  ;;  %v5584_v31 = vld [vmem:[%s5536_s26 + $0x19] sm:$0xff]  ;;  %v303_v35 = vld [vmem:[%s5536_s26 + $0xe1] sm:$0xff]  ;;  %v4730_v36 = vld [vmem:[%s7982_s1 + $0x150] sm:$0xff]  ;;  %p5331_p13 = pnand %p5330_p12, %p5471_p4 }
  0x20   : > { %5267 = vmatpush1.msra.mxu1 %v4644_v11  ;;  %457 = vmatpush1.msra.mxu0 %v4644_v11  ;;  %v5605_v37 = vld [vmem:[%s5536_s26 + $0x21] sm:$0xff]  ;;  %v275_v40 = vld [vmem:[%s7982_s1 + $0x38] sm:$0xff]  ;;  %v274_v44 = vld [vmem:[%s7982_s1 + $0x30] sm:$0xff]  ;;  %p5338_p3 = por %p5337_p2, %p5336_p1 }
  0x21   : > { %5260 = vmatprep.subr.mxu1 %v4643_v12  ;;  %458 = vmatprep.subr.mxu0 %v4643_v12  ;;  %v276_v38 = vld [vmem:[%s7982_s1 + $0x40] sm:$0xff]  ;;  %v4729_v39 = vld [vmem:[%s7982_s1 + $0x148] sm:$0xff]  ;;  %v304_v41 = vld [vmem:[%s5536_s26 + $0xf1] sm:$0xff]  ;;  %p5332_p0 = pneg %p5331_p13 }
  0x22   : > { %5268 = vmatpush1.msra.mxu1 %v4642_v13  ;;  %459 = vmatpush1.msra.mxu0 %v4642_v13  ;;  %v4728_v42 = vld [vmem:[%s7982_s1 + $0x140] sm:$0xff]  ;;  %v5626_v43 = vld [vmem:[%s5536_s26 + $0x31] sm:$0xff]  ;;  %v273_v46 = vld [vmem:[%s7982_s1 + $0x28] sm:$0xff] }
  0x23   : > { %5261 = vmatprep.subr.mxu1 %v4641_v14  ;;  %460 = vmatprep.subr.mxu0 %v4641_v14  ;;  %v4727_v45 = vld [vmem:[%s7982_s1 + $0x138] sm:$0xff]  ;;  %v4726_v48 = vld [vmem:[%s7982_s1 + $0x130] sm:$0xff]  ;;  %v272_v50 = vld [vmem:[%s7982_s1 + $0x20] sm:$0xff]  ;;  %p5339_p5 = pnand %p5338_p3, %p5332_p0 }
  0x24   : > { %5269 = vmatpush1.msra.mxu1 %v4640_v15  ;;  %590 = vmatprep.mubr.f32.mxu1 %v5407_v18  ;;  %v305_v47 = vld [vmem:[%s5536_s26 + $0xf9] sm:$0xff]  ;;  %v4725_v51 = vld [vmem:[%s7982_s1 + $0x128] sm:$0xff]  ;;  %v270_v56 = vld [vmem:[%s7982_s1 + $0x10] sm:$0xff] }
  0x25   : > { %461 = vmatpush1.msra.mxu0 %v4640_v15  ;;  %494 = vmatprep.mubr.f32.mxu0 %v5407_v18  ;;  %v5647_v49 = vld [vmem:[%s5536_s26 + $0x39] sm:$0xff]  ;;  %v306_v53 = vld [vmem:[%s5536_s26 + $0x109] sm:$0xff]  ;;  %v307_v59 = vld [vmem:[%s5536_s26 + $0x111] sm:$0xff] }
  0x26   : > { %4672 = vmatmul.mubr.msk.f32.vlgmr.msra.gmra.mxu1 %vm333_vm0, %v300_v16  ;;  %799 = vmatprep.subr.mxu1 %v283_v17  ;;  %v271_v52 = vld [vmem:[%s7982_s1 + $0x18] sm:$0xff]  ;;  %v4724_v54 = vld [vmem:[%s7982_s1 + $0x120] sm:$0xff]  ;;  %v5668_v55 = vld [vmem:[%s5536_s26 + $0x49] sm:$0xff] }
  0x27   : > { %4656 = vmatmul.mubr.msk.f32.vlgmr.msra.gmra.mxu0 %vm333_vm0, %v284_v19  ;;  %800 = vmatpush1.msra.mxu1 %v282_v20  ;;  %v4723_v57 = vld [vmem:[%s7982_s1 + $0x118] sm:$0xff]  ;;  %v269_v58 = vld [vmem:[%s7982_s1 + $0x8] sm:$0xff]  ;;  %v4722_v60 = vld [vmem:[%s7982_s1 + $0x110] sm:$0xff] }
  0x28   : > { %1201 = vmatprep.subr.mxu0 %v4735_v21  ;;  %596 = vmatprep.mubr.f32.mxu1 %v5407_v18  ;;  %v5689_v61 = vld [vmem:[%s5536_s26 + $0x51] sm:$0xff]  ;;  %v268_v62 = vld [vmem:[%s7982_s1] sm:$0xff]  ;;  %v4721_v63 = vld [vmem:[%s7982_s1 + $0x108] sm:$0xff] }
  0x29   : > { %1202 = vmatpush1.msra.mxu0 %v4734_v22  ;;  %500 = vmatprep.mubr.f32.mxu0 %v5407_v18  ;;  %v4815_v0 = vld [vmem:[%s7982_s1 + $0x1f8] sm:$0xff]  ;;  %v308_v1 = vld [vmem:[%s5536_s26 + $0x121] sm:$0xff]  ;;  %v309_v5 = vld [vmem:[%s5536_s26 + $0x129] sm:$0xff] }
  0x2a   : > { %4673 = vmatmul.mubr.msk.f32.gmra.mxu1 %vm333_vm0, %v301_v23  ;;  %801 = vmatprep.subr.mxu1 %v281_v24  ;;  %v4720_v2 = vld [vmem:[%s7982_s1 + $0x100] sm:$0xff]  ;;  %v4895_v4 = vld [vmem:[%s7982_s1 + $0x278] sm:$0xff]  ;;  %v5722_v6 = vld [vmem:[%s5536_s26 + $0x69] sm:$0xff] }
  0x2b   : > { %4657 = vmatmul.mubr.msk.f32.gmra.mxu0 %vm333_vm0, %v285_v25  ;;  %602 = vmatprep.mubr.f32.mxu1 %v5407_v18  ;;  %v5710_v3 = vld [vmem:[%s5536_s26 + $0x61] sm:$0xff]  ;;  %v310_v7 = vld [vmem:[%s5536_s26 + $0x139] sm:$0xff]  ;;  %v312_v11 = vld [vmem:[%s5536_s26 + $0x151] sm:$0xff] }
  0x2c   : > { %506 = vmatprep.mubr.f32.mxu0 %v5407_v18  ;;  %802 = vmatpush1.msra.mxu1 %v280_v26  ;;  %v5731_v8 = vld [vmem:[%s5536_s26 + $0x79] sm:$0xff]  ;;  %v311_v9 = vld [vmem:[%s5536_s26 + $0x141] sm:$0xff]  ;;  %v5749_v12 = vld [vmem:[%s5536_s26 + $0x91] sm:$0xff] }
  0x2d   : > { %1203 = vmatprep.subr.mxu0 %v4733_v27  ;;  %803 = vmatprep.subr.mxu1 %v279_v28  ;;  %v5740_v10 = vld [vmem:[%s5536_s26 + $0x81] sm:$0xff]  ;;  %v313_v13 = vld [vmem:[%s5536_s26 + $0x159] sm:$0xff]  ;;  %v314_v15 = vld [vmem:[%s5536_s26 + $0x169] sm:$0xff] }
  0x2e   : > { %4674 = vmatmul.mubr.msk.f32.gmra.mxu1 %vm333_vm0, %v302_v29  ;;  %1204 = vmatpush1.msra.mxu0 %v4732_v30  ;;  %v5758_v14 = vld [vmem:[%s5536_s26 + $0x99] sm:$0xff]  ;;  %v5767_v16 = vld [vmem:[%s5536_s26 + $0xa9] sm:$0xff]  ;;  %v315_v17 = vld [vmem:[%s5536_s26 + $0x171] sm:$0xff] }
  0x2f   : > { %4658 = vmatmul.mubr.msk.f32.gmra.mxu0 %vm333_vm0, %v5584_v31  ;;  %608 = vmatprep.mubr.f32.mxu1 %v5407_v18  ;;  %v5776_v19 = vld [vmem:[%s5536_s26 + $0xb1] sm:$0xff]  ;;  %v236_v20 = vld [vmem:[%s5536_s26] sm:$0xff]  ;;  %v4813_v24 = vld [vmem:[%s7982_s1 + $0x1e8] sm:$0xff] }
  0x30   : > { %512 = vmatprep.mubr.f32.mxu0 %v5407_v18  ;;  %804 = vmatpush1.msra.mxu1 %v278_v32  ;;  %v1040_v21 = vld [vmem:[%s5536_s26 + $0x2] sm:$0xff]  ;;  %v4814_v22 = vld [vmem:[%s7982_s1 + $0x1f0] sm:$0xff]  ;;  %v4811_v30 = vld [vmem:[%s7982_s1 + $0x1d8] sm:$0xff] }
  0x31   : > { %1205 = vmatprep.subr.mxu0 %v4731_v33  ;;  %805 = vmatprep.subr.mxu1 %v277_v34  ;;  %v4894_v23 = vld [vmem:[%s7982_s1 + $0x270] sm:$0xff]  ;;  %v237_v25 = vld [vmem:[%s5536_s26 + $0x8] sm:$0xff]  ;;  %v4812_v28 = vld [vmem:[%s7982_s1 + $0x1e0] sm:$0xff] }
  0x32   : > { %4675 = vmatmul.mubr.msk.f32.gmra.mxu1 %vm333_vm0, %v303_v35  ;;  %1206 = vmatpush1.msra.mxu0 %v4730_v36  ;;  %v4893_v26 = vld [vmem:[%s7982_s1 + $0x268] sm:$0xff]  ;;  %v4892_v29 = vld [vmem:[%s7982_s1 + $0x260] sm:$0xff]  ;;  %v5816_v32 = vld [vmem:[%s5536_s26 + $0x18] sm:$0xff] }
  0x33   : > { %4659 = vmatmul.mubr.msk.f32.gmra.mxu0 %vm333_vm0, %v5605_v37  ;;  %614 = vmatprep.mubr.f32.mxu1 %v5407_v18  ;;  %v1041_v27 = vld [vmem:[%s5536_s26 + $0xa] sm:$0xff]  ;;  %v4891_v33 = vld [vmem:[%s7982_s1 + $0x258] sm:$0xff] }
  0x34   : > { %518 = vmatprep.mubr.f32.mxu0 %v5407_v18  ;;  %806 = vmatpush1.msra.mxu1 %v276_v38  ;;  %v1042_v34 = vld [vmem:[%s5536_s26 + $0x1a] sm:$0xff]  ;;  %v4810_v35 = vld [vmem:[%s7982_s1 + $0x1d0] sm:$0xff]  ;;  %v4809_v38 = vld [vmem:[%s7982_s1 + $0x1c8] sm:$0xff] }
  0x35   : > { %1207 = vmatprep.subr.mxu0 %v4729_v39  ;;  %807 = vmatprep.subr.mxu1 %v275_v40  ;;  %v4890_v36 = vld [vmem:[%s7982_s1 + $0x250] sm:$0xff]  ;;  %v5837_v39 = vld [vmem:[%s5536_s26 + $0x20] sm:$0xff]  ;;  %v4889_v40 = vld [vmem:[%s7982_s1 + $0x248] sm:$0xff] }
  0x36   : > { %4676 = vmatmul.mubr.msk.f32.gmra.mxu1 %vm333_vm0, %v304_v41  ;;  %1208 = vmatpush1.msra.mxu0 %v4728_v42  ;;  %v1043_v41 = vld [vmem:[%s5536_s26 + $0x22] sm:$0xff] }
  0x37   : > { %4660 = vmatmul.mubr.msk.f32.gmra.mxu0 %vm333_vm0, %v5626_v43  ;;  %620 = vmatprep.mubr.f32.mxu1 %v5407_v18  ;;  %v4808_v42 = vld [vmem:[%s7982_s1 + $0x1c0] sm:$0xff] }
  0x38   : > { %524 = vmatprep.mubr.f32.mxu0 %v5407_v18  ;;  %808 = vmatpush1.msra.mxu1 %v274_v44  ;;  %v4888_v44 = vld [vmem:[%s7982_s1 + $0x240] sm:$0xff] }
  0x39   : > { %1209 = vmatprep.subr.mxu0 %v4727_v45  ;;  %809 = vmatprep.subr.mxu1 %v273_v46  ;;  %v4807_v45 = vld [vmem:[%s7982_s1 + $0x1b8] sm:$0xff]  ;;  %v5858_v46 = vld [vmem:[%s5536_s26 + $0x30] sm:$0xff] }
  0x3a   : > { %4677 = vmatmul.mubr.msk.f32.gmra.mxu1 %vm333_vm0, %v305_v47  ;;  %1210 = vmatpush1.msra.mxu0 %v4726_v48  ;;  %v4887_v47 = vld [vmem:[%s7982_s1 + $0x238] sm:$0xff] }
  0x3b   : > { %4661 = vmatmul.mubr.msk.f32.gmra.mxu0 %vm333_vm0, %v5647_v49  ;;  %626 = vmatprep.mubr.f32.mxu1 %v5407_v18  ;;  %v1044_v48 = vld [vmem:[%s5536_s26 + $0x32] sm:$0xff] }
  0x3c   : > { %530 = vmatprep.mubr.f32.mxu0 %v5407_v18  ;;  %810 = vmatpush1.msra.mxu1 %v272_v50  ;;  %v4806_v50 = vld [vmem:[%s7982_s1 + $0x1b0] sm:$0xff] }
  0x3d   : > { %1211 = vmatprep.subr.mxu0 %v4725_v51  ;;  %811 = vmatprep.subr.mxu1 %v271_v52  ;;  %v4886_v51 = vld [vmem:[%s7982_s1 + $0x230] sm:$0xff]  ;;  %v4805_v52 = vld [vmem:[%s7982_s1 + $0x1a8] sm:$0xff] }
  0x3e   : > { %4678 = vmatmul.mubr.msk.f32.gmra.mxu1 %vm333_vm0, %v306_v53  ;;  %1212 = vmatpush1.msra.mxu0 %v4724_v54  ;;  %v5879_v53 = vld [vmem:[%s5536_s26 + $0x38] sm:$0xff]  ;;  %v4885_v54 = vld [vmem:[%s7982_s1 + $0x228] sm:$0xff] }
  0x3f   : > { %4662 = vmatmul.mubr.msk.f32.gmra.mxu0 %vm333_vm0, %v5668_v55  ;;  %632 = vmatprep.mubr.f32.mxu1 %v5407_v18 }
  0x40   : > { %536 = vmatprep.mubr.f32.mxu0 %v5407_v18  ;;  %812 = vmatpush1.msra.mxu1 %v270_v56  ;;  %v1045_v56 = vld [vmem:[%s5536_s26 + $0x3a] sm:$0xff] }
  0x41   : > { %1213 = vmatprep.subr.mxu0 %v4723_v57  ;;  %813 = vmatprep.subr.mxu1 %v269_v58  ;;  %v4804_v57 = vld [vmem:[%s7982_s1 + $0x1a0] sm:$0xff] }
  0x42   : > { %4679 = vmatmul.mubr.msk.f32.gmra.mxu1 %vm333_vm0, %v307_v59  ;;  %1214 = vmatpush1.msra.mxu0 %v4722_v60  ;;  %v4884_v58 = vld [vmem:[%s7982_s1 + $0x220] sm:$0xff]  ;;  %v4803_v59 = vld [vmem:[%s7982_s1 + $0x198] sm:$0xff]  ;;  %v5900_v60 = vld [vmem:[%s5536_s26 + $0x48] sm:$0xff] }
  0x43   : > { %4663 = vmatmul.mubr.msk.f32.gmra.mxu0 %vm333_vm0, %v5689_v61  ;;  %638 = vmatprep.mubr.f32.mxu1 %v5407_v18 }
  0x44   : > { %542 = vmatprep.mubr.f32.mxu0 %v5407_v18  ;;  %814 = vmatpush1.msra.mxu1 %v268_v62  ;;  %v4883_v62 = vld [vmem:[%s7982_s1 + $0x218] sm:$0xff] }
  0x45   : > { %1215 = vmatprep.subr.mxu0 %v4721_v63  ;;  %1668 = vmatprep.subr.mxu1 %v4815_v0  ;;  %v1046_v63 = vld [vmem:[%s5536_s26 + $0x4a] sm:$0xff] }
  0x46   : > { %4680 = vmatmul.mubr.msk.f32.gmra.mxu1 %vm333_vm0, %v308_v1  ;;  %1216 = vmatpush1.msra.mxu0 %v4720_v2  ;;  %v4802_v0 = vld [vmem:[%s7982_s1 + $0x190] sm:$0xff]  ;;  %v4801_v2 = vld [vmem:[%s7982_s1 + $0x188] sm:$0xff] }
  0x47   : > { %4664 = vmatmul.mubr.msk.f32.gmra.mxu0 %vm333_vm0, %v5710_v3  ;;  %644 = vmatprep.mubr.f32.mxu1 %v5407_v18  ;;  %v4882_v1 = vld [vmem:[%s7982_s1 + $0x210] sm:$0xff] }
  0x48   : > { %548 = vmatprep.mubr.f32.mxu0 %v5407_v18  ;;  %2134 = vmatprep.subr.mxu0 %v4895_v4  ;;  %v5921_v4 = vld [vmem:[%s5536_s26 + $0x50] sm:$0xff] }
  0x4a   : > { %4681 = vmatmul.mubr.msk.f32.gmra.mxu1 %vm333_vm0, %v309_v5  ;;  %v4881_v5 = vld [vmem:[%s7982_s1 + $0x208] sm:$0xff] }
  0x4b   : > { %4665 = vmatmul.mubr.msk.f32.gmra.mxu0 %vm333_vm0, %v5722_v6  ;;  %650 = vmatprep.mubr.f32.mxu1 %v5407_v18 }
  0x4c   : > { %554 = vmatprep.mubr.f32.mxu0 %v5407_v18 }
  0x4e   : > { %4682 = vmatmul.mubr.msk.f32.gmra.mxu1 %vm333_vm0, %v310_v7  ;;  %v1047_v7 = vld [vmem:[%s5536_s26 + $0x52] sm:$0xff] }
  0x4f   : > { %4666 = vmatmul.mubr.msk.f32.gmra.mxu0 %vm333_vm0, %v5731_v8  ;;  %656 = vmatprep.mubr.f32.mxu1 %v5407_v18 }
  0x50   : > { %560 = vmatprep.mubr.f32.mxu0 %v5407_v18 }
  0x52   : > { %4683 = vmatmul.mubr.msk.f32.gmra.mxu1 %vm333_vm0, %v311_v9  ;;  %v4800_v9 = vld [vmem:[%s7982_s1 + $0x180] sm:$0xff] }
  0x53   : > { %4667 = vmatmul.mubr.msk.f32.gmra.mxu0 %vm333_vm0, %v5740_v10  ;;  %662 = vmatprep.mubr.f32.mxu1 %v5407_v18 }
  0x54   : > { %566 = vmatprep.mubr.f32.mxu0 %v5407_v18 }
  0x56   : > { %4684 = vmatmul.mubr.msk.f32.gmra.mxu1 %vm333_vm0, %v312_v11  ;;  %v4880_v11 = vld [vmem:[%s7982_s1 + $0x200] sm:$0xff] }
  0x57   : > { %4668 = vmatmul.mubr.msk.f32.gmra.mxu0 %vm333_vm0, %v5749_v12  ;;  %668 = vmatprep.mubr.f32.mxu1 %v5407_v18 }
  0x58   : > { %572 = vmatprep.mubr.f32.mxu0 %v5407_v18 }
  0x5a   : > { %4685 = vmatmul.mubr.msk.f32.gmra.mxu1 %vm333_vm0, %v313_v13  ;;  %v4975_v13 = vld [vmem:[%s7982_s1 + $0x2f8] sm:$0xff] }
  0x5b   : > { %4669 = vmatmul.mubr.msk.f32.gmra.mxu0 %vm333_vm0, %v5758_v14  ;;  %674 = vmatprep.mubr.f32.mxu1 %v5407_v18 }
  0x5c   : > { %578 = vmatprep.mubr.f32.mxu0 %v5407_v18 }
  0x5e   : > { %4686 = vmatmul.mubr.msk.f32.gmra.mxu1 %vm333_vm0, %v314_v15  ;;  %v5942_v15 = vld [vmem:[%s5536_s26 + $0x60] sm:$0xff] }
  0x5f   : > { %4670 = vmatmul.mubr.msk.f32.gmra.mxu0 %vm333_vm0, %v5767_v16  ;;  %680 = vmatprep.mubr.f32.mxu1 %v5407_v18 }
  0x60   : > { %584 = vmatprep.mubr.f32.mxu0 %v5407_v18 }
  0x62   : > { %4687 = vmatmul.mubr.msk.f32.gmra.mxu1 %vm333_vm0, %v315_v17  ;;  %v5055_v17 = vld [vmem:[%s7982_s1 + $0x378] sm:$0xff] }
  0x63   : > { %4671 = vmatmul.mubr.msk.f32.gmra.mxu0 %vm333_vm0, %v5776_v19  ;;  %847 = vmatprep.mubr.f32.mxu1 %v5407_v18 }
  0x64   : > { %1249 = vmatprep.mubr.f32.mxu0 %v5407_v18 }
  0x66   : > { %4688 = vmatmul.mubr.msk.f32.vlgmr.msra.gmra.mxu1 %vm333_vm0, %v236_v20  ;;  %v1048_v20 = vld [vmem:[%s5536_s26 + $0x62] sm:$0xff] }
  0x67   : > { %4736 = vmatmul.mubr.msk.f32.vlgmr.msra.gmra.mxu0 %vm333_vm0, %v1040_v21  ;;  %1669 = vmatpush1.msra.mxu1 %v4814_v22  ;;  %v5954_v21 = vld [vmem:[%s5536_s26 + $0x68] sm:$0xff] }
  0x68   : > { %853 = vmatprep.mubr.f32.mxu1 %v5407_v18  ;;  %2135 = vmatpush1.msra.mxu0 %v4894_v23  ;;  %v1049_v22 = vld [vmem:[%s5536_s26 + $0x6a] sm:$0xff]  ;;  %v5963_v23 = vld [vmem:[%s5536_s26 + $0x78] sm:$0xff] }
  0x69   : > { %1255 = vmatprep.mubr.f32.mxu0 %v5407_v18  ;;  %1670 = vmatprep.subr.mxu1 %v4813_v24  ;;  %v1050_v24 = vld [vmem:[%s5536_s26 + $0x7a] sm:$0xff] }
  0x6a   : > { %4689 = vmatmul.mubr.msk.f32.gmra.mxu1 %vm333_vm0, %v237_v25  ;;  %2136 = vmatprep.subr.mxu0 %v4893_v26  ;;  %v5972_v25 = vld [vmem:[%s5536_s26 + $0x80] sm:$0xff] }
  0x6b   : > { %4737 = vmatmul.mubr.msk.f32.gmra.mxu0 %vm333_vm0, %v1041_v27  ;;  %859 = vmatprep.mubr.f32.mxu1 %v5407_v18  ;;  %v1051_v26 = vld [vmem:[%s5536_s26 + $0x82] sm:$0xff]  ;;  %v5981_v27 = vld [vmem:[%s5536_s26 + $0x90] sm:$0xff] }
  0x6c   : > { %1261 = vmatprep.mubr.f32.mxu0 %v5407_v18  ;;  %1671 = vmatpush1.msra.mxu1 %v4812_v28  ;;  %v1052_v28 = vld [vmem:[%s5536_s26 + $0x92] sm:$0xff] }
  0x6d   : > { %2137 = vmatpush1.msra.mxu0 %v4892_v29  ;;  %1672 = vmatprep.subr.mxu1 %v4811_v30  ;;  %v5990_v29 = vld [vmem:[%s5536_s26 + $0x98] sm:$0xff] }
  0x6e   : > { %4690 = vmatmul.mubr.msk.f32.gmra.mxu1 %vm333_vm0, %v5816_v32  ;;  %2138 = vmatprep.subr.mxu0 %v4891_v33  ;;  %v1053_v30 = vld [vmem:[%s5536_s26 + $0x9a] sm:$0xff]  ;;  %v5999_v33 = vld [vmem:[%s5536_s26 + $0xa8] sm:$0xff] }
  0x6f   : > { %4738 = vmatmul.mubr.msk.f32.gmra.mxu0 %vm333_vm0, %v1042_v34  ;;  %865 = vmatprep.mubr.f32.mxu1 %v5407_v18  ;;  %v1054_v34 = vld [vmem:[%s5536_s26 + $0xaa] sm:$0xff] }
  0x70   : > { %1267 = vmatprep.mubr.f32.mxu0 %v5407_v18  ;;  %1673 = vmatpush1.msra.mxu1 %v4810_v35  ;;  %v6008_v35 = vld [vmem:[%s5536_s26 + $0xb0] sm:$0xff] }
  0x71   : > { %2139 = vmatpush1.msra.mxu0 %v4890_v36  ;;  %1674 = vmatprep.subr.mxu1 %v4809_v38  ;;  %v1055_v36 = vld [vmem:[%s5536_s26 + $0xb2] sm:$0xff]  ;;  %v6017_v38 = vld [vmem:[%s5536_s26 + $0xc0] sm:$0xff] }
  0x72   : > { %4691 = vmatmul.mubr.msk.f32.gmra.mxu1 %vm333_vm0, %v5837_v39  ;;  %2140 = vmatprep.subr.mxu0 %v4889_v40  ;;  %v1056_v40 = vld [vmem:[%s5536_s26 + $0xc2] sm:$0xff] }
  0x73   : > { %4739 = vmatmul.mubr.msk.f32.gmra.mxu0 %vm333_vm0, %v1043_v41  ;;  %871 = vmatprep.mubr.f32.mxu1 %v5407_v18  ;;  %v6026_v41 = vld [vmem:[%s5536_s26 + $0xc8] sm:$0xff] }
  0x74   : > { %1273 = vmatprep.mubr.f32.mxu0 %v5407_v18  ;;  %1675 = vmatpush1.msra.mxu1 %v4808_v42  ;;  %v1057_v42 = vld [vmem:[%s5536_s26 + $0xca] sm:$0xff] }
  0x75   : > { %2141 = vmatpush1.msra.mxu0 %v4888_v44  ;;  %1676 = vmatprep.subr.mxu1 %v4807_v45  ;;  %v6035_v44 = vld [vmem:[%s5536_s26 + $0xd8] sm:$0xff] }
  0x76   : > { %4692 = vmatmul.mubr.msk.f32.gmra.mxu1 %vm333_vm0, %v5858_v46  ;;  %2142 = vmatprep.subr.mxu0 %v4887_v47  ;;  %v1058_v45 = vld [vmem:[%s5536_s26 + $0xda] sm:$0xff] }
  0x77   : > { %4740 = vmatmul.mubr.msk.f32.gmra.mxu0 %vm333_vm0, %v1044_v48  ;;  %877 = vmatprep.mubr.f32.mxu1 %v5407_v18  ;;  %v6044_v47 = vld [vmem:[%s5536_s26 + $0xe0] sm:$0xff] }
  0x78   : > { %1279 = vmatprep.mubr.f32.mxu0 %v5407_v18  ;;  %1677 = vmatpush1.msra.mxu1 %v4806_v50  ;;  %v1059_v48 = vld [vmem:[%s5536_s26 + $0xe2] sm:$0xff]  ;;  %v6053_v50 = vld [vmem:[%s5536_s26 + $0xf0] sm:$0xff] }
  0x79   : > { %2143 = vmatpush1.msra.mxu0 %v4886_v51  ;;  %1678 = vmatprep.subr.mxu1 %v4805_v52  ;;  %v1060_v51 = vld [vmem:[%s5536_s26 + $0xf2] sm:$0xff] }
  0x7a   : > { %4693 = vmatmul.mubr.msk.f32.gmra.mxu1 %vm333_vm0, %v5879_v53  ;;  %2144 = vmatprep.subr.mxu0 %v4885_v54  ;;  %v6062_v52 = vld [vmem:[%s5536_s26 + $0xf8] sm:$0xff] }
  0x7b   : > { %4741 = vmatmul.mubr.msk.f32.gmra.mxu0 %vm333_vm0, %v1045_v56  ;;  %883 = vmatprep.mubr.f32.mxu1 %v5407_v18  ;;  %v1061_v54 = vld [vmem:[%s5536_s26 + $0xfa] sm:$0xff]  ;;  %v6071_v56 = vld [vmem:[%s5536_s26 + $0x108] sm:$0xff] }
  0x7c   : > { %1285 = vmatprep.mubr.f32.mxu0 %v5407_v18  ;;  %1679 = vmatpush1.msra.mxu1 %v4804_v57  ;;  %v1062_v57 = vld [vmem:[%s5536_s26 + $0x10a] sm:$0xff] }
  0x7d   : > { %2145 = vmatpush1.msra.mxu0 %v4884_v58  ;;  %1680 = vmatprep.subr.mxu1 %v4803_v59  ;;  %v6080_v58 = vld [vmem:[%s5536_s26 + $0x110] sm:$0xff] }
  0x7e   : > { %4694 = vmatmul.mubr.msk.f32.gmra.mxu1 %vm333_vm0, %v5900_v60  ;;  %2146 = vmatprep.subr.mxu0 %v4883_v62  ;;  %v1063_v59 = vld [vmem:[%s5536_s26 + $0x112] sm:$0xff]  ;;  %v6089_v62 = vld [vmem:[%s5536_s26 + $0x120] sm:$0xff] }
  0x7f   : > { %4742 = vmatmul.mubr.msk.f32.gmra.mxu0 %vm333_vm0, %v1046_v63  ;;  %889 = vmatprep.mubr.f32.mxu1 %v5407_v18  ;;  %v1064_v63 = vld [vmem:[%s5536_s26 + $0x122] sm:$0xff] }
  0x80   : > { %1291 = vmatprep.mubr.f32.mxu0 %v5407_v18  ;;  %1681 = vmatpush1.msra.mxu1 %v4802_v0  ;;  %v6098_v0 = vld [vmem:[%s5536_s26 + $0x128] sm:$0xff] }
  0x81   : > { %2147 = vmatpush1.msra.mxu0 %v4882_v1  ;;  %1682 = vmatprep.subr.mxu1 %v4801_v2  ;;  %v1065_v1 = vld [vmem:[%s5536_s26 + $0x12a] sm:$0xff]  ;;  %v6107_v2 = vld [vmem:[%s5536_s26 + $0x138] sm:$0xff] }
  0x82   : > { %4695 = vmatmul.mubr.msk.f32.gmra.mxu1 %vm333_vm0, %v5921_v4  ;;  %2148 = vmatprep.subr.mxu0 %v4881_v5  ;;  %v1066_v5 = vld [vmem:[%s5536_s26 + $0x13a] sm:$0xff] }
  0x83   : > { %4743 = vmatmul.mubr.msk.f32.gmra.mxu0 %vm333_vm0, %v1047_v7  ;;  %895 = vmatprep.mubr.f32.mxu1 %v5407_v18  ;;  %v6116_v7 = vld [vmem:[%s5536_s26 + $0x140] sm:$0xff] }
  0x84   : > { %1297 = vmatprep.mubr.f32.mxu0 %v5407_v18  ;;  %1683 = vmatpush1.msra.mxu1 %v4800_v9  ;;  %v1067_v9 = vld [vmem:[%s5536_s26 + $0x142] sm:$0xff] }
  0x85   : > { %2149 = vmatpush1.msra.mxu0 %v4880_v11  ;;  %2600 = vmatprep.subr.mxu1 %v4975_v13  ;;  %v6125_v11 = vld [vmem:[%s5536_s26 + $0x150] sm:$0xff] }
  0x86   : > { %4696 = vmatmul.mubr.msk.f32.gmra.mxu1 %vm333_vm0, %v5942_v15  ;;  %3067 = vmatprep.subr.mxu0 %v5055_v17  ;;  %v1068_v13 = vld [vmem:[%s5536_s26 + $0x152] sm:$0xff] }
  0x87   : > { %4744 = vmatmul.mubr.msk.f32.gmra.mxu0 %vm333_vm0, %v1048_v20  ;;  %901 = vmatprep.mubr.f32.mxu1 %v5407_v18  ;;  %v6134_v17 = vld [vmem:[%s5536_s26 + $0x158] sm:$0xff] }
  0x88   : > { %1303 = vmatprep.mubr.f32.mxu0 %v5407_v18  ;;  %v1069_v20 = vld [vmem:[%s5536_s26 + $0x15a] sm:$0xff] }
  0x8a   : > { %4697 = vmatmul.mubr.msk.f32.gmra.mxu1 %vm333_vm0, %v5954_v21 }
  0x8b   : > { %4745 = vmatmul.mubr.msk.f32.gmra.mxu0 %vm333_vm0, %v1049_v22  ;;  %907 = vmatprep.mubr.f32.mxu1 %v5407_v18  ;;  %v6143_v22 = vld [vmem:[%s5536_s26 + $0x168] sm:$0xff] }
  0x8c   : > { %1309 = vmatprep.mubr.f32.mxu0 %v5407_v18 }
  0x8e   : > { %4698 = vmatmul.mubr.msk.f32.gmra.mxu1 %vm333_vm0, %v5963_v23 }
  0x8f   : > { %4746 = vmatmul.mubr.msk.f32.gmra.mxu0 %vm333_vm0, %v1050_v24  ;;  %913 = vmatprep.mubr.f32.mxu1 %v5407_v18  ;;  %v1070_v24 = vld [vmem:[%s5536_s26 + $0x16a] sm:$0xff] }
  0x90   : > { %1315 = vmatprep.mubr.f32.mxu0 %v5407_v18 }
  0x92   : > { %4699 = vmatmul.mubr.msk.f32.gmra.mxu1 %vm333_vm0, %v5972_v25 }
  0x93   : > { %4747 = vmatmul.mubr.msk.f32.gmra.mxu0 %vm333_vm0, %v1051_v26  ;;  %919 = vmatprep.mubr.f32.mxu1 %v5407_v18  ;;  %v6152_v26 = vld [vmem:[%s5536_s26 + $0x170] sm:$0xff] }
  0x94   : > { %1321 = vmatprep.mubr.f32.mxu0 %v5407_v18 }
  0x96   : > { %4700 = vmatmul.mubr.msk.f32.gmra.mxu1 %vm333_vm0, %v5981_v27 }
  0x97   : > { %4748 = vmatmul.mubr.msk.f32.gmra.mxu0 %vm333_vm0, %v1052_v28  ;;  %925 = vmatprep.mubr.f32.mxu1 %v5407_v18  ;;  %v1071_v28 = vld [vmem:[%s5536_s26 + $0x172] sm:$0xff] }
  0x98   : > { %1327 = vmatprep.mubr.f32.mxu0 %v5407_v18 }
  0x9a   : > { %4701 = vmatmul.mubr.msk.f32.gmra.mxu1 %vm333_vm0, %v5990_v29 }
  0x9b   : > { %4749 = vmatmul.mubr.msk.f32.gmra.mxu0 %vm333_vm0, %v1053_v30  ;;  %931 = vmatprep.mubr.f32.mxu1 %v5407_v18  ;;  %v4974_v30 = vld [vmem:[%s7982_s1 + $0x2f0] sm:$0xff] }
  0x9c   : > { %1333 = vmatprep.mubr.f32.mxu0 %v5407_v18 }
  0x9e   : > { %4702 = vmatmul.mubr.msk.f32.gmra.mxu1 %vm333_vm0, %v5999_v33 }
  0x9f   : > { %4750 = vmatmul.mubr.msk.f32.gmra.mxu0 %vm333_vm0, %v1054_v34  ;;  %937 = vmatprep.mubr.f32.mxu1 %v5407_v18  ;;  %v5054_v34 = vld [vmem:[%s7982_s1 + $0x370] sm:$0xff] }
  0xa0   : > { %1339 = vmatprep.mubr.f32.mxu0 %v5407_v18 }
  0xa2   : > { %4703 = vmatmul.mubr.msk.f32.gmra.mxu1 %vm333_vm0, %v6008_v35 }
  0xa3   : > { %4751 = vmatmul.mubr.msk.f32.gmra.mxu0 %vm333_vm0, %v1055_v36  ;;  %943 = vmatprep.mubr.f32.mxu1 %v5407_v18 }
  0xa4   : > { %1345 = vmatprep.mubr.f32.mxu0 %v5407_v18 }
  0xa6   : > { %4704 = vmatmul.mubr.msk.f32.gmra.mxu1 %vm333_vm0, %v6017_v38 }
  0xa7   : > { %4752 = vmatmul.mubr.msk.f32.gmra.mxu0 %vm333_vm0, %v1056_v40  ;;  %949 = vmatprep.mubr.f32.mxu1 %v5407_v18  ;;  %v4973_v40 = vld [vmem:[%s7982_s1 + $0x2e8] sm:$0xff] }
  0xa8   : > { %1351 = vmatprep.mubr.f32.mxu0 %v5407_v18 }
  0xaa   : > { %4705 = vmatmul.mubr.msk.f32.gmra.mxu1 %vm333_vm0, %v6026_v41 }
  0xab   : > { %4753 = vmatmul.mubr.msk.f32.gmra.mxu0 %vm333_vm0, %v1057_v42  ;;  %955 = vmatprep.mubr.f32.mxu1 %v5407_v18 }
  0xac   : > { %1357 = vmatprep.mubr.f32.mxu0 %v5407_v18 }
  0xae   : > { %4706 = vmatmul.mubr.msk.f32.gmra.mxu1 %vm333_vm0, %v6035_v44 }
  0xaf   : > { %4754 = vmatmul.mubr.msk.f32.gmra.mxu0 %vm333_vm0, %v1058_v45  ;;  %961 = vmatprep.mubr.f32.mxu1 %v5407_v18  ;;  %v5053_v45 = vld [vmem:[%s7982_s1 + $0x368] sm:$0xff] }
  0xb0   : > { %1363 = vmatprep.mubr.f32.mxu0 %v5407_v18 }
  0xb2   : > { %4707 = vmatmul.mubr.msk.f32.gmra.mxu1 %vm333_vm0, %v6044_v47 }
  0xb3   : > { %4755 = vmatmul.mubr.msk.f32.gmra.mxu0 %vm333_vm0, %v1059_v48  ;;  %967 = vmatprep.mubr.f32.mxu1 %v5407_v18 }
  0xb4   : > { %1369 = vmatprep.mubr.f32.mxu0 %v5407_v18 }
  0xb6   : > { %4708 = vmatmul.mubr.msk.f32.gmra.mxu1 %vm333_vm0, %v6053_v50 }
  0xb7   : > { %4756 = vmatmul.mubr.msk.f32.gmra.mxu0 %vm333_vm0, %v1060_v51  ;;  %973 = vmatprep.mubr.f32.mxu1 %v5407_v18  ;;  %v4972_v51 = vld [vmem:[%s7982_s1 + $0x2e0] sm:$0xff] }
  0xb8   : > { %1375 = vmatprep.mubr.f32.mxu0 %v5407_v18 }
  0xba   : > { %4709 = vmatmul.mubr.msk.f32.gmra.mxu1 %vm333_vm0, %v6062_v52 }
  0xbb   : > { %4757 = vmatmul.mubr.msk.f32.gmra.mxu0 %vm333_vm0, %v1061_v54  ;;  %979 = vmatprep.mubr.f32.mxu1 %v5407_v18  ;;  %v5052_v54 = vld [vmem:[%s7982_s1 + $0x360] sm:$0xff] }
  0xbc   : > { %1381 = vmatprep.mubr.f32.mxu0 %v5407_v18 }
  0xbe   : > { %4710 = vmatmul.mubr.msk.f32.gmra.mxu1 %vm333_vm0, %v6071_v56 }
  0xbf   : > { %4758 = vmatmul.mubr.msk.f32.gmra.mxu0 %vm333_vm0, %v1062_v57  ;;  %985 = vmatprep.mubr.f32.mxu1 %v5407_v18  ;;  %v4971_v57 = vld [vmem:[%s7982_s1 + $0x2d8] sm:$0xff] }
  0xc0   : > { %1387 = vmatprep.mubr.f32.mxu0 %v5407_v18 }
  0xc2   : > { %4711 = vmatmul.mubr.msk.f32.gmra.mxu1 %vm333_vm0, %v6080_v58 }
  0xc3   : > { %4759 = vmatmul.mubr.msk.f32.gmra.mxu0 %vm333_vm0, %v1063_v59  ;;  %991 = vmatprep.mubr.f32.mxu1 %v5407_v18 }
  0xc4   : > { %1393 = vmatprep.mubr.f32.mxu0 %v5407_v18 }
  0xc6   : > { %4712 = vmatmul.mubr.msk.f32.gmra.mxu1 %vm333_vm0, %v6089_v62 }
  0xc7   : > { %4760 = vmatmul.mubr.msk.f32.gmra.mxu0 %vm333_vm0, %v1064_v63  ;;  %997 = vmatprep.mubr.f32.mxu1 %v5407_v18 }
  0xc8   : > { %1399 = vmatprep.mubr.f32.mxu0 %v5407_v18 }
  0xca   : > { %4713 = vmatmul.mubr.msk.f32.gmra.mxu1 %vm333_vm0, %v6098_v0 }
  0xcb   : > { %4761 = vmatmul.mubr.msk.f32.gmra.mxu0 %vm333_vm0, %v1065_v1  ;;  %1003 = vmatprep.mubr.f32.mxu1 %v5407_v18 }
  0xcc   : > { %1405 = vmatprep.mubr.f32.mxu0 %v5407_v18 }
  0xce   : > { %4714 = vmatmul.mubr.msk.f32.gmra.mxu1 %vm333_vm0, %v6107_v2 }
  0xcf   : > { %4762 = vmatmul.mubr.msk.f32.gmra.mxu0 %vm333_vm0, %v1066_v5  ;;  %1009 = vmatprep.mubr.f32.mxu1 %v5407_v18  ;;  %v4970_v5 = vld [vmem:[%s7982_s1 + $0x2d0] sm:$0xff] }
  0xd0   : > { %1411 = vmatprep.mubr.f32.mxu0 %v5407_v18 }
  0xd2   : > { %4715 = vmatmul.mubr.msk.f32.gmra.mxu1 %vm333_vm0, %v6116_v7 }
  0xd3   : > { %4763 = vmatmul.mubr.msk.f32.gmra.mxu0 %vm333_vm0, %v1067_v9  ;;  %1015 = vmatprep.mubr.f32.mxu1 %v5407_v18  ;;  %v5050_v9 = vld [vmem:[%s7982_s1 + $0x350] sm:$0xff] }
  0xd4   : > { %1417 = vmatprep.mubr.f32.mxu0 %v5407_v18 }
  0xd6   : > { %4716 = vmatmul.mubr.msk.f32.gmra.mxu1 %vm333_vm0, %v6125_v11 }
  0xd7   : > { %4764 = vmatmul.mubr.msk.f32.gmra.mxu0 %vm333_vm0, %v1068_v13  ;;  %1021 = vmatprep.mubr.f32.mxu1 %v5407_v18  ;;  %v4969_v13 = vld [vmem:[%s7982_s1 + $0x2c8] sm:$0xff] }
  0xd8   : > { %1423 = vmatprep.mubr.f32.mxu0 %v5407_v18 }
  0xda   : > { %4717 = vmatmul.mubr.msk.f32.gmra.mxu1 %vm333_vm0, %v6134_v17 }
  0xdb   : > { %4765 = vmatmul.mubr.msk.f32.gmra.mxu0 %vm333_vm0, %v1069_v20  ;;  %1027 = vmatprep.mubr.f32.mxu1 %v5407_v18 }
  0xdc   : > { %1429 = vmatprep.mubr.f32.mxu0 %v5407_v18 }
  0xde   : > { %4718 = vmatmul.mubr.msk.f32.gmra.mxu1 %vm333_vm0, %v6143_v22 }
  0xdf   : > { %4766 = vmatmul.mubr.msk.f32.gmra.mxu0 %vm333_vm0, %v1070_v24  ;;  %1033 = vmatprep.mubr.f32.mxu1 %v5407_v18 }
  0xe0   : > { %1435 = vmatprep.mubr.f32.mxu0 %v5407_v18 }
  0xe2   : > { %4719 = vmatmul.mubr.msk.f32.gmra.mxu1 %vm333_vm0, %v6152_v26 }
  0xe3   : > { %4767 = vmatmul.mubr.msk.f32.gmra.mxu0 %vm333_vm0, %v1071_v28  ;;  %1716 = vmatprep.mubr.f32.mxu1 %v5407_v18 }
  0xe4   : > { %2182 = vmatprep.mubr.f32.mxu0 %v5407_v18 }
  0xe6   : > { %v6167_v36 = vpop.f32.mrf.mxu1  ;;  %4816 = vmatmul.mubr.msk.f32.vlgmr.msra.gmra.mxu1 %vm333_vm0, %v5816_v32 }
  0xe7   : > { %v6174_v42 = vpop.f32.mrf.mxu0  ;;  %4896 = vmatmul.mubr.msk.f32.vlgmr.msra.gmra.mxu0 %vm333_vm0, %v5584_v31  ;;  %2601 = vmatpush1.msra.mxu1 %v4974_v30  ;;  %v4968_v30 = vld [vmem:[%s7982_s1 + $0x2c0] sm:$0xff] }
  0xe8   : > { %v6181_v48 = vpop.f32.mrf.mxu1  ;;  %1722 = vmatprep.mubr.f32.mxu1 %v5407_v18  ;;  %3068 = vmatpush1.msra.mxu0 %v5054_v34  ;;  %v5048_v34 = vld [vmem:[%s7982_s1 + $0x340] sm:$0xff] }
  0xe9   : > { %v6184_v32 = vpop.f32.mrf.mxu0  ;;  %2188 = vmatprep.mubr.f32.mxu0 %v5407_v18  ;;  %2602 = vmatprep.subr.mxu1 %v4973_v40  ;;  %v4967_v40 = vld [vmem:[%s7982_s1 + $0x2b8] sm:$0xff] }
  0xea   : > { %v6190_v31 = vpop.f32.mrf.mxu1  ;;  %4817 = vmatmul.mubr.msk.f32.gmra.mxu1 %vm333_vm0, %v5837_v39  ;;  %3069 = vmatprep.subr.mxu0 %v5053_v45  ;;  %v5051_v39 = vld [vmem:[%s7982_s1 + $0x358] sm:$0xff] }
  0xeb   : > { %v6200_v59 = vpop.f32.mrf.mxu0  ;;  %4897 = vmatmul.mubr.msk.f32.gmra.mxu0 %vm333_vm0, %v5605_v37  ;;  %1728 = vmatprep.mubr.f32.mxu1 %v5407_v18 }
  0xec   : > { %v6208_v63 = vpop.f32.mrf.mxu1  ;;  %2194 = vmatprep.mubr.f32.mxu0 %v5407_v18  ;;  %2603 = vmatpush1.msra.mxu1 %v4972_v51 }
  0xed   : > { %v6211_v1 = vpop.f32.mrf.mxu0  ;;  %3070 = vmatpush1.msra.mxu0 %v5052_v54  ;;  %2604 = vmatprep.subr.mxu1 %v4971_v57  ;;  %v4966_v57 = vld [vmem:[%s7982_s1 + $0x2b0] sm:$0xff] }
  0xee   : > { %v6216_v37 = vpop.f32.mrf.mxu1  ;;  %4818 = vmatmul.mubr.msk.f32.gmra.mxu1 %vm333_vm0, %v5858_v46  ;;  %3071 = vmatprep.subr.mxu0 %v5051_v39  ;;  %v5049_v46 = vld [vmem:[%s7982_s1 + $0x348] sm:$0xff]  ;;  %v5046_v39 = vld [vmem:[%s7982_s1 + $0x330] sm:$0xff] }
  0xef   : > { %v6226_v20 = vpop.f32.mrf.mxu0  ;;  %4898 = vmatmul.mubr.msk.f32.gmra.mxu0 %vm333_vm0, %v5626_v43  ;;  %1734 = vmatprep.mubr.f32.mxu1 %v5407_v18 }
  0xf0   : > { %v6234_v24 = vpop.f32.mrf.mxu1  ;;  %2200 = vmatprep.mubr.f32.mxu0 %v5407_v18  ;;  %2605 = vmatpush1.msra.mxu1 %v4970_v5  ;;  %v4965_v5 = vld [vmem:[%s7982_s1 + $0x2a8] sm:$0xff] }
  0xf1   : > { %v6237_v28 = vpop.f32.mrf.mxu0  ;;  %3072 = vmatpush1.msra.mxu0 %v5050_v9  ;;  %2606 = vmatprep.subr.mxu1 %v4969_v13 }
  0xf2   : > { %v6242_v43 = vpop.f32.mrf.mxu1  ;;  %4819 = vmatmul.mubr.msk.f32.gmra.mxu1 %vm333_vm0, %v5879_v53  ;;  %3073 = vmatprep.subr.mxu0 %v5049_v46  ;;  %v5047_v53 = vld [vmem:[%s7982_s1 + $0x338] sm:$0xff] }
  0xf3   : > { %v6252_v45 = vpop.f32.mrf.mxu0  ;;  %4899 = vmatmul.mubr.msk.f32.gmra.mxu0 %vm333_vm0, %v5647_v49  ;;  %1740 = vmatprep.mubr.f32.mxu1 %v5407_v18 }
  0xf4   : > { %v6260_v51 = vpop.f32.mrf.mxu1  ;;  %2206 = vmatprep.mubr.f32.mxu0 %v5407_v18  ;;  %2607 = vmatpush1.msra.mxu1 %v4968_v30  ;;  %v4964_v30 = vld [vmem:[%s7982_s1 + $0x2a0] sm:$0xff] }
  0xf5   : > { %7995 = vst [vmem:[#allocation5_spill] sm:$0xff] %v6260_v51  ;;  %v6263_v54 = vpop.f32.mrf.mxu0  ;;  %3074 = vmatpush1.msra.mxu0 %v5048_v34  ;;  %2608 = vmatprep.subr.mxu1 %v4967_v40  ;;  %v5044_v34 = vld [vmem:[%s7982_s1 + $0x320] sm:$0xff]  ;;  %v4963_v40 = vld [vmem:[%s7982_s1 + $0x298] sm:$0xff] }
  0xf6   : > { %v6268_v49 = vpop.f32.mrf.mxu1  ;;  %4820 = vmatmul.mubr.msk.f32.gmra.mxu1 %vm333_vm0, %v5900_v60  ;;  %3075 = vmatprep.subr.mxu0 %v5047_v53  ;;  %v5045_v60 = vld [vmem:[%s7982_s1 + $0x328] sm:$0xff] }
  0xf7   : > { %7996 = vst [vmem:[#allocation6_spill] sm:$0xff] %v6268_v49  ;;  %v6278_v9 = vpop.f32.mrf.mxu0  ;;  %4900 = vmatmul.mubr.msk.f32.gmra.mxu0 %vm333_vm0, %v5668_v55  ;;  %1746 = vmatprep.mubr.f32.mxu1 %v5407_v18 }
  0xf8   : > { %v6286_v13 = vpop.f32.mrf.mxu1  ;;  %2212 = vmatprep.mubr.f32.mxu0 %v5407_v18  ;;  %2609 = vmatpush1.msra.mxu1 %v4966_v57 }
  0xf9   : > { %7997 = vst [vmem:[#allocation7_spill] sm:$0xff] %v6286_v13  ;;  %v6289_v46 = vpop.f32.mrf.mxu0  ;;  %3076 = vmatpush1.msra.mxu0 %v5046_v39  ;;  %2610 = vmatprep.subr.mxu1 %v4965_v5  ;;  %v4962_v5 = vld [vmem:[%s7982_s1 + $0x290] sm:$0xff] }
  0xfa   : > { %v6294_v55 = vpop.f32.mrf.mxu1  ;;  %4821 = vmatmul.mubr.msk.f32.gmra.mxu1 %vm333_vm0, %v5921_v4  ;;  %3077 = vmatprep.subr.mxu0 %v5045_v60  ;;  %v5043_v4 = vld [vmem:[%s7982_s1 + $0x318] sm:$0xff]  ;;  %v5042_v60 = vld [vmem:[%s7982_s1 + $0x310] sm:$0xff] }
  0xfb   : > { %7998 = vst [vmem:[#allocation8_spill] sm:$0xff] %v6294_v55  ;;  %v6304_v53 = vpop.f32.mrf.mxu0  ;;  %4901 = vmatmul.mubr.msk.f32.gmra.mxu0 %vm333_vm0, %v5689_v61  ;;  %1752 = vmatprep.mubr.f32.mxu1 %v5407_v18 }
  0xfc   : > { %v6312_v57 = vpop.f32.mrf.mxu1  ;;  %2218 = vmatprep.mubr.f32.mxu0 %v5407_v18  ;;  %2611 = vmatpush1.msra.mxu1 %v4964_v30  ;;  %v4961_v30 = vld [vmem:[%s7982_s1 + $0x288] sm:$0xff] }
  0xfd   : > { %7999 = vst [vmem:[#allocation9_spill] sm:$0xff] %v6312_v57  ;;  %v6315_v39 = vpop.f32.mrf.mxu0  ;;  %3078 = vmatpush1.msra.mxu0 %v5044_v34  ;;  %2612 = vmatprep.subr.mxu1 %v4963_v40 }
  0xfe   : > { %v6320_v61 = vpop.f32.mrf.mxu1  ;;  %4822 = vmatmul.mubr.msk.f32.gmra.mxu1 %vm333_vm0, %v5942_v15  ;;  %3079 = vmatprep.subr.mxu0 %v5043_v4  ;;  %v5041_v15 = vld [vmem:[%s7982_s1 + $0x308] sm:$0xff] }
  0xff   : > { %8000 = vst [vmem:[#allocation10_spill] sm:$0xff] %v6320_v61  ;;  %v6330_v34 = vpop.f32.mrf.mxu0  ;;  %4902 = vmatmul.mubr.msk.f32.gmra.mxu0 %vm333_vm0, %v5710_v3  ;;  %1758 = vmatprep.mubr.f32.mxu1 %v5407_v18  ;;  %v4960_v61 = vld [vmem:[%s7982_s1 + $0x280] sm:$0xff] }
 0x100   : > { %v6338_v40 = vpop.f32.mrf.mxu1  ;;  %2224 = vmatprep.mubr.f32.mxu0 %v5407_v18  ;;  %2613 = vmatpush1.msra.mxu1 %v4962_v5  ;;  %v5135_v5 = vld [vmem:[%s7982_s1 + $0x3f8] sm:$0xff] }
 0x101   : > { %8001 = vst [vmem:[#allocation11_spill] sm:$0xff] %v6338_v40  ;;  %v6341_v4 = vpop.f32.mrf.mxu0  ;;  %3080 = vmatpush1.msra.mxu0 %v5042_v60  ;;  %2614 = vmatprep.subr.mxu1 %v4961_v30  ;;  %v5040_v40 = vld [vmem:[%s7982_s1 + $0x300] sm:$0xff] }
 0x102   : > { %v6346_v3 = vpop.f32.mrf.mxu1  ;;  %4823 = vmatmul.mubr.msk.f32.gmra.mxu1 %vm333_vm0, %v5954_v21  ;;  %3081 = vmatprep.subr.mxu0 %v5041_v15  ;;  %v5215_v21 = vld [vmem:[%s7982_s1 + $0x478] sm:$0xff] }
 0x103   : > { %8002 = vst [vmem:[#allocation12_spill] sm:$0xff] %v6346_v3  ;;  %v6356_v60 = vpop.f32.mrf.mxu0  ;;  %4903 = vmatmul.mubr.msk.f32.gmra.mxu0 %vm333_vm0, %v5722_v6  ;;  %1764 = vmatprep.mubr.f32.mxu1 %v5407_v18 }
 0x104   : > { %v6364_v30 = vpop.f32.mrf.mxu1  ;;  %2230 = vmatprep.mubr.f32.mxu0 %v5407_v18  ;;  %2615 = vmatpush1.msra.mxu1 %v4960_v61 }
 0x105   : > { %8003 = vst [vmem:[#allocation13_spill] sm:$0xff] %v6364_v30  ;;  %v6367_v15 = vpop.f32.mrf.mxu0  ;;  %3082 = vmatpush1.msra.mxu0 %v5040_v40  ;;  %3533 = vmatprep.subr.mxu1 %v5135_v5 }
 0x106   : > { %v6369_v3 = vpop.f32.mrf.mxu1  ;;  %4824 = vmatmul.mubr.msk.f32.gmra.mxu1 %vm333_vm0, %v5963_v23  ;;  %3999 = vmatprep.subr.mxu0 %v5215_v21 }
 0x107   : > { %8004 = vst [vmem:[#allocation14_spill] sm:$0xff] %v6369_v3  ;;  %v6373_v6 = vpop.f32.mrf.mxu0  ;;  %4904 = vmatmul.mubr.msk.f32.gmra.mxu0 %vm333_vm0, %v5731_v8  ;;  %1770 = vmatprep.mubr.f32.mxu1 %v5407_v18 }
 0x108   : > { %v6378_v30 = vpop.f32.mrf.mxu1  ;;  %2236 = vmatprep.mubr.f32.mxu0 %v5407_v18 }
 0x109   : > { %8005 = vst [vmem:[#allocation15_spill] sm:$0xff] %v6378_v30  ;;  %v6381_v61 = vpop.f32.mrf.mxu0 }
 0x10a   : > { %v6383_v40 = vpop.f32.mrf.mxu1  ;;  %4825 = vmatmul.mubr.msk.f32.gmra.mxu1 %vm333_vm0, %v5972_v25 }
 0x10b   : > { %8006 = vst [vmem:[#allocation16_spill] sm:$0xff] %v6383_v40  ;;  %v6387_v23 = vpop.f32.mrf.mxu0  ;;  %4905 = vmatmul.mubr.msk.f32.gmra.mxu0 %vm333_vm0, %v5740_v10  ;;  %1776 = vmatprep.mubr.f32.mxu1 %v5407_v18 }
 0x10c   : > { %v6392_v8 = vpop.f32.mrf.mxu1  ;;  %2242 = vmatprep.mubr.f32.mxu0 %v5407_v18 }
 0x10d   : > { %8007 = vst [vmem:[#allocation17_spill] sm:$0xff] %v6392_v8  ;;  %v6395_v5 = vpop.f32.mrf.mxu0 }
 0x10e   : > { %v6397_v21 = vpop.f32.mrf.mxu1  ;;  %4826 = vmatmul.mubr.msk.f32.gmra.mxu1 %vm333_vm0, %v5981_v27 }
 0x10f   : > { %8008 = vst [vmem:[#allocation18_spill] sm:$0xff] %v6397_v21  ;;  %v6401_v40 = vpop.f32.mrf.mxu0  ;;  %4906 = vmatmul.mubr.msk.f32.gmra.mxu0 %vm333_vm0, %v5749_v12  ;;  %1782 = vmatprep.mubr.f32.mxu1 %v5407_v18 }
 0x110   : > { %v6406_v10 = vpop.f32.mrf.mxu1  ;;  %2248 = vmatprep.mubr.f32.mxu0 %v5407_v18 }
 0x111   : > { %8009 = vst [vmem:[#allocation19_spill] sm:$0xff] %v6406_v10  ;;  %v6409_v25 = vpop.f32.mrf.mxu0 }
 0x112   : > { %v6411_v8 = vpop.f32.mrf.mxu1  ;;  %4827 = vmatmul.mubr.msk.f32.gmra.mxu1 %vm333_vm0, %v5990_v29 }
 0x113   : > { %8010 = vst [vmem:[#allocation20_spill] sm:$0xff] %v6411_v8  ;;  %v6415_v21 = vpop.f32.mrf.mxu0  ;;  %4907 = vmatmul.mubr.msk.f32.gmra.mxu0 %vm333_vm0, %v5758_v14  ;;  %1788 = vmatprep.mubr.f32.mxu1 %v5407_v18 }
 0x114   : > { %v6420_v12 = vpop.f32.mrf.mxu1  ;;  %2254 = vmatprep.mubr.f32.mxu0 %v5407_v18 }
 0x115   : > { %8011 = vst [vmem:[#allocation21_spill] sm:$0xff] %v6420_v12  ;;  %v6423_v27 = vpop.f32.mrf.mxu0 }
 0x116   : > { %v6425_v10 = vpop.f32.mrf.mxu1  ;;  %4828 = vmatmul.mubr.msk.f32.gmra.mxu1 %vm333_vm0, %v5999_v33 }
 0x117   : > { %8012 = vst [vmem:[#allocation22_spill] sm:$0xff] %v6425_v10  ;;  %v6429_v29 = vpop.f32.mrf.mxu0  ;;  %4908 = vmatmul.mubr.msk.f32.gmra.mxu0 %vm333_vm0, %v5767_v16  ;;  %1794 = vmatprep.mubr.f32.mxu1 %v5407_v18 }
 0x118   : > { %v6434_v14 = vpop.f32.mrf.mxu1  ;;  %2260 = vmatprep.mubr.f32.mxu0 %v5407_v18 }
 0x119   : > { %8013 = vst [vmem:[#allocation23_spill] sm:$0xff] %v6434_v14  ;;  %v6437_v12 = vpop.f32.mrf.mxu0  ;;  %v4862_v14 = vld [vmem:[%s5536_s26 + $0xc1] sm:$0xff] }
 0x11a   : > { %v6439_v8 = vpop.f32.mrf.mxu1  ;;  %4829 = vmatmul.mubr.msk.f32.gmra.mxu1 %vm333_vm0, %v6008_v35 }
 0x11b   : > { %8014 = vst [vmem:[#allocation24_spill] sm:$0xff] %v6439_v8  ;;  %v6443_v33 = vpop.f32.mrf.mxu0  ;;  %4909 = vmatmul.mubr.msk.f32.gmra.mxu0 %vm333_vm0, %v5776_v19  ;;  %1800 = vmatprep.mubr.f32.mxu1 %v5407_v18 }
 0x11c   : > { %v6448_v16 = vpop.f32.mrf.mxu1  ;;  %2266 = vmatprep.mubr.f32.mxu0 %v5407_v18 }
 0x11d   : > { %8015 = vst [vmem:[#allocation25_spill] sm:$0xff] %v6448_v16  ;;  %v6452_v10 = vpop.f32.mrf.mxu0  ;;  %v4863_v16 = vld [vmem:[%s5536_s26 + $0xc9] sm:$0xff] }
 0x11e   : > { %v6454_v30 = vpop.f32.mrf.mxu1  ;;  %4830 = vmatmul.mubr.msk.f32.gmra.mxu1 %vm333_vm0, %v6017_v38 }
 0x11f   : > { %8016 = vst [vmem:[#allocation26_spill] sm:$0xff] %v6454_v30  ;;  %v6458_v35 = vpop.f32.mrf.mxu0  ;;  %4910 = vmatmul.mubr.msk.f32.gmra.mxu0 %vm333_vm0, %v4862_v14  ;;  %1806 = vmatprep.mubr.f32.mxu1 %v5407_v18 }
 0x120   : > { %v6462_v19 = vpop.f32.mrf.mxu1  ;;  %2272 = vmatprep.mubr.f32.mxu0 %v5407_v18 }
 0x121   : > { %8017 = vst [vmem:[#allocation27_spill] sm:$0xff] %v6462_v19  ;;  %v6466_v8 = vpop.f32.mrf.mxu0  ;;  %v4864_v19 = vld [vmem:[%s5536_s26 + $0xd9] sm:$0xff] }
 0x122   : > { %v6468_v3 = vpop.f32.mrf.mxu1  ;;  %4831 = vmatmul.mubr.msk.f32.gmra.mxu1 %vm333_vm0, %v6026_v41 }
 0x123   : > { %8018 = vst [vmem:[#allocation28_spill] sm:$0xff] %v6468_v3  ;;  %v6472_v38 = vpop.f32.mrf.mxu0  ;;  %4911 = vmatmul.mubr.msk.f32.gmra.mxu0 %vm333_vm0, %v4863_v16  ;;  %1812 = vmatprep.mubr.f32.mxu1 %v5407_v18 }
 0x124   : > { %v6476_v14 = vpop.f32.mrf.mxu1  ;;  %2278 = vmatprep.mubr.f32.mxu0 %v5407_v18 }
 0x125   : > { %8019 = vst [vmem:[#allocation29_spill] sm:$0xff] %v6476_v14  ;;  %v6480_v30 = vpop.f32.mrf.mxu0  ;;  %v4865_v14 = vld [vmem:[%s5536_s26 + $0xe1] sm:$0xff] }
 0x126   : > { %v849_v57 = vpop.f32.mrf.mxu1  ;;  %4832 = vmatmul.mubr.msk.f32.gmra.mxu1 %vm333_vm0, %v6035_v44 }
 0x127   : > { %v850_v41 = vadd.f32 %v849_v57, %v6174_v42  ;;  %v1251_v3 = vpop.f32.mrf.mxu0  ;;  %4912 = vmatmul.mubr.msk.f32.gmra.mxu0 %vm333_vm0, %v4864_v19  ;;  %1818 = vmatprep.mubr.f32.mxu1 %v5407_v18 }
 0x128   : > { %v851_v16 = vpop.f32.mrf.mxu1  ;;  %2284 = vmatprep.mubr.f32.mxu0 %v5407_v18 }
 0x129   : > { %v6489_v55 = vadd.f32 %v1251_v3, %v850_v41  ;;  %v852_v13 = vadd.f32 %v851_v16, %v6184_v32  ;;  %v1253_v49 = vpop.f32.mrf.mxu0  ;;  %v4866_v3 = vld [vmem:[%s5536_s26 + $0xf1] sm:$0xff] }
 0x12a   : > { %v855_v51 = vpop.f32.mrf.mxu1  ;;  %4833 = vmatmul.mubr.msk.f32.gmra.mxu1 %vm333_vm0, %v6044_v47 }
 0x12b   : > { %v6494_v44 = vadd.f32 %v1253_v49, %v852_v13  ;;  %v856_v42 = vadd.f32 %v855_v51, %v6200_v59  ;;  %v1257_v57 = vpop.f32.mrf.mxu0  ;;  %4913 = vmatmul.mubr.msk.f32.gmra.mxu0 %vm333_vm0, %v4865_v14  ;;  %1824 = vmatprep.mubr.f32.mxu1 %v5407_v18  ;;  %v4867_v14 = vld [vmem:[%s5536_s26 + $0xf9] sm:$0xff] }
 0x12c   : > { %v857_v19 = vpop.f32.mrf.mxu1  ;;  %2290 = vmatprep.mubr.f32.mxu0 %v5407_v18 }
 0x12d   : > { %v6501_v32 = vadd.f32 %v1257_v57, %v856_v42  ;;  %v858_v41 = vadd.f32 %v857_v19, %v6211_v1  ;;  %v1259_v16 = vpop.f32.mrf.mxu0 }
 0x12e   : > { %v861_v47 = vpop.f32.mrf.mxu1  ;;  %4834 = vmatmul.mubr.msk.f32.gmra.mxu1 %vm333_vm0, %v6053_v50 }
 0x12f   : > { %v6506_v59 = vadd.f32 %v1259_v16, %v858_v41  ;;  %v862_v51 = vadd.f32 %v861_v47, %v6226_v20  ;;  %v1263_v49 = vpop.f32.mrf.mxu0  ;;  %4914 = vmatmul.mubr.msk.f32.gmra.mxu0 %vm333_vm0, %v4866_v3  ;;  %1830 = vmatprep.mubr.f32.mxu1 %v5407_v18  ;;  %v4868_v16 = vld [vmem:[%s5536_s26 + $0x109] sm:$0xff] }
 0x130   : > { %v863_v13 = vpop.f32.mrf.mxu1  ;;  %2296 = vmatprep.mubr.f32.mxu0 %v5407_v18 }
 0x131   : > { %v6513_v1 = vadd.f32 %v1263_v49, %v862_v51  ;;  %v864_v42 = vadd.f32 %v863_v13, %v6237_v28  ;;  %v1265_v57 = vpop.f32.mrf.mxu0 }
 0x132   : > { %v867_v50 = vpop.f32.mrf.mxu1  ;;  %4835 = vmatmul.mubr.msk.f32.gmra.mxu1 %vm333_vm0, %v6062_v52 }
 0x133   : > { %v6518_v20 = vadd.f32 %v1265_v57, %v864_v42  ;;  %v868_v19 = vadd.f32 %v867_v50, %v6252_v45  ;;  %v1269_v3 = vpop.f32.mrf.mxu0  ;;  %4915 = vmatmul.mubr.msk.f32.gmra.mxu0 %vm333_vm0, %v4867_v14  ;;  %1836 = vmatprep.mubr.f32.mxu1 %v5407_v18  ;;  %v4869_v42 = vld [vmem:[%s5536_s26 + $0x111] sm:$0xff] }
 0x134   : > { %v869_v41 = vpop.f32.mrf.mxu1  ;;  %2302 = vmatprep.mubr.f32.mxu0 %v5407_v18 }
 0x135   : > { %v6525_v28 = vadd.f32 %v1269_v3, %v868_v19  ;;  %v870_v47 = vadd.f32 %v869_v41, %v6263_v54  ;;  %v1271_v51 = vpop.f32.mrf.mxu0 }
 0x136   : > { %v873_v52 = vpop.f32.mrf.mxu1  ;;  %4836 = vmatmul.mubr.msk.f32.gmra.mxu1 %vm333_vm0, %v6071_v56 }
 0x137   : > { %v6530_v45 = vadd.f32 %v1271_v51, %v870_v47  ;;  %v874_v49 = vadd.f32 %v873_v52, %v6278_v9  ;;  %v1275_v13 = vpop.f32.mrf.mxu0  ;;  %4916 = vmatmul.mubr.msk.f32.gmra.mxu0 %vm333_vm0, %v4868_v16  ;;  %1842 = vmatprep.mubr.f32.mxu1 %v5407_v18  ;;  %v4870_v16 = vld [vmem:[%s5536_s26 + $0x121] sm:$0xff] }
 0x138   : > { %v875_v14 = vpop.f32.mrf.mxu1  ;;  %2308 = vmatprep.mubr.f32.mxu0 %v5407_v18 }
 0x139   : > { %v6537_v54 = vadd.f32 %v1275_v13, %v874_v49  ;;  %v876_v57 = vadd.f32 %v875_v14, %v6289_v46  ;;  %v1277_v50 = vpop.f32.mrf.mxu0  ;;  %v4871_v14 = vld [vmem:[%s5536_s26 + $0x129] sm:$0xff] }
 0x13a   : > { %v879_v56 = vpop.f32.mrf.mxu1  ;;  %4837 = vmatmul.mubr.msk.f32.gmra.mxu1 %vm333_vm0, %v6080_v58 }
 0x13b   : > { %v6542_v9 = vadd.f32 %v1277_v50, %v876_v57  ;;  %v880_v19 = vadd.f32 %v879_v56, %v6304_v53  ;;  %v1281_v3 = vpop.f32.mrf.mxu0  ;;  %4917 = vmatmul.mubr.msk.f32.gmra.mxu0 %vm333_vm0, %v4869_v42  ;;  %1848 = vmatprep.mubr.f32.mxu1 %v5407_v18 }
 0x13c   : > { %v881_v41 = vpop.f32.mrf.mxu1  ;;  %2314 = vmatprep.mubr.f32.mxu0 %v5407_v18 }
 0x13d   : > { %v6549_v46 = vadd.f32 %v1281_v3, %v880_v19  ;;  %v882_v47 = vadd.f32 %v881_v41, %v6315_v39  ;;  %v1283_v51 = vpop.f32.mrf.mxu0  ;;  %v4872_v3 = vld [vmem:[%s5536_s26 + $0x139] sm:$0xff] }
 0x13e   : > { %v885_v58 = vpop.f32.mrf.mxu1  ;;  %4838 = vmatmul.mubr.msk.f32.gmra.mxu1 %vm333_vm0, %v6089_v62 }
 0x13f   : > { %v6554_v53 = vadd.f32 %v1283_v51, %v882_v47  ;;  %v886_v52 = vadd.f32 %v885_v58, %v6330_v34  ;;  %v1287_v49 = vpop.f32.mrf.mxu0  ;;  %4918 = vmatmul.mubr.msk.f32.gmra.mxu0 %vm333_vm0, %v4870_v16  ;;  %1854 = vmatprep.mubr.f32.mxu1 %v5407_v18 }
 0x140   : > { %v887_v13 = vpop.f32.mrf.mxu1  ;;  %2320 = vmatprep.mubr.f32.mxu0 %v5407_v18 }
 0x141   : > { %v6561_v39 = vadd.f32 %v1287_v49, %v886_v52  ;;  %v888_v42 = vadd.f32 %v887_v13, %v6341_v4  ;;  %v1289_v57 = vpop.f32.mrf.mxu0  ;;  %v4873_v52 = vld [vmem:[%s5536_s26 + $0x141] sm:$0xff] }
 0x142   : > { %v891_v62 = vpop.f32.mrf.mxu1  ;;  %4839 = vmatmul.mubr.msk.f32.gmra.mxu1 %vm333_vm0, %v6098_v0 }
 0x143   : > { %v6566_v34 = vadd.f32 %v1289_v57, %v888_v42  ;;  %v892_v50 = vadd.f32 %v891_v62, %v6356_v60  ;;  %v1293_v56 = vpop.f32.mrf.mxu0  ;;  %4919 = vmatmul.mubr.msk.f32.gmra.mxu0 %vm333_vm0, %v4871_v14  ;;  %1860 = vmatprep.mubr.f32.mxu1 %v5407_v18  ;;  %v4874_v62 = vld [vmem:[%s5536_s26 + $0x151] sm:$0xff] }
 0x144   : > { %v893_v19 = vpop.f32.mrf.mxu1  ;;  %2326 = vmatprep.mubr.f32.mxu0 %v5407_v18 }
 0x145   : > { %v6573_v4 = vadd.f32 %v1293_v56, %v892_v50  ;;  %v894_v41 = vadd.f32 %v893_v19, %v6367_v15  ;;  %v1295_v16 = vpop.f32.mrf.mxu0 }
 0x146   : > { %v897_v0 = vpop.f32.mrf.mxu1  ;;  %4840 = vmatmul.mubr.msk.f32.gmra.mxu1 %vm333_vm0, %v6107_v2 }
 0x147   : > { %v6578_v60 = vadd.f32 %v1295_v16, %v894_v41  ;;  %v898_v47 = vadd.f32 %v897_v0, %v6373_v6  ;;  %v1299_v51 = vpop.f32.mrf.mxu0  ;;  %4920 = vmatmul.mubr.msk.f32.gmra.mxu0 %vm333_vm0, %v4872_v3  ;;  %1866 = vmatprep.mubr.f32.mxu1 %v5407_v18  ;;  %v4875_v16 = vld [vmem:[%s5536_s26 + $0x159] sm:$0xff] }
 0x148   : > { %v899_v58 = vpop.f32.mrf.mxu1  ;;  %2332 = vmatprep.mubr.f32.mxu0 %v5407_v18 }
 0x149   : > { %v6585_v15 = vadd.f32 %v1299_v51, %v898_v47  ;;  %v900_v49 = vadd.f32 %v899_v58, %v6381_v61  ;;  %v1301_v13 = vpop.f32.mrf.mxu0 }
 0x14a   : > { %v903_v2 = vpop.f32.mrf.mxu1  ;;  %4841 = vmatmul.mubr.msk.f32.gmra.mxu1 %vm333_vm0, %v6116_v7 }
 0x14b   : > { %v6590_v6 = vadd.f32 %v1301_v13, %v900_v49  ;;  %v904_v14 = vadd.f32 %v903_v2, %v6387_v23  ;;  %v1305_v42 = vpop.f32.mrf.mxu0  ;;  %4921 = vmatmul.mubr.msk.f32.gmra.mxu0 %vm333_vm0, %v4873_v52  ;;  %1872 = vmatprep.mubr.f32.mxu1 %v5407_v18  ;;  %v4876_v49 = vld [vmem:[%s5536_s26 + $0x169] sm:$0xff] }
 0x14c   : > { %v905_v57 = vpop.f32.mrf.mxu1  ;;  %2338 = vmatprep.mubr.f32.mxu0 %v5407_v18 }
 0x14d   : > { %v6597_v61 = vadd.f32 %v1305_v42, %v904_v14  ;;  %v906_v50 = vadd.f32 %v905_v57, %v6395_v5  ;;  %v1307_v56 = vpop.f32.mrf.mxu0 }
 0x14e   : > { %v909_v7 = vpop.f32.mrf.mxu1  ;;  %4842 = vmatmul.mubr.msk.f32.gmra.mxu1 %vm333_vm0, %v6125_v11 }
 0x14f   : > { %v6602_v23 = vadd.f32 %v1307_v56, %v906_v50  ;;  %v910_v19 = vadd.f32 %v909_v7, %v6401_v40  ;;  %v1311_v3 = vpop.f32.mrf.mxu0  ;;  %4922 = vmatmul.mubr.msk.f32.gmra.mxu0 %vm333_vm0, %v4874_v62  ;;  %1878 = vmatprep.mubr.f32.mxu1 %v5407_v18 }
 0x150   : > { %v911_v41 = vpop.f32.mrf.mxu1  ;;  %2344 = vmatprep.mubr.f32.mxu0 %v5407_v18 }
 0x151   : > { %v6609_v5 = vadd.f32 %v1311_v3, %v910_v19  ;;  %v912_v0 = vadd.f32 %v911_v41, %v6409_v25  ;;  %v1313_v47 = vpop.f32.mrf.mxu0  ;;  %v6644_v3 = vld [vmem:[%s5536_s26 + $0x180] sm:$0xff] }
 0x152   : > { %v915_v11 = vpop.f32.mrf.mxu1  ;;  %4843 = vmatmul.mubr.msk.f32.gmra.mxu1 %vm333_vm0, %v6134_v17 }
 0x153   : > { %v6614_v40 = vadd.f32 %v1313_v47, %v912_v0  ;;  %v916_v51 = vadd.f32 %v915_v11, %v6415_v21  ;;  %v1317_v58 = vpop.f32.mrf.mxu0  ;;  %4923 = vmatmul.mubr.msk.f32.gmra.mxu0 %vm333_vm0, %v4875_v16  ;;  %1884 = vmatprep.mubr.f32.mxu1 %v5407_v18 }
 0x154   : > { %v917_v52 = vpop.f32.mrf.mxu1  ;;  %2350 = vmatprep.mubr.f32.mxu0 %v5407_v18 }
 0x155   : > { %v6621_v25 = vadd.f32 %v1317_v58, %v916_v51  ;;  %v918_v13 = vadd.f32 %v917_v52, %v6423_v27  ;;  %v1319_v2 = vpop.f32.mrf.mxu0  ;;  %v4877_v27 = vld [vmem:[%s5536_s26 + $0x171] sm:$0xff]  ;;  %v6659_v58 = vld [vmem:[%s5536_s26 + $0x188] sm:$0xff] }
 0x156   : > { %v921_v17 = vpop.f32.mrf.mxu1  ;;  %4844 = vmatmul.mubr.msk.f32.gmra.mxu1 %vm333_vm0, %v6143_v22 }
 0x157   : > { %v6626_v21 = vadd.f32 %v1319_v2, %v918_v13  ;;  %v922_v14 = vadd.f32 %v921_v17, %v6429_v29  ;;  %v1323_v42 = vpop.f32.mrf.mxu0  ;;  %4924 = vmatmul.mubr.msk.f32.gmra.mxu0 %vm333_vm0, %v4876_v49  ;;  %1890 = vmatprep.mubr.f32.mxu1 %v5407_v18 }
 0x158   : > { %v923_v57 = vpop.f32.mrf.mxu1  ;;  %2356 = vmatprep.mubr.f32.mxu0 %v5407_v18 }
 0x159   : > { %v6633_v62 = vadd.f32 %v1323_v42, %v922_v14  ;;  %v924_v50 = vadd.f32 %v923_v57, %v6437_v12  ;;  %v1325_v22 = vpop.f32.mrf.mxu0  ;;  %v4878_v12 = vld [vmem:[%s5536_s26 + $0x181] sm:$0xff] }
 0x15a   : > { %v927_v56 = vpop.f32.mrf.mxu1  ;;  %4845 = vmatmul.mubr.msk.f32.gmra.mxu1 %vm333_vm0, %v6152_v26  ;;  %v4928_v57 = vld [vmem:[%s5536_s26 + $0x1a] sm:$0xff] }
 0x15b   : > { %v6638_v29 = vadd.f32 %v1325_v22, %v924_v50  ;;  %v928_v7 = vadd.f32 %v927_v56, %v6443_v33  ;;  %v1329_v19 = vpop.f32.mrf.mxu0  ;;  %4925 = vmatmul.mubr.msk.f32.gmra.mxu0 %vm333_vm0, %v4877_v27  ;;  %1896 = vmatprep.mubr.f32.mxu1 %v5407_v18  ;;  %v5134_v50 = vld [vmem:[%s7982_s1 + $0x3f0] sm:$0xff] }
 0x15c   : > { %v929_v41 = vpop.f32.mrf.mxu1  ;;  %2362 = vmatprep.mubr.f32.mxu0 %v5407_v18 }
 0x15d   : > { %v6648_v16 = vadd.f32 %v1329_v19, %v928_v7  ;;  %v930_v26 = vadd.f32 %v929_v41, %v6452_v10  ;;  %v1331_v0 = vpop.f32.mrf.mxu0  ;;  %v4879_v10 = vld [vmem:[%s5536_s26 + $0x189] sm:$0xff] }
 0x15e   : > { %v933_v47 = vpop.f32.mrf.mxu1  ;;  %4846 = vmatmul.mubr.msk.f32.gmra.mxu1 %vm333_vm0, %v6644_v3  ;;  %v5214_v7 = vld [vmem:[%s7982_s1 + $0x470] sm:$0xff]  ;;  %v5133_v41 = vld [vmem:[%s7982_s1 + $0x3e8] sm:$0xff] }
 0x15f   : > { %v6653_v33 = vadd.f32 %v1331_v0, %v930_v26  ;;  %v934_v11 = vadd.f32 %v933_v47, %v6458_v35  ;;  %v1335_v51 = vpop.f32.mrf.mxu0  ;;  %4926 = vmatmul.mubr.msk.f32.gmra.mxu0 %vm333_vm0, %v4878_v12  ;;  %1902 = vmatprep.mubr.f32.mxu1 %v5407_v18  ;;  %v5213_v47 = vld [vmem:[%s7982_s1 + $0x468] sm:$0xff] }
 0x160   : > { %v935_v52 = vpop.f32.mrf.mxu1  ;;  %2368 = vmatprep.mubr.f32.mxu0 %v5407_v18 }
 0x161   : > { %v6663_v49 = vadd.f32 %v1335_v51, %v934_v11  ;;  %v936_v13 = vadd.f32 %v935_v52, %v6466_v8  ;;  %v1337_v2 = vpop.f32.mrf.mxu0  ;;  %v5008_v8 = vld [vmem:[%s5536_s26 + $0x30] sm:$0xff]  ;;  %v5009_v51 = vld [vmem:[%s5536_s26 + $0x38] sm:$0xff] }
 0x162   : > { %v939_v17 = vpop.f32.mrf.mxu1  ;;  %4847 = vmatmul.mubr.msk.f32.gmra.mxu1 %vm333_vm0, %v6659_v58 }
 0x163   : > { %v6668_v35 = vadd.f32 %v1337_v2, %v936_v13  ;;  %v940_v14 = vadd.f32 %v939_v17, %v6472_v38  ;;  %v1341_v42 = vpop.f32.mrf.mxu0  ;;  %4927 = vmatmul.mubr.msk.f32.gmra.mxu0 %vm333_vm0, %v4879_v10  ;;  %2648 = vmatprep.mubr.f32.mxu1 %v5407_v18  ;;  %v5132_v13 = vld [vmem:[%s7982_s1 + $0x3e0] sm:$0xff] }
 0x164   : > { %v941_v27 = vpop.f32.mrf.mxu1  ;;  %3115 = vmatprep.mubr.f32.mxu0 %v5407_v18  ;;  %v5212_v17 = vld [vmem:[%s7982_s1 + $0x460] sm:$0xff] }
 0x165   : > { %v6679_v22 = vadd.f32 %v1341_v42, %v940_v14  ;;  %v942_v56 = vadd.f32 %v941_v27, %v6480_v30  ;;  %v1343_v38 = vpop.f32.mrf.mxu0  ;;  %v4929_v30 = vld [vmem:[%s5536_s26 + $0x22] sm:$0xff]  ;;  %v6719_v27 = vld [vmem:[%s5536_s26 + $0x32] sm:$0xff] }
 0x166   : > { %v945_v19 = vpop.f32.mrf.mxu1  ;;  %4976 = vmatmul.mubr.msk.f32.vlgmr.msra.gmra.mxu1 %vm333_vm0, %v4928_v57 }
 0x167   : > { %v6689_v12 = vadd.f32 %v1343_v38, %v942_v56  ;;  %v946_v26 = vadd.f32 %v945_v19, %v6167_v36  ;;  %v1347_v0 = vpop.f32.mrf.mxu0  ;;  %5056 = vmatmul.mubr.msk.f32.vlgmr.msra.gmra.mxu0 %vm333_vm0, %v5008_v8  ;;  %3534 = vmatpush1.msra.mxu1 %v5134_v50  ;;  %v5211_v8 = vld [vmem:[%s7982_s1 + $0x458] sm:$0xff]  ;;  %v5010_v56 = vld [vmem:[%s5536_s26 + $0x48] sm:$0xff]  ;;  %v5130_v19 = vld [vmem:[%s7982_s1 + $0x3d0] sm:$0xff] }
 0x168   : > { %v947_v11 = vpop.f32.mrf.mxu1  ;;  %2654 = vmatprep.mubr.f32.mxu1 %v5407_v18  ;;  %4000 = vmatpush1.msra.mxu0 %v5214_v7 }
 0x169   : > { %v6699_v52 = vadd.f32 %v1347_v0, %v946_v26  ;;  %v948_v10 = vadd.f32 %v947_v11, %v6181_v48  ;;  %v1349_v36 = vpop.f32.mrf.mxu0  ;;  %3121 = vmatprep.mubr.f32.mxu0 %v5407_v18  ;;  %3535 = vmatprep.subr.mxu1 %v5133_v41  ;;  %v5131_v48 = vld [vmem:[%s7982_s1 + $0x3d8] sm:$0xff]  ;;  %v5210_v26 = vld [vmem:[%s7982_s1 + $0x450] sm:$0xff] }
 0x16a   : > { %v951_v2 = vpop.f32.mrf.mxu1  ;;  %4977 = vmatmul.mubr.msk.f32.gmra.mxu1 %vm333_vm0, %v4929_v30  ;;  %4001 = vmatprep.subr.mxu0 %v5213_v47  ;;  %v6746_v11 = vld [vmem:[%s5536_s26 + $0x3a] sm:$0xff] }
 0x16b   : > { %v6713_v14 = vadd.f32 %v1349_v36, %v948_v10  ;;  %v952_v42 = vadd.f32 %v951_v2, %v6190_v31  ;;  %v1353_v57 = vpop.f32.mrf.mxu0  ;;  %5057 = vmatmul.mubr.msk.f32.gmra.mxu0 %vm333_vm0, %v5009_v51  ;;  %2660 = vmatprep.mubr.f32.mxu1 %v5407_v18  ;;  %v5209_v51 = vld [vmem:[%s7982_s1 + $0x448] sm:$0xff]  ;;  %v5011_v36 = vld [vmem:[%s5536_s26 + $0x50] sm:$0xff] }
 0x16c   : > { %v953_v50 = vpop.f32.mrf.mxu1  ;;  %3127 = vmatprep.mubr.f32.mxu0 %v5407_v18  ;;  %3536 = vmatpush1.msra.mxu1 %v5132_v13 }
 0x16d   : > { %v6726_v38 = vadd.f32 %v1353_v57, %v952_v42  ;;  %v954_v31 = vadd.f32 %v953_v50, %v6208_v63  ;;  %v1355_v7 = vpop.f32.mrf.mxu0  ;;  %4002 = vmatpush1.msra.mxu0 %v5212_v17  ;;  %3537 = vmatprep.subr.mxu1 %v5131_v48  ;;  %v5129_v63 = vld [vmem:[%s7982_s1 + $0x3c8] sm:$0xff]  ;;  %v5128_v17 = vld [vmem:[%s7982_s1 + $0x3c0] sm:$0xff] }
 0x16e   : > { %v957_v41 = vpop.f32.mrf.mxu1  ;;  %4978 = vmatmul.mubr.msk.f32.gmra.mxu1 %vm333_vm0, %v6719_v27  ;;  %4003 = vmatprep.subr.mxu0 %v5211_v8  ;;  %v5208_v42 = vld [vmem:[%s7982_s1 + $0x440] sm:$0xff] }
 0x16f   : > { %v6740_v0 = vadd.f32 %v1355_v7, %v954_v31  ;;  %v958_v30 = vadd.f32 %v957_v41, %v6216_v37  ;;  %v1359_v47 = vpop.f32.mrf.mxu0  ;;  %5058 = vmatmul.mubr.msk.f32.gmra.mxu0 %vm333_vm0, %v5010_v56  ;;  %2666 = vmatprep.mubr.f32.mxu1 %v5407_v18  ;;  %v6773_v56 = vld [vmem:[%s5536_s26 + $0x4a] sm:$0xff]  ;;  %v5207_v31 = vld [vmem:[%s7982_s1 + $0x438] sm:$0xff] }
 0x170   : > { %v959_v10 = vpop.f32.mrf.mxu1  ;;  %3133 = vmatprep.mubr.f32.mxu0 %v5407_v18  ;;  %3538 = vmatpush1.msra.mxu1 %v5130_v19  ;;  %v5012_v19 = vld [vmem:[%s5536_s26 + $0x60] sm:$0xff] }
 0x171   : > { %v6753_v13 = vadd.f32 %v1359_v47, %v958_v30  ;;  %v960_v37 = vadd.f32 %v959_v10, %v6234_v24  ;;  %v1361_v2 = vpop.f32.mrf.mxu0  ;;  %4004 = vmatpush1.msra.mxu0 %v5210_v26  ;;  %3539 = vmatprep.subr.mxu1 %v5129_v63  ;;  %v5127_v24 = vld [vmem:[%s7982_s1 + $0x3b8] sm:$0xff]  ;;  %v8020_v26 = vld [vmem:[#allocation5_spill] sm:$0xff]  ;;  %v5126_v30 = vld [vmem:[%s7982_s1 + $0x3b0] sm:$0xff] }
 0x172   : > { %v963_v48 = vpop.f32.mrf.mxu1  ;;  %4979 = vmatmul.mubr.msk.f32.gmra.mxu1 %vm333_vm0, %v6746_v11  ;;  %4005 = vmatprep.subr.mxu0 %v5209_v51  ;;  %v5206_v51 = vld [vmem:[%s7982_s1 + $0x430] sm:$0xff]  ;;  %v5125_v10 = vld [vmem:[%s7982_s1 + $0x3a8] sm:$0xff] }
 0x173   : > { %v6767_v57 = vadd.f32 %v1361_v2, %v960_v37  ;;  %v964_v8 = vadd.f32 %v963_v48, %v6242_v43  ;;  %v1365_v50 = vpop.f32.mrf.mxu0  ;;  %5059 = vmatmul.mubr.msk.f32.gmra.mxu0 %vm333_vm0, %v5011_v36  ;;  %2672 = vmatprep.mubr.f32.mxu1 %v5407_v18  ;;  %v8021_v37 = vld [vmem:[#allocation6_spill] sm:$0xff]  ;;  %v6800_v48 = vld [vmem:[%s5536_s26 + $0x52] sm:$0xff] }
 0x174   : > { %v965_v7 = vpop.f32.mrf.mxu1  ;;  %3139 = vmatprep.mubr.f32.mxu0 %v5407_v18  ;;  %3540 = vmatpush1.msra.mxu1 %v5128_v17 }
 0x175   : > { %v6780_v41 = vadd.f32 %v1365_v50, %v964_v8  ;;  %v966_v43 = vadd.f32 %v965_v7, %v8020_v26  ;;  %v1367_v63 = vpop.f32.mrf.mxu0  ;;  %4006 = vmatpush1.msra.mxu0 %v5208_v42  ;;  %3541 = vmatprep.subr.mxu1 %v5127_v24  ;;  %v5205_v42 = vld [vmem:[%s7982_s1 + $0x428] sm:$0xff] }
 0x176   : > { %v969_v47 = vpop.f32.mrf.mxu1  ;;  %4980 = vmatmul.mubr.msk.f32.gmra.mxu1 %vm333_vm0, %v6773_v56  ;;  %4007 = vmatprep.subr.mxu0 %v5207_v31  ;;  %v5013_v8 = vld [vmem:[%s5536_s26 + $0x68] sm:$0xff]  ;;  %v8022_v31 = vld [vmem:[#allocation7_spill] sm:$0xff] }
 0x177   : > { %v6794_v36 = vadd.f32 %v1367_v63, %v966_v43  ;;  %v970_v2 = vadd.f32 %v969_v47, %v8021_v37  ;;  %v1371_v17 = vpop.f32.mrf.mxu0  ;;  %5060 = vmatmul.mubr.msk.f32.gmra.mxu0 %vm333_vm0, %v5012_v19  ;;  %2678 = vmatprep.mubr.f32.mxu1 %v5407_v18  ;;  %v5124_v19 = vld [vmem:[%s7982_s1 + $0x3a0] sm:$0xff] }
 0x178   : > { %v971_v24 = vpop.f32.mrf.mxu1  ;;  %3145 = vmatprep.mubr.f32.mxu0 %v5407_v18  ;;  %3542 = vmatpush1.msra.mxu1 %v5126_v30  ;;  %v5204_v63 = vld [vmem:[%s7982_s1 + $0x420] sm:$0xff]  ;;  %v5123_v30 = vld [vmem:[%s7982_s1 + $0x398] sm:$0xff] }
 0x179   : > { %v6807_v50 = vadd.f32 %v1371_v17, %v970_v2  ;;  %v972_v7 = vadd.f32 %v971_v24, %v8022_v31  ;;  %v1373_v26 = vpop.f32.mrf.mxu0  ;;  %4008 = vmatpush1.msra.mxu0 %v5206_v51  ;;  %3543 = vmatprep.subr.mxu1 %v5125_v10  ;;  %v8024_v51 = vld [vmem:[#allocation8_spill] sm:$0xff]  ;;  %v6827_v2 = vld [vmem:[%s5536_s26 + $0x62] sm:$0xff] }
 0x17a   : > { %v975_v43 = vpop.f32.mrf.mxu1  ;;  %4981 = vmatmul.mubr.msk.f32.gmra.mxu1 %vm333_vm0, %v6800_v48  ;;  %4009 = vmatprep.subr.mxu0 %v5205_v42  ;;  %8025 = vst [vmem:[#allocation6_spill] sm:$0xff] %v6827_v2  ;;  %v5203_v17 = vld [vmem:[%s7982_s1 + $0x418] sm:$0xff] }
 0x17b   : > { %v6821_v47 = vadd.f32 %v1373_v26, %v972_v7  ;;  %v976_v10 = vadd.f32 %v975_v43, %v8024_v51  ;;  %v1377_v37 = vpop.f32.mrf.mxu0  ;;  %5061 = vmatmul.mubr.msk.f32.gmra.mxu0 %vm333_vm0, %v5013_v8  ;;  %2684 = vmatprep.mubr.f32.mxu1 %v5407_v18  ;;  %v5014_v24 = vld [vmem:[%s5536_s26 + $0x78] sm:$0xff]  ;;  %v8027_v7 = vld [vmem:[#allocation9_spill] sm:$0xff]  ;;  %v5122_v8 = vld [vmem:[%s7982_s1 + $0x390] sm:$0xff] }
 0x17c   : > { %v977_v42 = vpop.f32.mrf.mxu1  ;;  %3151 = vmatprep.mubr.f32.mxu0 %v5407_v18  ;;  %3544 = vmatpush1.msra.mxu1 %v5124_v19  ;;  %v5202_v19 = vld [vmem:[%s7982_s1 + $0x410] sm:$0xff] }
 0x17d   : > { %8023 = vst [vmem:[#allocation5_spill] sm:$0xff] %v6821_v47  ;;  %v6834_v31 = vadd.f32 %v1377_v37, %v976_v10  ;;  %v978_v26 = vadd.f32 %v977_v42, %v8027_v7  ;;  %v1379_v43 = vpop.f32.mrf.mxu0  ;;  %4010 = vmatpush1.msra.mxu0 %v5204_v63  ;;  %3545 = vmatprep.subr.mxu1 %v5123_v30  ;;  %v5121_v10 = vld [vmem:[%s7982_s1 + $0x388] sm:$0xff]  ;;  %v5015_v47 = vld [vmem:[%s5536_s26 + $0x80] sm:$0xff] }
 0x17e   : > { %v981_v51 = vpop.f32.mrf.mxu1  ;;  %4982 = vmatmul.mubr.msk.f32.gmra.mxu1 %vm333_vm0, %v6827_v2  ;;  %4011 = vmatprep.subr.mxu0 %v5203_v17  ;;  %v8029_v30 = vld [vmem:[#allocation10_spill] sm:$0xff] }
 0x17f   : > { %8026 = vst [vmem:[#allocation7_spill] sm:$0xff] %v6834_v31  ;;  %v6848_v63 = vadd.f32 %v1379_v43, %v978_v26  ;;  %v982_v37 = vadd.f32 %v981_v51, %v8029_v30  ;;  %v1383_v42 = vpop.f32.mrf.mxu0  ;;  %5062 = vmatmul.mubr.msk.f32.gmra.mxu0 %vm333_vm0, %v5014_v24  ;;  %2690 = vmatprep.mubr.f32.mxu1 %v5407_v18  ;;  %v6854_v7 = vld [vmem:[%s5536_s26 + $0x6a] sm:$0xff]  ;;  %v5120_v24 = vld [vmem:[%s7982_s1 + $0x380] sm:$0xff] }
 0x180   : > { %8030 = vst [vmem:[#allocation9_spill] sm:$0xff] %v6854_v7  ;;  %v5201_v17 = vld [vmem:[%s7982_s1 + $0x408] sm:$0xff]  ;;  %v983_v31 = vpop.f32.mrf.mxu1  ;;  %3157 = vmatprep.mubr.f32.mxu0 %v5407_v18  ;;  %3546 = vmatpush1.msra.mxu1 %v5122_v8  ;;  %v8032_v43 = vld [vmem:[#allocation11_spill] sm:$0xff]  ;;  %v5200_v8 = vld [vmem:[%s7982_s1 + $0x400] sm:$0xff] }
 0x181   : > { %8028 = vst [vmem:[#allocation8_spill] sm:$0xff] %v6848_v63  ;;  %v6861_v26 = vadd.f32 %v1383_v42, %v982_v37  ;;  %v984_v51 = vadd.f32 %v983_v31, %v8032_v43  ;;  %v1385_v30 = vpop.f32.mrf.mxu0  ;;  %4012 = vmatpush1.msra.mxu0 %v5202_v19  ;;  %3547 = vmatprep.subr.mxu1 %v5121_v10  ;;  %v8034_v31 = vld [vmem:[#allocation12_spill] sm:$0xff] }
 0x182   : > { %v987_v63 = vpop.f32.mrf.mxu1  ;;  %4983 = vmatmul.mubr.msk.f32.gmra.mxu1 %vm333_vm0, %v6854_v7  ;;  %4013 = vmatprep.subr.mxu0 %v5201_v17  ;;  %v6878_v19 = vld [vmem:[%s5536_s26 + $0x7a] sm:$0xff]  ;;  %v5016_v17 = vld [vmem:[%s5536_s26 + $0x90] sm:$0xff] }
 0x183   : > { %8031 = vst [vmem:[#allocation10_spill] sm:$0xff] %v6861_v26  ;;  %v6872_v37 = vadd.f32 %v1385_v30, %v984_v51  ;;  %v988_v42 = vadd.f32 %v987_v63, %v8034_v31  ;;  %v1389_v43 = vpop.f32.mrf.mxu0  ;;  %5063 = vmatmul.mubr.msk.f32.gmra.mxu0 %vm333_vm0, %v5015_v47  ;;  %2696 = vmatprep.mubr.f32.mxu1 %v5407_v18  ;;  %v8036_v51 = vld [vmem:[#allocation13_spill] sm:$0xff]  ;;  %v8038_v31 = vld [vmem:[#allocation14_spill] sm:$0xff] }
 0x184   : > { %v989_v10 = vpop.f32.mrf.mxu1  ;;  %3163 = vmatprep.mubr.f32.mxu0 %v5407_v18  ;;  %3548 = vmatpush1.msra.mxu1 %v5120_v24  ;;  %v6893_v24 = vld [vmem:[%s5536_s26 + $0x82] sm:$0xff] }
 0x185   : > { %8033 = vst [vmem:[#allocation11_spill] sm:$0xff] %v6872_v37  ;;  %v6882_v26 = vadd.f32 %v1389_v43, %v988_v42  ;;  %v990_v30 = vadd.f32 %v989_v10, %v8036_v51  ;;  %v1391_v37 = vpop.f32.mrf.mxu0  ;;  %4014 = vmatpush1.msra.mxu0 %v5200_v8  ;;  %8039 = vst [vmem:[#allocation14_spill] sm:$0xff] %v6893_v24  ;;  %v5017_v8 = vld [vmem:[%s5536_s26 + $0x98] sm:$0xff]  ;;  %v8041_v10 = vld [vmem:[#allocation15_spill] sm:$0xff] }
 0x186   : > { %v993_v63 = vpop.f32.mrf.mxu1  ;;  %4984 = vmatmul.mubr.msk.f32.gmra.mxu1 %vm333_vm0, %v6878_v19 }
 0x187   : > { %8035 = vst [vmem:[#allocation12_spill] sm:$0xff] %v6882_v26  ;;  %v6887_v47 = vadd.f32 %v1391_v37, %v990_v30  ;;  %v994_v7 = vadd.f32 %v993_v63, %v8038_v31  ;;  %v1395_v2 = vpop.f32.mrf.mxu0  ;;  %5064 = vmatmul.mubr.msk.f32.gmra.mxu0 %vm333_vm0, %v5016_v17  ;;  %2702 = vmatprep.mubr.f32.mxu1 %v5407_v18  ;;  %v8043_v63 = vld [vmem:[#allocation16_spill] sm:$0xff] }
 0x188   : > { %v995_v42 = vpop.f32.mrf.mxu1  ;;  %3169 = vmatprep.mubr.f32.mxu0 %v5407_v18  ;;  %v6908_v26 = vld [vmem:[%s5536_s26 + $0x92] sm:$0xff] }
 0x189   : > { %8037 = vst [vmem:[#allocation13_spill] sm:$0xff] %v6887_v47  ;;  %v6897_v43 = vadd.f32 %v1395_v2, %v994_v7  ;;  %v996_v37 = vadd.f32 %v995_v42, %v8041_v10  ;;  %v1397_v51 = vpop.f32.mrf.mxu0  ;;  %8044 = vst [vmem:[#allocation16_spill] sm:$0xff] %v6908_v26  ;;  %v5018_v7 = vld [vmem:[%s5536_s26 + $0xa8] sm:$0xff]  ;;  %v8046_v10 = vld [vmem:[#allocation17_spill] sm:$0xff] }
 0x18a   : > { %v999_v30 = vpop.f32.mrf.mxu1  ;;  %4985 = vmatmul.mubr.msk.f32.gmra.mxu1 %vm333_vm0, %v6893_v24  ;;  %v6923_v24 = vld [vmem:[%s5536_s26 + $0x9a] sm:$0xff] }
 0x18b   : > { %8040 = vst [vmem:[#allocation30_spill] sm:$0xff] %v6897_v43  ;;  %v6902_v17 = vadd.f32 %v1397_v51, %v996_v37  ;;  %v1000_v31 = vadd.f32 %v999_v30, %v8043_v63  ;;  %v1401_v47 = vpop.f32.mrf.mxu0  ;;  %5065 = vmatmul.mubr.msk.f32.gmra.mxu0 %vm333_vm0, %v5017_v8  ;;  %2708 = vmatprep.mubr.f32.mxu1 %v5407_v18  ;;  %v8048_v30 = vld [vmem:[#allocation18_spill] sm:$0xff] }
 0x18c   : > { %v1001_v2 = vpop.f32.mrf.mxu1  ;;  %3175 = vmatprep.mubr.f32.mxu0 %v5407_v18  ;;  %8049 = vst [vmem:[#allocation18_spill] sm:$0xff] %v6923_v24 }
 0x18d   : > { %8042 = vst [vmem:[#allocation15_spill] sm:$0xff] %v6902_v17  ;;  %v6912_v42 = vadd.f32 %v1401_v47, %v1000_v31  ;;  %v1002_v37 = vadd.f32 %v1001_v2, %v8046_v10  ;;  %v1403_v51 = vpop.f32.mrf.mxu0  ;;  %v5019_v31 = vld [vmem:[%s5536_s26 + $0xb0] sm:$0xff] }
 0x18e   : > { %v1005_v17 = vpop.f32.mrf.mxu1  ;;  %4986 = vmatmul.mubr.msk.f32.gmra.mxu1 %vm333_vm0, %v6908_v26  ;;  %v8051_v10 = vld [vmem:[#allocation19_spill] sm:$0xff] }
 0x18f   : > { %8045 = vst [vmem:[#allocation31_spill] sm:$0xff] %v6912_v42  ;;  %v6917_v8 = vadd.f32 %v1403_v51, %v1002_v37  ;;  %v1006_v63 = vadd.f32 %v1005_v17, %v8048_v30  ;;  %v1407_v43 = vpop.f32.mrf.mxu0  ;;  %5066 = vmatmul.mubr.msk.f32.gmra.mxu0 %vm333_vm0, %v5018_v7  ;;  %2714 = vmatprep.mubr.f32.mxu1 %v5407_v18  ;;  %v8053_v7 = vld [vmem:[#allocation20_spill] sm:$0xff]  ;;  %v6938_v26 = vld [vmem:[%s5536_s26 + $0xaa] sm:$0xff] }
 0x190   : > { %v1007_v47 = vpop.f32.mrf.mxu1  ;;  %3181 = vmatprep.mubr.f32.mxu0 %v5407_v18  ;;  %8054 = vst [vmem:[#allocation20_spill] sm:$0xff] %v6938_v26 }
 0x191   : > { %8047 = vst [vmem:[#allocation17_spill] sm:$0xff] %v6917_v8  ;;  %v6927_v2 = vadd.f32 %v1407_v43, %v1006_v63  ;;  %v1008_v37 = vadd.f32 %v1007_v47, %v8051_v10  ;;  %v1409_v51 = vpop.f32.mrf.mxu0  ;;  %v5020_v63 = vld [vmem:[%s5536_s26 + $0xc0] sm:$0xff] }
 0x192   : > { %v1011_v8 = vpop.f32.mrf.mxu1  ;;  %4987 = vmatmul.mubr.msk.f32.gmra.mxu1 %vm333_vm0, %v6923_v24  ;;  %v8056_v10 = vld [vmem:[#allocation21_spill] sm:$0xff]  ;;  %v6953_v24 = vld [vmem:[%s5536_s26 + $0xb2] sm:$0xff] }
 0x193   : > { %8050 = vst [vmem:[#allocation32_spill] sm:$0xff] %v6927_v2  ;;  %v6932_v17 = vadd.f32 %v1409_v51, %v1008_v37  ;;  %v1012_v30 = vadd.f32 %v1011_v8, %v8053_v7  ;;  %v1413_v42 = vpop.f32.mrf.mxu0  ;;  %5067 = vmatmul.mubr.msk.f32.gmra.mxu0 %vm333_vm0, %v5019_v31  ;;  %2720 = vmatprep.mubr.f32.mxu1 %v5407_v18  ;;  %v8058_v31 = vld [vmem:[#allocation22_spill] sm:$0xff] }
 0x194   : > { %v1013_v43 = vpop.f32.mrf.mxu1  ;;  %3187 = vmatprep.mubr.f32.mxu0 %v5407_v18  ;;  %8059 = vst [vmem:[#allocation22_spill] sm:$0xff] %v6953_v24 }
 0x195   : > { %8052 = vst [vmem:[#allocation19_spill] sm:$0xff] %v6932_v17  ;;  %v6942_v47 = vadd.f32 %v1413_v42, %v1012_v30  ;;  %v1014_v37 = vadd.f32 %v1013_v43, %v8056_v10  ;;  %v1415_v51 = vpop.f32.mrf.mxu0  ;;  %v5021_v30 = vld [vmem:[%s5536_s26 + $0xc8] sm:$0xff]  ;;  %v8061_v10 = vld [vmem:[#allocation23_spill] sm:$0xff] }
 0x196   : > { %v1017_v17 = vpop.f32.mrf.mxu1  ;;  %4988 = vmatmul.mubr.msk.f32.gmra.mxu1 %vm333_vm0, %v6938_v26  ;;  %v6968_v26 = vld [vmem:[%s5536_s26 + $0xc2] sm:$0xff] }
 0x197   : > { %8055 = vst [vmem:[#allocation33_spill] sm:$0xff] %v6942_v47  ;;  %v6947_v8 = vadd.f32 %v1415_v51, %v1014_v37  ;;  %v1018_v7 = vadd.f32 %v1017_v17, %v8058_v31  ;;  %v1419_v2 = vpop.f32.mrf.mxu0  ;;  %5068 = vmatmul.mubr.msk.f32.gmra.mxu0 %vm333_vm0, %v5020_v63  ;;  %2726 = vmatprep.mubr.f32.mxu1 %v5407_v18  ;;  %v8063_v63 = vld [vmem:[#allocation24_spill] sm:$0xff] }
 0x198   : > { %v1019_v42 = vpop.f32.mrf.mxu1  ;;  %3193 = vmatprep.mubr.f32.mxu0 %v5407_v18  ;;  %8064 = vst [vmem:[#allocation24_spill] sm:$0xff] %v6968_v26 }
 0x199   : > { %8057 = vst [vmem:[#allocation21_spill] sm:$0xff] %v6947_v8  ;;  %v6957_v43 = vadd.f32 %v1419_v2, %v1018_v7  ;;  %v1020_v37 = vadd.f32 %v1019_v42, %v8061_v10  ;;  %v1421_v51 = vpop.f32.mrf.mxu0  ;;  %v5022_v7 = vld [vmem:[%s5536_s26 + $0xd8] sm:$0xff]  ;;  %v8066_v10 = vld [vmem:[#allocation25_spill] sm:$0xff] }
 0x19a   : > { %v1023_v8 = vpop.f32.mrf.mxu1  ;;  %4989 = vmatmul.mubr.msk.f32.gmra.mxu1 %vm333_vm0, %v6953_v24  ;;  %v6983_v24 = vld [vmem:[%s5536_s26 + $0xca] sm:$0xff] }
 0x19b   : > { %8060 = vst [vmem:[#allocation34_spill] sm:$0xff] %v6957_v43  ;;  %v6962_v17 = vadd.f32 %v1421_v51, %v1020_v37  ;;  %v1024_v31 = vadd.f32 %v1023_v8, %v8063_v63  ;;  %v1425_v47 = vpop.f32.mrf.mxu0  ;;  %5069 = vmatmul.mubr.msk.f32.gmra.mxu0 %vm333_vm0, %v5021_v30  ;;  %2732 = vmatprep.mubr.f32.mxu1 %v5407_v18  ;;  %v8068_v30 = vld [vmem:[#allocation26_spill] sm:$0xff] }
 0x19c   : > { %v1025_v2 = vpop.f32.mrf.mxu1  ;;  %3199 = vmatprep.mubr.f32.mxu0 %v5407_v18 }
 0x19d   : > { %8062 = vst [vmem:[#allocation23_spill] sm:$0xff] %v6962_v17  ;;  %v6972_v42 = vadd.f32 %v1425_v47, %v1024_v31  ;;  %v1026_v37 = vadd.f32 %v1025_v2, %v8066_v10  ;;  %v1427_v51 = vpop.f32.mrf.mxu0  ;;  %v5023_v31 = vld [vmem:[%s5536_s26 + $0xe0] sm:$0xff]  ;;  %v8070_v10 = vld [vmem:[#allocation27_spill] sm:$0xff] }
 0x19e   : > { %v1029_v17 = vpop.f32.mrf.mxu1  ;;  %4990 = vmatmul.mubr.msk.f32.gmra.mxu1 %vm333_vm0, %v6968_v26  ;;  %v6998_v26 = vld [vmem:[%s5536_s26 + $0xda] sm:$0xff] }
 0x19f   : > { %8065 = vst [vmem:[#allocation35_spill] sm:$0xff] %v6972_v42  ;;  %v6977_v8 = vadd.f32 %v1427_v51, %v1026_v37  ;;  %v1030_v63 = vadd.f32 %v1029_v17, %v8068_v30  ;;  %v1431_v43 = vpop.f32.mrf.mxu0  ;;  %5070 = vmatmul.mubr.msk.f32.gmra.mxu0 %vm333_vm0, %v5022_v7  ;;  %2738 = vmatprep.mubr.f32.mxu1 %v5407_v18  ;;  %v8072_v7 = vld [vmem:[#allocation28_spill] sm:$0xff] }
 0x1a0   : > { %v1031_v47 = vpop.f32.mrf.mxu1  ;;  %3205 = vmatprep.mubr.f32.mxu0 %v5407_v18 }
 0x1a1   : > { %8067 = vst [vmem:[#allocation25_spill] sm:$0xff] %v6977_v8  ;;  %v6987_v2 = vadd.f32 %v1431_v43, %v1030_v63  ;;  %v1032_v37 = vadd.f32 %v1031_v47, %v8070_v10  ;;  %v1433_v51 = vpop.f32.mrf.mxu0  ;;  %v5024_v63 = vld [vmem:[%s5536_s26 + $0xf0] sm:$0xff]  ;;  %v8073_v10 = vld [vmem:[#allocation29_spill] sm:$0xff] }
 0x1a2   : > { %v1035_v8 = vpop.f32.mrf.mxu1  ;;  %4991 = vmatmul.mubr.msk.f32.gmra.mxu1 %vm333_vm0, %v6983_v24 }
 0x1a3   : > { %8069 = vst [vmem:[#allocation26_spill] sm:$0xff] %v6987_v2  ;;  %v6992_v17 = vadd.f32 %v1433_v51, %v1032_v37  ;;  %v1036_v30 = vadd.f32 %v1035_v8, %v8072_v7  ;;  %v1437_v42 = vpop.f32.mrf.mxu0  ;;  %5071 = vmatmul.mubr.msk.f32.gmra.mxu0 %vm333_vm0, %v5023_v31  ;;  %2744 = vmatprep.mubr.f32.mxu1 %v5407_v18  ;;  %v7013_v2 = vld [vmem:[%s5536_s26 + $0xe2] sm:$0xff] }
 0x1a4   : > { %v1037_v43 = vpop.f32.mrf.mxu1  ;;  %3211 = vmatprep.mubr.f32.mxu0 %v5407_v18 }
 0x1a5   : > { %8071 = vst [vmem:[#allocation27_spill] sm:$0xff] %v6992_v17  ;;  %v7002_v47 = vadd.f32 %v1437_v42, %v1036_v30  ;;  %v1038_v37 = vadd.f32 %v1037_v43, %v8073_v10  ;;  %v1439_v51 = vpop.f32.mrf.mxu0  ;;  %v5025_v30 = vld [vmem:[%s5536_s26 + $0xf8] sm:$0xff] }
 0x1a6   : > { %v1718_v17 = vpop.f32.mrf.mxu1  ;;  %4992 = vmatmul.mubr.msk.f32.gmra.mxu1 %vm333_vm0, %v6998_v26 }
 0x1a7   : > { %v7007_v8 = vadd.f32 %v1439_v51, %v1038_v37  ;;  %v1909_v31 = vadd.f32 %v1718_v17, %v6489_v55  ;;  %v2184_v7 = vpop.f32.mrf.mxu0  ;;  %5072 = vmatmul.mubr.msk.f32.gmra.mxu0 %vm333_vm0, %v5024_v63  ;;  %2750 = vmatprep.mubr.f32.mxu1 %v5407_v18 }
 0x1a8   : > { %v1720_v42 = vpop.f32.mrf.mxu1  ;;  %3217 = vmatprep.mubr.f32.mxu0 %v5407_v18 }
 0x1a9   : > { %8074 = vst [vmem:[#allocation28_spill] sm:$0xff] %v7007_v8  ;;  %v7017_v43 = vadd.f32 %v2184_v7, %v1909_v31  ;;  %v1910_v10 = vadd.f32 %v1720_v42, %v6494_v44  ;;  %v2186_v37 = vpop.f32.mrf.mxu0  ;;  %v7028_v8 = vld [vmem:[%s5536_s26 + $0xf2] sm:$0xff]  ;;  %v5026_v44 = vld [vmem:[%s5536_s26 + $0x108] sm:$0xff] }
 0x1aa   : > { %v1724_v51 = vpop.f32.mrf.mxu1  ;;  %4993 = vmatmul.mubr.msk.f32.gmra.mxu1 %vm333_vm0, %v7013_v2 }
 0x1ab   : > { %v7022_v55 = vadd.f32 %v2186_v37, %v1910_v10  ;;  %v1911_v17 = vadd.f32 %v1724_v51, %v6501_v32  ;;  %v2190_v63 = vpop.f32.mrf.mxu0  ;;  %5073 = vmatmul.mubr.msk.f32.gmra.mxu0 %vm333_vm0, %v5025_v30  ;;  %2756 = vmatprep.mubr.f32.mxu1 %v5407_v18 }
 0x1ac   : > { %v1726_v31 = vpop.f32.mrf.mxu1  ;;  %3223 = vmatprep.mubr.f32.mxu0 %v5407_v18 }
 0x1ad   : > { %8075 = vst [vmem:[#allocation29_spill] sm:$0xff] %v7022_v55  ;;  %v7032_v7 = vadd.f32 %v2190_v63, %v1911_v17  ;;  %v1912_v42 = vadd.f32 %v1726_v31, %v6506_v59  ;;  %v2192_v10 = vpop.f32.mrf.mxu0  ;;  %v7043_v55 = vld [vmem:[%s5536_s26 + $0xfa] sm:$0xff]  ;;  %v5027_v59 = vld [vmem:[%s5536_s26 + $0x110] sm:$0xff] }
 0x1ae   : > { %v1730_v37 = vpop.f32.mrf.mxu1  ;;  %4994 = vmatmul.mubr.msk.f32.gmra.mxu1 %vm333_vm0, %v7028_v8 }
 0x1af   : > { %v7037_v32 = vadd.f32 %v2192_v10, %v1912_v42  ;;  %v1913_v30 = vadd.f32 %v1730_v37, %v6513_v1  ;;  %v2196_v51 = vpop.f32.mrf.mxu0  ;;  %5074 = vmatmul.mubr.msk.f32.gmra.mxu0 %vm333_vm0, %v5026_v44  ;;  %2762 = vmatprep.mubr.f32.mxu1 %v5407_v18 }
 0x1b0   : > { %v1732_v17 = vpop.f32.mrf.mxu1  ;;  %3229 = vmatprep.mubr.f32.mxu0 %v5407_v18 }
 0x1b1   : > { %8076 = vst [vmem:[#allocation36_spill] sm:$0xff] %v7037_v32  ;;  %v7047_v63 = vadd.f32 %v2196_v51, %v1913_v30  ;;  %v1914_v31 = vadd.f32 %v1732_v17, %v6518_v20  ;;  %v2198_v42 = vpop.f32.mrf.mxu0  ;;  %v7058_v32 = vld [vmem:[%s5536_s26 + $0x10a] sm:$0xff]  ;;  %v5028_v20 = vld [vmem:[%s5536_s26 + $0x120] sm:$0xff] }
 0x1b2   : > { %v1736_v10 = vpop.f32.mrf.mxu1  ;;  %4995 = vmatmul.mubr.msk.f32.gmra.mxu1 %vm333_vm0, %v7043_v55 }
 0x1b3   : > { %v7052_v1 = vadd.f32 %v2198_v42, %v1914_v31  ;;  %v1915_v44 = vadd.f32 %v1736_v10, %v6525_v28  ;;  %v2202_v37 = vpop.f32.mrf.mxu0  ;;  %5075 = vmatmul.mubr.msk.f32.gmra.mxu0 %vm333_vm0, %v5027_v59  ;;  %2768 = vmatprep.mubr.f32.mxu1 %v5407_v18 }
 0x1b4   : > { %v1738_v30 = vpop.f32.mrf.mxu1  ;;  %3235 = vmatprep.mubr.f32.mxu0 %v5407_v18 }
 0x1b5   : > { %8077 = vst [vmem:[#allocation37_spill] sm:$0xff] %v7052_v1  ;;  %v7062_v51 = vadd.f32 %v2202_v37, %v1915_v44  ;;  %v1916_v17 = vadd.f32 %v1738_v30, %v6530_v45  ;;  %v2204_v31 = vpop.f32.mrf.mxu0  ;;  %v7073_v1 = vld [vmem:[%s5536_s26 + $0x112] sm:$0xff]  ;;  %v5029_v45 = vld [vmem:[%s5536_s26 + $0x128] sm:$0xff] }
 0x1b6   : > { %v1742_v42 = vpop.f32.mrf.mxu1  ;;  %4996 = vmatmul.mubr.msk.f32.gmra.mxu1 %vm333_vm0, %v7058_v32 }
 0x1b7   : > { %v7067_v28 = vadd.f32 %v2204_v31, %v1916_v17  ;;  %v1917_v59 = vadd.f32 %v1742_v42, %v6537_v54  ;;  %v2208_v10 = vpop.f32.mrf.mxu0  ;;  %5076 = vmatmul.mubr.msk.f32.gmra.mxu0 %vm333_vm0, %v5028_v20  ;;  %2774 = vmatprep.mubr.f32.mxu1 %v5407_v18 }
 0x1b8   : > { %v1744_v44 = vpop.f32.mrf.mxu1  ;;  %3241 = vmatprep.mubr.f32.mxu0 %v5407_v18 }
 0x1b9   : > { %8078 = vst [vmem:[#allocation38_spill] sm:$0xff] %v7067_v28  ;;  %v7077_v37 = vadd.f32 %v2208_v10, %v1917_v59  ;;  %v1918_v30 = vadd.f32 %v1744_v44, %v6542_v9  ;;  %v2210_v17 = vpop.f32.mrf.mxu0  ;;  %v7088_v28 = vld [vmem:[%s5536_s26 + $0x122] sm:$0xff]  ;;  %v5030_v9 = vld [vmem:[%s5536_s26 + $0x138] sm:$0xff] }
 0x1ba   : > { %v1748_v31 = vpop.f32.mrf.mxu1  ;;  %4997 = vmatmul.mubr.msk.f32.gmra.mxu1 %vm333_vm0, %v7073_v1 }
 0x1bb   : > { %v7082_v54 = vadd.f32 %v2210_v17, %v1918_v30  ;;  %v1919_v20 = vadd.f32 %v1748_v31, %v6549_v46  ;;  %v2214_v42 = vpop.f32.mrf.mxu0  ;;  %5077 = vmatmul.mubr.msk.f32.gmra.mxu0 %vm333_vm0, %v5029_v45  ;;  %2780 = vmatprep.mubr.f32.mxu1 %v5407_v18 }
 0x1bc   : > { %v1750_v59 = vpop.f32.mrf.mxu1  ;;  %3247 = vmatprep.mubr.f32.mxu0 %v5407_v18 }
 0x1bd   : > { %8079 = vst [vmem:[#allocation39_spill] sm:$0xff] %v7082_v54  ;;  %v7092_v10 = vadd.f32 %v2214_v42, %v1919_v20  ;;  %v1920_v44 = vadd.f32 %v1750_v59, %v6554_v53  ;;  %v2216_v30 = vpop.f32.mrf.mxu0  ;;  %v7103_v54 = vld [vmem:[%s5536_s26 + $0x12a] sm:$0xff]  ;;  %v5031_v53 = vld [vmem:[%s5536_s26 + $0x140] sm:$0xff] }
 0x1be   : > { %v1754_v17 = vpop.f32.mrf.mxu1  ;;  %4998 = vmatmul.mubr.msk.f32.gmra.mxu1 %vm333_vm0, %v7088_v28 }
 0x1bf   : > { %v7097_v46 = vadd.f32 %v2216_v30, %v1920_v44  ;;  %v1921_v45 = vadd.f32 %v1754_v17, %v6561_v39  ;;  %v2220_v31 = vpop.f32.mrf.mxu0  ;;  %5078 = vmatmul.mubr.msk.f32.gmra.mxu0 %vm333_vm0, %v5030_v9  ;;  %2786 = vmatprep.mubr.f32.mxu1 %v5407_v18 }
 0x1c0   : > { %v1756_v20 = vpop.f32.mrf.mxu1  ;;  %3253 = vmatprep.mubr.f32.mxu0 %v5407_v18 }
 0x1c1   : > { %8080 = vst [vmem:[#allocation40_spill] sm:$0xff] %v7097_v46  ;;  %v7107_v42 = vadd.f32 %v2220_v31, %v1921_v45  ;;  %v1922_v59 = vadd.f32 %v1756_v20, %v6566_v34  ;;  %v2222_v44 = vpop.f32.mrf.mxu0  ;;  %v7118_v46 = vld [vmem:[%s5536_s26 + $0x13a] sm:$0xff]  ;;  %v5032_v34 = vld [vmem:[%s5536_s26 + $0x150] sm:$0xff] }
 0x1c2   : > { %v1760_v30 = vpop.f32.mrf.mxu1  ;;  %4999 = vmatmul.mubr.msk.f32.gmra.mxu1 %vm333_vm0, %v7103_v54 }
 0x1c3   : > { %v7112_v39 = vadd.f32 %v2222_v44, %v1922_v59  ;;  %v1923_v9 = vadd.f32 %v1760_v30, %v6573_v4  ;;  %v2226_v17 = vpop.f32.mrf.mxu0  ;;  %5079 = vmatmul.mubr.msk.f32.gmra.mxu0 %vm333_vm0, %v5031_v53  ;;  %2792 = vmatprep.mubr.f32.mxu1 %v5407_v18 }
 0x1c4   : > { %v1762_v45 = vpop.f32.mrf.mxu1  ;;  %3259 = vmatprep.mubr.f32.mxu0 %v5407_v18 }
 0x1c5   : > { %8081 = vst [vmem:[#allocation41_spill] sm:$0xff] %v7112_v39  ;;  %v7122_v31 = vadd.f32 %v2226_v17, %v1923_v9  ;;  %v1924_v20 = vadd.f32 %v1762_v45, %v6578_v60  ;;  %v2228_v59 = vpop.f32.mrf.mxu0  ;;  %v7133_v39 = vld [vmem:[%s5536_s26 + $0x142] sm:$0xff]  ;;  %v5033_v60 = vld [vmem:[%s5536_s26 + $0x158] sm:$0xff] }
 0x1c6   : > { %v1766_v44 = vpop.f32.mrf.mxu1  ;;  %5000 = vmatmul.mubr.msk.f32.gmra.mxu1 %vm333_vm0, %v7118_v46 }
 0x1c7   : > { %v7127_v4 = vadd.f32 %v2228_v59, %v1924_v20  ;;  %v1925_v53 = vadd.f32 %v1766_v44, %v6585_v15  ;;  %v2232_v30 = vpop.f32.mrf.mxu0  ;;  %5080 = vmatmul.mubr.msk.f32.gmra.mxu0 %vm333_vm0, %v5032_v34  ;;  %2798 = vmatprep.mubr.f32.mxu1 %v5407_v18 }
 0x1c8   : > { %v1768_v9 = vpop.f32.mrf.mxu1  ;;  %3265 = vmatprep.mubr.f32.mxu0 %v5407_v18 }
 0x1c9   : > { %8082 = vst [vmem:[#allocation42_spill] sm:$0xff] %v7127_v4  ;;  %v7137_v17 = vadd.f32 %v2232_v30, %v1925_v53  ;;  %v1926_v45 = vadd.f32 %v1768_v9, %v6590_v6  ;;  %v2234_v20 = vpop.f32.mrf.mxu0  ;;  %v7148_v4 = vld [vmem:[%s5536_s26 + $0x152] sm:$0xff]  ;;  %v5034_v6 = vld [vmem:[%s5536_s26 + $0x168] sm:$0xff] }
 0x1ca   : > { %v1772_v59 = vpop.f32.mrf.mxu1  ;;  %5001 = vmatmul.mubr.msk.f32.gmra.mxu1 %vm333_vm0, %v7133_v39 }
 0x1cb   : > { %v7142_v15 = vadd.f32 %v2234_v20, %v1926_v45  ;;  %v1927_v34 = vadd.f32 %v1772_v59, %v6597_v61  ;;  %v2238_v44 = vpop.f32.mrf.mxu0  ;;  %5081 = vmatmul.mubr.msk.f32.gmra.mxu0 %vm333_vm0, %v5033_v60  ;;  %2804 = vmatprep.mubr.f32.mxu1 %v5407_v18 }
 0x1cc   : > { %v1774_v53 = vpop.f32.mrf.mxu1  ;;  %3271 = vmatprep.mubr.f32.mxu0 %v5407_v18 }
 0x1cd   : > { %8083 = vst [vmem:[#allocation43_spill] sm:$0xff] %v7142_v15  ;;  %v7152_v30 = vadd.f32 %v2238_v44, %v1927_v34  ;;  %v1928_v9 = vadd.f32 %v1774_v53, %v6602_v23  ;;  %v2240_v45 = vpop.f32.mrf.mxu0  ;;  %v7163_v15 = vld [vmem:[%s5536_s26 + $0x15a] sm:$0xff]  ;;  %v5035_v23 = vld [vmem:[%s5536_s26 + $0x170] sm:$0xff] }
 0x1ce   : > { %v1778_v20 = vpop.f32.mrf.mxu1  ;;  %5002 = vmatmul.mubr.msk.f32.gmra.mxu1 %vm333_vm0, %v7148_v4 }
 0x1cf   : > { %v7157_v61 = vadd.f32 %v2240_v45, %v1928_v9  ;;  %v1929_v60 = vadd.f32 %v1778_v20, %v6609_v5  ;;  %v2244_v59 = vpop.f32.mrf.mxu0  ;;  %5082 = vmatmul.mubr.msk.f32.gmra.mxu0 %vm333_vm0, %v5034_v6  ;;  %2810 = vmatprep.mubr.f32.mxu1 %v5407_v18 }
 0x1d0   : > { %v1780_v34 = vpop.f32.mrf.mxu1  ;;  %3277 = vmatprep.mubr.f32.mxu0 %v5407_v18 }
 0x1d1   : > { %8084 = vst [vmem:[#allocation44_spill] sm:$0xff] %v7157_v61  ;;  %v7167_v44 = vadd.f32 %v2244_v59, %v1929_v60  ;;  %v1930_v53 = vadd.f32 %v1780_v34, %v6614_v40  ;;  %v2246_v9 = vpop.f32.mrf.mxu0  ;;  %v7178_v61 = vld [vmem:[%s5536_s26 + $0x16a] sm:$0xff] }
 0x1d2   : > { %v1784_v45 = vpop.f32.mrf.mxu1  ;;  %5003 = vmatmul.mubr.msk.f32.gmra.mxu1 %vm333_vm0, %v7163_v15 }
 0x1d3   : > { %v7172_v5 = vadd.f32 %v2246_v9, %v1930_v53  ;;  %v1931_v6 = vadd.f32 %v1784_v45, %v6621_v25  ;;  %v2250_v20 = vpop.f32.mrf.mxu0  ;;  %5083 = vmatmul.mubr.msk.f32.gmra.mxu0 %vm333_vm0, %v5035_v23  ;;  %2816 = vmatprep.mubr.f32.mxu1 %v5407_v18  ;;  %v7193_v45 = vld [vmem:[%s5536_s26 + $0x172] sm:$0xff] }
 0x1d4   : > { %v1786_v60 = vpop.f32.mrf.mxu1  ;;  %3283 = vmatprep.mubr.f32.mxu0 %v5407_v18 }
 0x1d5   : > { %v7181_v40 = vadd.f32 %v2250_v20, %v1931_v6  ;;  %v1932_v59 = vadd.f32 %v1786_v60, %v6626_v21  ;;  %v2252_v34 = vpop.f32.mrf.mxu0 }
 0x1d6   : > { %v1790_v53 = vpop.f32.mrf.mxu1  ;;  %5004 = vmatmul.mubr.msk.f32.gmra.mxu1 %vm333_vm0, %v7178_v61 }
 0x1d7   : > { %v7186_v25 = vadd.f32 %v2252_v34, %v1932_v59  ;;  %v1933_v23 = vadd.f32 %v1790_v53, %v6633_v62  ;;  %v2256_v9 = vpop.f32.mrf.mxu0  ;;  %5084 = vmatmul.mubr.msk.f32.gmra.mxu0 %vm333_vm0, %v6644_v3  ;;  %2822 = vmatprep.mubr.f32.mxu1 %v5407_v18  ;;  %v7208_v53 = vld [vmem:[%s5536_s26 + $0x182] sm:$0xff] }
 0x1d8   : > { %v1792_v21 = vpop.f32.mrf.mxu1  ;;  %3289 = vmatprep.mubr.f32.mxu0 %v5407_v18 }
 0x1d9   : > { %v7196_v6 = vadd.f32 %v2256_v9, %v1933_v23  ;;  %v1934_v20 = vadd.f32 %v1792_v21, %v6638_v29  ;;  %v2258_v60 = vpop.f32.mrf.mxu0  ;;  %v5038_v29 = vld [vmem:[%s5536_s26 + $0x198] sm:$0xff] }
 0x1da   : > { %v1796_v59 = vpop.f32.mrf.mxu1  ;;  %5005 = vmatmul.mubr.msk.f32.gmra.mxu1 %vm333_vm0, %v7193_v45 }
 0x1db   : > { %v7201_v62 = vadd.f32 %v2258_v60, %v1934_v20  ;;  %v1935_v3 = vadd.f32 %v1796_v59, %v6648_v16  ;;  %v2262_v34 = vpop.f32.mrf.mxu0  ;;  %5085 = vmatmul.mubr.msk.f32.gmra.mxu0 %vm333_vm0, %v6659_v58  ;;  %2828 = vmatprep.mubr.f32.mxu1 %v5407_v18 }
 0x1dc   : > { %v1798_v23 = vpop.f32.mrf.mxu1  ;;  %3295 = vmatprep.mubr.f32.mxu0 %v5407_v18 }
 0x1dd   : > { %8085 = vst [vmem:[#allocation45_spill] sm:$0xff] %v7201_v62  ;;  %v7212_v9 = vadd.f32 %v2262_v34, %v1935_v3  ;;  %v1936_v21 = vadd.f32 %v1798_v23, %v6653_v33  ;;  %v2264_v20 = vpop.f32.mrf.mxu0  ;;  %v7223_v62 = vld [vmem:[%s5536_s26 + $0x18a] sm:$0xff]  ;;  %v5039_v33 = vld [vmem:[%s5536_s26 + $0x1a0] sm:$0xff] }
 0x1de   : > { %v1802_v16 = vpop.f32.mrf.mxu1  ;;  %5006 = vmatmul.mubr.msk.f32.gmra.mxu1 %vm333_vm0, %v7208_v53 }
 0x1df   : > { %v7217_v58 = vadd.f32 %v2264_v20, %v1936_v21  ;;  %v1937_v60 = vadd.f32 %v1802_v16, %v6663_v49  ;;  %v2268_v59 = vpop.f32.mrf.mxu0  ;;  %5086 = vmatmul.mubr.msk.f32.gmra.mxu0 %vm333_vm0, %v5038_v29  ;;  %2834 = vmatprep.mubr.f32.mxu1 %v5407_v18 }
 0x1e0   : > { %v1804_v3 = vpop.f32.mrf.mxu1  ;;  %3301 = vmatprep.mubr.f32.mxu0 %v5407_v18 }
 0x1e1   : > { %8086 = vst [vmem:[#allocation46_spill] sm:$0xff] %v7217_v58  ;;  %v7227_v34 = vadd.f32 %v2268_v59, %v1937_v60  ;;  %v1938_v23 = vadd.f32 %v1804_v3, %v6668_v35  ;;  %v2270_v21 = vpop.f32.mrf.mxu0  ;;  %v5088_v58 = vld [vmem:[%s5536_s26 + $0x31] sm:$0xff] }
 0x1e2   : > { %v1808_v20 = vpop.f32.mrf.mxu1  ;;  %5007 = vmatmul.mubr.msk.f32.gmra.mxu1 %vm333_vm0, %v7223_v62 }
 0x1e3   : > { %8087 = vst [vmem:[#allocation47_spill] sm:$0xff] %v7227_v34  ;;  %v7232_v49 = vadd.f32 %v2270_v21, %v1938_v23  ;;  %v1939_v29 = vadd.f32 %v1808_v20, %v6679_v22  ;;  %v2274_v16 = vpop.f32.mrf.mxu0  ;;  %5087 = vmatmul.mubr.msk.f32.gmra.mxu0 %vm333_vm0, %v5039_v33  ;;  %3581 = vmatprep.mubr.f32.mxu1 %v5407_v18  ;;  %v5089_v33 = vld [vmem:[%s5536_s26 + $0x39] sm:$0xff] }
 0x1e4   : > { %v1810_v60 = vpop.f32.mrf.mxu1  ;;  %4047 = vmatprep.mubr.f32.mxu0 %v5407_v18 }
 0x1e5   : > { %v7239_v35 = vadd.f32 %v2274_v16, %v1939_v29  ;;  %v1940_v59 = vadd.f32 %v1810_v60, %v6689_v12  ;;  %v2276_v3 = vpop.f32.mrf.mxu0 }
 0x1e6   : > { %v1814_v34 = vpop.f32.mrf.mxu1  ;;  %5136 = vmatmul.mubr.msk.f32.vlgmr.msra.gmra.mxu1 %vm333_vm0, %v5088_v58 }
 0x1e7   : > { %v7243_v23 = vadd.f32 %v2276_v3, %v1940_v59  ;;  %v1941_v22 = vadd.f32 %v1814_v34, %v6699_v52  ;;  %v2280_v21 = vpop.f32.mrf.mxu0  ;;  %5216 = vmatmul.mubr.msk.f32.vlgmr.msra.gmra.mxu0 %vm333_vm0, %v6719_v27  ;;  %3587 = vmatprep.mubr.f32.mxu1 %v5407_v18  ;;  %v5090_v27 = vld [vmem:[%s5536_s26 + $0x49] sm:$0xff] }
 0x1e8   : > { %v1816_v20 = vpop.f32.mrf.mxu1  ;;  %4053 = vmatprep.mubr.f32.mxu0 %v5407_v18 }
 0x1e9   : > { %v7251_v12 = vadd.f32 %v2280_v21, %v1941_v22  ;;  %v1942_v29 = vadd.f32 %v1816_v20, %v6713_v14  ;;  %v2282_v58 = vpop.f32.mrf.mxu0 }
 0x1ea   : > { %v1820_v16 = vpop.f32.mrf.mxu1  ;;  %5137 = vmatmul.mubr.msk.f32.gmra.mxu1 %vm333_vm0, %v5089_v33 }
 0x1eb   : > { %v7255_v52 = vadd.f32 %v2282_v58, %v1942_v29  ;;  %v1943_v34 = vadd.f32 %v1820_v16, %v6726_v38  ;;  %v2286_v60 = vpop.f32.mrf.mxu0  ;;  %5217 = vmatmul.mubr.msk.f32.gmra.mxu0 %vm333_vm0, %v6746_v11  ;;  %3593 = vmatprep.mubr.f32.mxu1 %v5407_v18  ;;  %v5091_v11 = vld [vmem:[%s5536_s26 + $0x51] sm:$0xff] }
 0x1ec   : > { %v1822_v59 = vpop.f32.mrf.mxu1  ;;  %4059 = vmatprep.mubr.f32.mxu0 %v5407_v18 }
 0x1ed   : > { %v7263_v14 = vadd.f32 %v2286_v60, %v1943_v34  ;;  %v1944_v3 = vadd.f32 %v1822_v59, %v6740_v0  ;;  %v2288_v22 = vpop.f32.mrf.mxu0 }
 0x1ee   : > { %v1826_v21 = vpop.f32.mrf.mxu1  ;;  %5138 = vmatmul.mubr.msk.f32.gmra.mxu1 %vm333_vm0, %v5090_v27 }
 0x1ef   : > { %v7267_v38 = vadd.f32 %v2288_v22, %v1944_v3  ;;  %v1945_v33 = vadd.f32 %v1826_v21, %v6753_v13  ;;  %v2292_v20 = vpop.f32.mrf.mxu0  ;;  %5218 = vmatmul.mubr.msk.f32.gmra.mxu0 %vm333_vm0, %v6773_v56  ;;  %3599 = vmatprep.mubr.f32.mxu1 %v5407_v18  ;;  %v5092_v56 = vld [vmem:[%s5536_s26 + $0x61] sm:$0xff] }
 0x1f0   : > { %v1828_v29 = vpop.f32.mrf.mxu1  ;;  %4065 = vmatprep.mubr.f32.mxu0 %v5407_v18 }
 0x1f1   : > { %v7275_v0 = vadd.f32 %v2292_v20, %v1945_v33  ;;  %v1946_v58 = vadd.f32 %v1828_v29, %v6767_v57  ;;  %v2294_v16 = vpop.f32.mrf.mxu0 }
 0x1f2   : > { %v1832_v34 = vpop.f32.mrf.mxu1  ;;  %5139 = vmatmul.mubr.msk.f32.gmra.mxu1 %vm333_vm0, %v5091_v11  ;;  %v5093_v11 = vld [vmem:[%s5536_s26 + $0x69] sm:$0xff] }
 0x1f3   : > { %v7279_v13 = vadd.f32 %v2294_v16, %v1946_v58  ;;  %v1947_v60 = vadd.f32 %v1832_v34, %v6780_v41  ;;  %v2298_v27 = vpop.f32.mrf.mxu0  ;;  %5219 = vmatmul.mubr.msk.f32.gmra.mxu0 %vm333_vm0, %v6800_v48  ;;  %3605 = vmatprep.mubr.f32.mxu1 %v5407_v18  ;;  %v8088_v48 = vld [vmem:[#allocation6_spill] sm:$0xff]  ;;  %v8089_v58 = vld [vmem:[#allocation5_spill] sm:$0xff] }
 0x1f4   : > { %v1834_v59 = vpop.f32.mrf.mxu1  ;;  %4071 = vmatprep.mubr.f32.mxu0 %v5407_v18 }
 0x1f5   : > { %v7287_v57 = vadd.f32 %v2298_v27, %v1947_v60  ;;  %v1948_v3 = vadd.f32 %v1834_v59, %v6794_v36  ;;  %v2300_v22 = vpop.f32.mrf.mxu0  ;;  %v8090_v27 = vld [vmem:[#allocation7_spill] sm:$0xff] }
 0x1f6   : > { %v1838_v21 = vpop.f32.mrf.mxu1  ;;  %5140 = vmatmul.mubr.msk.f32.gmra.mxu1 %vm333_vm0, %v5092_v56 }
 0x1f7   : > { %v7291_v41 = vadd.f32 %v2300_v22, %v1948_v3  ;;  %v1949_v33 = vadd.f32 %v1838_v21, %v6807_v50  ;;  %v2304_v20 = vpop.f32.mrf.mxu0  ;;  %5220 = vmatmul.mubr.msk.f32.gmra.mxu0 %vm333_vm0, %v8088_v48  ;;  %3611 = vmatprep.mubr.f32.mxu1 %v5407_v18  ;;  %v8091_v3 = vld [vmem:[#allocation9_spill] sm:$0xff] }
 0x1f8   : > { %v1840_v29 = vpop.f32.mrf.mxu1  ;;  %4077 = vmatprep.mubr.f32.mxu0 %v5407_v18  ;;  %v5094_v22 = vld [vmem:[%s5536_s26 + $0x79] sm:$0xff] }
 0x1f9   : > { %v7299_v36 = vadd.f32 %v2304_v20, %v1949_v33  ;;  %v1950_v16 = vadd.f32 %v1840_v29, %v8089_v58  ;;  %v2306_v34 = vpop.f32.mrf.mxu0  ;;  %v8092_v20 = vld [vmem:[#allocation8_spill] sm:$0xff] }
 0x1fa   : > { %v1844_v60 = vpop.f32.mrf.mxu1  ;;  %5141 = vmatmul.mubr.msk.f32.gmra.mxu1 %vm333_vm0, %v5093_v11 }
 0x1fb   : > { %v7303_v50 = vadd.f32 %v2306_v34, %v1950_v16  ;;  %v1951_v56 = vadd.f32 %v1844_v60, %v8090_v27  ;;  %v2310_v59 = vpop.f32.mrf.mxu0  ;;  %5221 = vmatmul.mubr.msk.f32.gmra.mxu0 %vm333_vm0, %v8091_v3  ;;  %3617 = vmatprep.mubr.f32.mxu1 %v5407_v18  ;;  %v8094_v16 = vld [vmem:[#allocation10_spill] sm:$0xff]  ;;  %v8096_v3 = vld [vmem:[#allocation11_spill] sm:$0xff] }
 0x1fc   : > { %v1846_v21 = vpop.f32.mrf.mxu1  ;;  %4083 = vmatprep.mubr.f32.mxu0 %v5407_v18  ;;  %v5095_v27 = vld [vmem:[%s5536_s26 + $0x81] sm:$0xff] }
 0x1fd   : > { %v7311_v33 = vadd.f32 %v2310_v59, %v1951_v56  ;;  %v1952_v48 = vadd.f32 %v1846_v21, %v8092_v20  ;;  %v2312_v11 = vpop.f32.mrf.mxu0 }
 0x1fe   : > { %v1850_v29 = vpop.f32.mrf.mxu1  ;;  %5142 = vmatmul.mubr.msk.f32.gmra.mxu1 %vm333_vm0, %v5094_v22 }
 0x1ff   : > { %v7315_v58 = vadd.f32 %v2312_v11, %v1952_v48  ;;  %v1953_v34 = vadd.f32 %v1850_v29, %v8094_v16  ;;  %v2316_v60 = vpop.f32.mrf.mxu0  ;;  %5222 = vmatmul.mubr.msk.f32.gmra.mxu0 %vm333_vm0, %v6878_v19  ;;  %3623 = vmatprep.mubr.f32.mxu1 %v5407_v18  ;;  %v8098_v11 = vld [vmem:[#allocation12_spill] sm:$0xff]  ;;  %v8099_v19 = vld [vmem:[#allocation14_spill] sm:$0xff] }
 0x200   : > { %v1852_v56 = vpop.f32.mrf.mxu1  ;;  %4089 = vmatprep.mubr.f32.mxu0 %v5407_v18 }
 0x201   : > { %8093 = vst [vmem:[#allocation6_spill] sm:$0xff] %v7315_v58  ;;  %v7323_v59 = vadd.f32 %v2316_v60, %v1953_v34  ;;  %v1954_v21 = vadd.f32 %v1852_v56, %v8096_v3  ;;  %v2318_v22 = vpop.f32.mrf.mxu0  ;;  %v5096_v58 = vld [vmem:[%s5536_s26 + $0x91] sm:$0xff]  ;;  %v8101_v56 = vld [vmem:[#allocation13_spill] sm:$0xff] }
 0x202   : > { %v1856_v20 = vpop.f32.mrf.mxu1  ;;  %5143 = vmatmul.mubr.msk.f32.gmra.mxu1 %vm333_vm0, %v5095_v27 }
 0x203   : > { %8095 = vst [vmem:[#allocation5_spill] sm:$0xff] %v7323_v59  ;;  %v7327_v48 = vadd.f32 %v2318_v22, %v1954_v21  ;;  %v1955_v29 = vadd.f32 %v1856_v20, %v8098_v11  ;;  %v2322_v16 = vpop.f32.mrf.mxu0  ;;  %5223 = vmatmul.mubr.msk.f32.gmra.mxu0 %vm333_vm0, %v8099_v19  ;;  %3629 = vmatprep.mubr.f32.mxu1 %v5407_v18  ;;  %v8103_v20 = vld [vmem:[#allocation30_spill] sm:$0xff]  ;;  %v8104_v19 = vld [vmem:[#allocation16_spill] sm:$0xff] }
 0x204   : > { %v1858_v34 = vpop.f32.mrf.mxu1  ;;  %4095 = vmatprep.mubr.f32.mxu0 %v5407_v18  ;;  %v5097_v59 = vld [vmem:[%s5536_s26 + $0x99] sm:$0xff] }
 0x205   : > { %8097 = vst [vmem:[#allocation7_spill] sm:$0xff] %v7327_v48  ;;  %v7335_v60 = vadd.f32 %v2322_v16, %v1955_v29  ;;  %v1956_v3 = vadd.f32 %v1858_v34, %v8101_v56  ;;  %v2324_v27 = vpop.f32.mrf.mxu0  ;;  %v8106_v34 = vld [vmem:[#allocation15_spill] sm:$0xff] }
 0x206   : > { %v1862_v21 = vpop.f32.mrf.mxu1  ;;  %5144 = vmatmul.mubr.msk.f32.gmra.mxu1 %vm333_vm0, %v5096_v58 }
 0x207   : > { %8100 = vst [vmem:[#allocation9_spill] sm:$0xff] %v7335_v60  ;;  %v7339_v22 = vadd.f32 %v2324_v27, %v1956_v3  ;;  %v1957_v11 = vadd.f32 %v1862_v21, %v8103_v20  ;;  %v2328_v48 = vpop.f32.mrf.mxu0  ;;  %5224 = vmatmul.mubr.msk.f32.gmra.mxu0 %vm333_vm0, %v8104_v19  ;;  %3635 = vmatprep.mubr.f32.mxu1 %v5407_v18  ;;  %v8108_v21 = vld [vmem:[#allocation31_spill] sm:$0xff]  ;;  %v8109_v19 = vld [vmem:[#allocation18_spill] sm:$0xff] }
 0x208   : > { %v1864_v29 = vpop.f32.mrf.mxu1  ;;  %4101 = vmatprep.mubr.f32.mxu0 %v5407_v18  ;;  %v5098_v60 = vld [vmem:[%s5536_s26 + $0xa9] sm:$0xff] }
 0x209   : > { %8102 = vst [vmem:[#allocation8_spill] sm:$0xff] %v7339_v22  ;;  %v7347_v16 = vadd.f32 %v2328_v48, %v1957_v11  ;;  %v1958_v56 = vadd.f32 %v1864_v29, %v8106_v34  ;;  %v2330_v58 = vpop.f32.mrf.mxu0  ;;  %v8111_v29 = vld [vmem:[#allocation17_spill] sm:$0xff] }
 0x20a   : > { %v1868_v3 = vpop.f32.mrf.mxu1  ;;  %5145 = vmatmul.mubr.msk.f32.gmra.mxu1 %vm333_vm0, %v5097_v59 }
 0x20b   : > { %8105 = vst [vmem:[#allocation10_spill] sm:$0xff] %v7347_v16  ;;  %v7351_v27 = vadd.f32 %v2330_v58, %v1958_v56  ;;  %v1959_v20 = vadd.f32 %v1868_v3, %v8108_v21  ;;  %v2334_v22 = vpop.f32.mrf.mxu0  ;;  %5225 = vmatmul.mubr.msk.f32.gmra.mxu0 %vm333_vm0, %v8109_v19  ;;  %3641 = vmatprep.mubr.f32.mxu1 %v5407_v18  ;;  %v8113_v3 = vld [vmem:[#allocation32_spill] sm:$0xff] }
 0x20c   : > { %v1870_v48 = vpop.f32.mrf.mxu1  ;;  %4107 = vmatprep.mubr.f32.mxu0 %v5407_v18  ;;  %v8114_v19 = vld [vmem:[#allocation20_spill] sm:$0xff] }
 0x20d   : > { %8107 = vst [vmem:[#allocation11_spill] sm:$0xff] %v7351_v27  ;;  %v7359_v11 = vadd.f32 %v2334_v22, %v1959_v20  ;;  %v1960_v34 = vadd.f32 %v1870_v48, %v8111_v29  ;;  %v2336_v59 = vpop.f32.mrf.mxu0  ;;  %v5099_v16 = vld [vmem:[%s5536_s26 + $0xb1] sm:$0xff] }
 0x20e   : > { %v1874_v56 = vpop.f32.mrf.mxu1  ;;  %5146 = vmatmul.mubr.msk.f32.gmra.mxu1 %vm333_vm0, %v5098_v60  ;;  %v8116_v48 = vld [vmem:[#allocation19_spill] sm:$0xff] }
 0x20f   : > { %8110 = vst [vmem:[#allocation12_spill] sm:$0xff] %v7359_v11  ;;  %v7363_v58 = vadd.f32 %v2336_v59, %v1960_v34  ;;  %v1961_v21 = vadd.f32 %v1874_v56, %v8113_v3  ;;  %v2340_v27 = vpop.f32.mrf.mxu0  ;;  %5226 = vmatmul.mubr.msk.f32.gmra.mxu0 %vm333_vm0, %v8114_v19  ;;  %3647 = vmatprep.mubr.f32.mxu1 %v5407_v18  ;;  %v8118_v56 = vld [vmem:[#allocation33_spill] sm:$0xff]  ;;  %v8119_v19 = vld [vmem:[#allocation22_spill] sm:$0xff] }
 0x210   : > { %v1876_v22 = vpop.f32.mrf.mxu1  ;;  %4113 = vmatprep.mubr.f32.mxu0 %v5407_v18  ;;  %v5100_v11 = vld [vmem:[%s5536_s26 + $0xc1] sm:$0xff] }
 0x211   : > { %8112 = vst [vmem:[#allocation14_spill] sm:$0xff] %v7363_v58  ;;  %v7371_v20 = vadd.f32 %v2340_v27, %v1961_v21  ;;  %v1962_v29 = vadd.f32 %v1876_v22, %v8116_v48  ;;  %v2342_v60 = vpop.f32.mrf.mxu0  ;;  %v8120_v22 = vld [vmem:[#allocation21_spill] sm:$0xff] }
 0x212   : > { %v1880_v34 = vpop.f32.mrf.mxu1  ;;  %5147 = vmatmul.mubr.msk.f32.gmra.mxu1 %vm333_vm0, %v5099_v16 }
 0x213   : > { %8115 = vst [vmem:[#allocation13_spill] sm:$0xff] %v7371_v20  ;;  %v7375_v59 = vadd.f32 %v2342_v60, %v1962_v29  ;;  %v1963_v3 = vadd.f32 %v1880_v34, %v8118_v56  ;;  %v2346_v58 = vpop.f32.mrf.mxu0  ;;  %5227 = vmatmul.mubr.msk.f32.gmra.mxu0 %vm333_vm0, %v8119_v19  ;;  %3653 = vmatprep.mubr.f32.mxu1 %v5407_v18  ;;  %v8122_v34 = vld [vmem:[#allocation34_spill] sm:$0xff]  ;;  %v8123_v19 = vld [vmem:[#allocation24_spill] sm:$0xff] }
 0x214   : > { %v1882_v27 = vpop.f32.mrf.mxu1  ;;  %4119 = vmatprep.mubr.f32.mxu0 %v5407_v18  ;;  %v5101_v20 = vld [vmem:[%s5536_s26 + $0xc9] sm:$0xff] }
 0x215   : > { %8117 = vst [vmem:[#allocation30_spill] sm:$0xff] %v7375_v59  ;;  %v7383_v21 = vadd.f32 %v2346_v58, %v1963_v3  ;;  %v1964_v48 = vadd.f32 %v1882_v27, %v8120_v22  ;;  %v2348_v16 = vpop.f32.mrf.mxu0  ;;  %v8124_v27 = vld [vmem:[#allocation23_spill] sm:$0xff] }
 0x216   : > { %v1886_v29 = vpop.f32.mrf.mxu1  ;;  %5148 = vmatmul.mubr.msk.f32.gmra.mxu1 %vm333_vm0, %v5100_v11 }
 0x217   : > { %v7387_v60 = vadd.f32 %v2348_v16, %v1964_v48  ;;  %v1965_v56 = vadd.f32 %v1886_v29, %v8122_v34  ;;  %v2352_v59 = vpop.f32.mrf.mxu0  ;;  %5228 = vmatmul.mubr.msk.f32.gmra.mxu0 %vm333_vm0, %v8123_v19  ;;  %3659 = vmatprep.mubr.f32.mxu1 %v5407_v18  ;;  %v8126_v29 = vld [vmem:[#allocation35_spill] sm:$0xff]  ;;  %v5102_v19 = vld [vmem:[%s5536_s26 + $0xd9] sm:$0xff] }
 0x218   : > { %v1888_v58 = vpop.f32.mrf.mxu1  ;;  %4125 = vmatprep.mubr.f32.mxu0 %v5407_v18 }
 0x219   : > { %8121 = vst [vmem:[#allocation16_spill] sm:$0xff] %v7387_v60  ;;  %v7395_v3 = vadd.f32 %v2352_v59, %v1965_v56  ;;  %v1966_v22 = vadd.f32 %v1888_v58, %v8124_v27  ;;  %v2354_v11 = vpop.f32.mrf.mxu0  ;;  %v8127_v58 = vld [vmem:[#allocation25_spill] sm:$0xff] }
 0x21a   : > { %v1892_v48 = vpop.f32.mrf.mxu1  ;;  %5149 = vmatmul.mubr.msk.f32.gmra.mxu1 %vm333_vm0, %v5101_v20 }
 0x21b   : > { %v7399_v16 = vadd.f32 %v2354_v11, %v1966_v22  ;;  %v1967_v34 = vadd.f32 %v1892_v48, %v8126_v29  ;;  %v2358_v60 = vpop.f32.mrf.mxu0  ;;  %5229 = vmatmul.mubr.msk.f32.gmra.mxu0 %vm333_vm0, %v6983_v24  ;;  %3665 = vmatprep.mubr.f32.mxu1 %v5407_v18  ;;  %v8128_v48 = vld [vmem:[#allocation26_spill] sm:$0xff] }
 0x21c   : > { %v1894_v59 = vpop.f32.mrf.mxu1  ;;  %4131 = vmatprep.mubr.f32.mxu0 %v5407_v18  ;;  %v5103_v24 = vld [vmem:[%s5536_s26 + $0xe1] sm:$0xff] }
 0x21d   : > { %8125 = vst [vmem:[#allocation15_spill] sm:$0xff] %v7399_v16  ;;  %v7407_v56 = vadd.f32 %v2358_v60, %v1967_v34  ;;  %v1968_v27 = vadd.f32 %v1894_v59, %v8127_v58  ;;  %v2360_v20 = vpop.f32.mrf.mxu0  ;;  %v8129_v59 = vld [vmem:[#allocation27_spill] sm:$0xff] }
 0x21e   : > { %v1898_v22 = vpop.f32.mrf.mxu1  ;;  %5150 = vmatmul.mubr.msk.f32.gmra.mxu1 %vm333_vm0, %v5102_v19 }
 0x21f   : > { %v7411_v11 = vadd.f32 %v2360_v20, %v1968_v27  ;;  %v1969_v29 = vadd.f32 %v1898_v22, %v8128_v48  ;;  %v2364_v16 = vpop.f32.mrf.mxu0  ;;  %5230 = vmatmul.mubr.msk.f32.gmra.mxu0 %vm333_vm0, %v6998_v26  ;;  %3671 = vmatprep.mubr.f32.mxu1 %v5407_v18  ;;  %v5104_v26 = vld [vmem:[%s5536_s26 + $0xf1] sm:$0xff] }
 0x220   : > { %v1900_v60 = vpop.f32.mrf.mxu1  ;;  %4137 = vmatprep.mubr.f32.mxu0 %v5407_v18 }
 0x221   : > { %v7419_v34 = vadd.f32 %v2364_v16, %v1969_v29  ;;  %v1970_v58 = vadd.f32 %v1900_v60, %v8129_v59  ;;  %v2366_v19 = vpop.f32.mrf.mxu0  ;;  %v8130_v60 = vld [vmem:[#allocation28_spill] sm:$0xff] }
 0x222   : > { %v1904_v27 = vpop.f32.mrf.mxu1  ;;  %5151 = vmatmul.mubr.msk.f32.gmra.mxu1 %vm333_vm0, %v5103_v24 }
 0x223   : > { %v7423_v20 = vadd.f32 %v2366_v19, %v1970_v58  ;;  %v1971_v22 = vadd.f32 %v1904_v27, %v7002_v47  ;;  %v2370_v48 = vpop.f32.mrf.mxu0  ;;  %5231 = vmatmul.mubr.msk.f32.gmra.mxu0 %vm333_vm0, %v7013_v2  ;;  %3677 = vmatprep.mubr.f32.mxu1 %v5407_v18  ;;  %v5105_v2 = vld [vmem:[%s5536_s26 + $0xf9] sm:$0xff] }
 0x224   : > { %v1906_v16 = vpop.f32.mrf.mxu1  ;;  %4143 = vmatprep.mubr.f32.mxu0 %v5407_v18 }
 0x225   : > { %v7431_v29 = vadd.f32 %v2370_v48, %v1971_v22  ;;  %v1972_v59 = vadd.f32 %v1906_v16, %v8130_v60  ;;  %v2372_v24 = vpop.f32.mrf.mxu0  ;;  %v8131_v16 = vld [vmem:[#allocation29_spill] sm:$0xff] }
 0x226   : > { %v2650_v58 = vpop.f32.mrf.mxu1  ;;  %5152 = vmatmul.mubr.msk.f32.gmra.mxu1 %vm333_vm0, %v5104_v26 }
 0x227   : > { %v7435_v47 = vadd.f32 %v2372_v24, %v1972_v59  ;;  %v2841_v19 = vadd.f32 %v2650_v58, %v7017_v43  ;;  %v3117_v27 = vpop.f32.mrf.mxu0  ;;  %5232 = vmatmul.mubr.msk.f32.gmra.mxu0 %vm333_vm0, %v7028_v8  ;;  %3683 = vmatprep.mubr.f32.mxu1 %v5407_v18  ;;  %v5106_v8 = vld [vmem:[%s5536_s26 + $0x109] sm:$0xff] }
 0x228   : > { %v2652_v22 = vpop.f32.mrf.mxu1  ;;  %4149 = vmatprep.mubr.f32.mxu0 %v5407_v18 }
 0x229   : > { %v7443_v48 = vadd.f32 %v3117_v27, %v2841_v19  ;;  %v2842_v60 = vadd.f32 %v2652_v22, %v8131_v16  ;;  %v3119_v26 = vpop.f32.mrf.mxu0  ;;  %v8132_v22 = vld [vmem:[#allocation36_spill] sm:$0xff] }
 0x22a   : > { %v2656_v59 = vpop.f32.mrf.mxu1  ;;  %5153 = vmatmul.mubr.msk.f32.gmra.mxu1 %vm333_vm0, %v5105_v2 }
 0x22b   : > { %v7447_v43 = vadd.f32 %v3119_v26, %v2842_v60  ;;  %v2843_v24 = vadd.f32 %v2656_v59, %v7032_v7  ;;  %v3123_v58 = vpop.f32.mrf.mxu0  ;;  %5233 = vmatmul.mubr.msk.f32.gmra.mxu0 %vm333_vm0, %v7043_v55  ;;  %3689 = vmatprep.mubr.f32.mxu1 %v5407_v18  ;;  %v5107_v55 = vld [vmem:[%s5536_s26 + $0x111] sm:$0xff] }
 0x22c   : > { %v2658_v19 = vpop.f32.mrf.mxu1  ;;  %4155 = vmatprep.mubr.f32.mxu0 %v5407_v18 }
 0x22d   : > { %v7455_v27 = vadd.f32 %v3123_v58, %v2843_v24  ;;  %v2844_v16 = vadd.f32 %v2658_v19, %v8132_v22  ;;  %v3125_v2 = vpop.f32.mrf.mxu0  ;;  %v8133_v19 = vld [vmem:[#allocation37_spill] sm:$0xff] }
 0x22e   : > { %v2662_v60 = vpop.f32.mrf.mxu1  ;;  %5154 = vmatmul.mubr.msk.f32.gmra.mxu1 %vm333_vm0, %v5106_v8 }
 0x22f   : > { %v7459_v7 = vadd.f32 %v3125_v2, %v2844_v16  ;;  %v2845_v26 = vadd.f32 %v2662_v60, %v7047_v63  ;;  %v3129_v59 = vpop.f32.mrf.mxu0  ;;  %5234 = vmatmul.mubr.msk.f32.gmra.mxu0 %vm333_vm0, %v7058_v32  ;;  %3695 = vmatprep.mubr.f32.mxu1 %v5407_v18  ;;  %v5108_v32 = vld [vmem:[%s5536_s26 + $0x121] sm:$0xff] }
 0x230   : > { %v2664_v24 = vpop.f32.mrf.mxu1  ;;  %4161 = vmatprep.mubr.f32.mxu0 %v5407_v18 }
 0x231   : > { %v7467_v58 = vadd.f32 %v3129_v59, %v2845_v26  ;;  %v2846_v22 = vadd.f32 %v2664_v24, %v8133_v19  ;;  %v3131_v8 = vpop.f32.mrf.mxu0  ;;  %v8134_v24 = vld [vmem:[#allocation38_spill] sm:$0xff] }
 0x232   : > { %v2668_v16 = vpop.f32.mrf.mxu1  ;;  %5155 = vmatmul.mubr.msk.f32.gmra.mxu1 %vm333_vm0, %v5107_v55 }
 0x233   : > { %v7471_v63 = vadd.f32 %v3131_v8, %v2846_v22  ;;  %v2847_v2 = vadd.f32 %v2668_v16, %v7062_v51  ;;  %v3135_v60 = vpop.f32.mrf.mxu0  ;;  %5235 = vmatmul.mubr.msk.f32.gmra.mxu0 %vm333_vm0, %v7073_v1  ;;  %3701 = vmatprep.mubr.f32.mxu1 %v5407_v18  ;;  %v5109_v1 = vld [vmem:[%s5536_s26 + $0x129] sm:$0xff] }
 0x234   : > { %v2670_v26 = vpop.f32.mrf.mxu1  ;;  %4167 = vmatprep.mubr.f32.mxu0 %v5407_v18 }
 0x235   : > { %v7479_v59 = vadd.f32 %v3135_v60, %v2847_v2  ;;  %v2848_v19 = vadd.f32 %v2670_v26, %v8134_v24  ;;  %v3137_v55 = vpop.f32.mrf.mxu0  ;;  %v8135_v26 = vld [vmem:[#allocation39_spill] sm:$0xff] }
 0x236   : > { %v2674_v22 = vpop.f32.mrf.mxu1  ;;  %5156 = vmatmul.mubr.msk.f32.gmra.mxu1 %vm333_vm0, %v5108_v32 }
 0x237   : > { %v7483_v51 = vadd.f32 %v3137_v55, %v2848_v19  ;;  %v2849_v8 = vadd.f32 %v2674_v22, %v7077_v37  ;;  %v3141_v16 = vpop.f32.mrf.mxu0  ;;  %5236 = vmatmul.mubr.msk.f32.gmra.mxu0 %vm333_vm0, %v7088_v28  ;;  %3707 = vmatprep.mubr.f32.mxu1 %v5407_v18  ;;  %v5110_v28 = vld [vmem:[%s5536_s26 + $0x139] sm:$0xff] }
 0x238   : > { %v2676_v2 = vpop.f32.mrf.mxu1  ;;  %4173 = vmatprep.mubr.f32.mxu0 %v5407_v18 }
 0x239   : > { %v7491_v60 = vadd.f32 %v3141_v16, %v2849_v8  ;;  %v2850_v24 = vadd.f32 %v2676_v2, %v8135_v26  ;;  %v3143_v32 = vpop.f32.mrf.mxu0  ;;  %v8136_v2 = vld [vmem:[#allocation40_spill] sm:$0xff] }
 0x23a   : > { %v2680_v19 = vpop.f32.mrf.mxu1  ;;  %5157 = vmatmul.mubr.msk.f32.gmra.mxu1 %vm333_vm0, %v5109_v1 }
 0x23b   : > { %v7495_v37 = vadd.f32 %v3143_v32, %v2850_v24  ;;  %v2851_v55 = vadd.f32 %v2680_v19, %v7092_v10  ;;  %v3147_v22 = vpop.f32.mrf.mxu0  ;;  %5237 = vmatmul.mubr.msk.f32.gmra.mxu0 %vm333_vm0, %v7103_v54  ;;  %3713 = vmatprep.mubr.f32.mxu1 %v5407_v18  ;;  %v5111_v54 = vld [vmem:[%s5536_s26 + $0x141] sm:$0xff] }
 0x23c   : > { %v2682_v8 = vpop.f32.mrf.mxu1  ;;  %4179 = vmatprep.mubr.f32.mxu0 %v5407_v18 }
 0x23d   : > { %v7503_v16 = vadd.f32 %v3147_v22, %v2851_v55  ;;  %v2852_v26 = vadd.f32 %v2682_v8, %v8136_v2  ;;  %v3149_v1 = vpop.f32.mrf.mxu0  ;;  %v8137_v8 = vld [vmem:[#allocation41_spill] sm:$0xff] }
 0x23e   : > { %v2686_v24 = vpop.f32.mrf.mxu1  ;;  %5158 = vmatmul.mubr.msk.f32.gmra.mxu1 %vm333_vm0, %v5110_v28 }
 0x23f   : > { %v7507_v10 = vadd.f32 %v3149_v1, %v2852_v26  ;;  %v2853_v32 = vadd.f32 %v2686_v24, %v7107_v42  ;;  %v3153_v19 = vpop.f32.mrf.mxu0  ;;  %5238 = vmatmul.mubr.msk.f32.gmra.mxu0 %vm333_vm0, %v7118_v46  ;;  %3719 = vmatprep.mubr.f32.mxu1 %v5407_v18  ;;  %v5112_v46 = vld [vmem:[%s5536_s26 + $0x151] sm:$0xff] }
 0x240   : > { %v2688_v55 = vpop.f32.mrf.mxu1  ;;  %4185 = vmatprep.mubr.f32.mxu0 %v5407_v18 }
 0x241   : > { %v7515_v22 = vadd.f32 %v3153_v19, %v2853_v32  ;;  %v2854_v2 = vadd.f32 %v2688_v55, %v8137_v8  ;;  %v3155_v28 = vpop.f32.mrf.mxu0  ;;  %v8138_v55 = vld [vmem:[#allocation42_spill] sm:$0xff] }
 0x242   : > { %v2692_v26 = vpop.f32.mrf.mxu1  ;;  %5159 = vmatmul.mubr.msk.f32.gmra.mxu1 %vm333_vm0, %v5111_v54 }
 0x243   : > { %v7519_v42 = vadd.f32 %v3155_v28, %v2854_v2  ;;  %v2855_v1 = vadd.f32 %v2692_v26, %v7122_v31  ;;  %v3159_v24 = vpop.f32.mrf.mxu0  ;;  %5239 = vmatmul.mubr.msk.f32.gmra.mxu0 %vm333_vm0, %v7133_v39  ;;  %3725 = vmatprep.mubr.f32.mxu1 %v5407_v18  ;;  %v5113_v39 = vld [vmem:[%s5536_s26 + $0x159] sm:$0xff] }
 0x244   : > { %v2694_v32 = vpop.f32.mrf.mxu1  ;;  %4191 = vmatprep.mubr.f32.mxu0 %v5407_v18 }
 0x245   : > { %v7527_v19 = vadd.f32 %v3159_v24, %v2855_v1  ;;  %v2856_v8 = vadd.f32 %v2694_v32, %v8138_v55  ;;  %v3161_v54 = vpop.f32.mrf.mxu0  ;;  %v8139_v32 = vld [vmem:[#allocation43_spill] sm:$0xff] }
 0x246   : > { %v2698_v2 = vpop.f32.mrf.mxu1  ;;  %5160 = vmatmul.mubr.msk.f32.gmra.mxu1 %vm333_vm0, %v5112_v46 }
 0x247   : > { %v7531_v31 = vadd.f32 %v3161_v54, %v2856_v8  ;;  %v2857_v28 = vadd.f32 %v2698_v2, %v7137_v17  ;;  %v3165_v26 = vpop.f32.mrf.mxu0  ;;  %5240 = vmatmul.mubr.msk.f32.gmra.mxu0 %vm333_vm0, %v7148_v4  ;;  %3731 = vmatprep.mubr.f32.mxu1 %v5407_v18  ;;  %v5114_v4 = vld [vmem:[%s5536_s26 + $0x169] sm:$0xff] }
 0x248   : > { %v2700_v1 = vpop.f32.mrf.mxu1  ;;  %4197 = vmatprep.mubr.f32.mxu0 %v5407_v18 }
 0x249   : > { %v7539_v24 = vadd.f32 %v3165_v26, %v2857_v28  ;;  %v2858_v55 = vadd.f32 %v2700_v1, %v8139_v32  ;;  %v3167_v46 = vpop.f32.mrf.mxu0  ;;  %v8140_v1 = vld [vmem:[#allocation44_spill] sm:$0xff] }
 0x24a   : > { %v2704_v8 = vpop.f32.mrf.mxu1  ;;  %5161 = vmatmul.mubr.msk.f32.gmra.mxu1 %vm333_vm0, %v5113_v39 }
 0x24b   : > { %v7543_v17 = vadd.f32 %v3167_v46, %v2858_v55  ;;  %v2859_v54 = vadd.f32 %v2704_v8, %v7152_v30  ;;  %v3171_v2 = vpop.f32.mrf.mxu0  ;;  %5241 = vmatmul.mubr.msk.f32.gmra.mxu0 %vm333_vm0, %v7163_v15  ;;  %3737 = vmatprep.mubr.f32.mxu1 %v5407_v18  ;;  %v5115_v15 = vld [vmem:[%s5536_s26 + $0x171] sm:$0xff] }
 0x24c   : > { %v2706_v28 = vpop.f32.mrf.mxu1  ;;  %4203 = vmatprep.mubr.f32.mxu0 %v5407_v18 }
 0x24d   : > { %v7551_v26 = vadd.f32 %v3171_v2, %v2859_v54  ;;  %v2860_v32 = vadd.f32 %v2706_v28, %v8140_v1  ;;  %v3173_v39 = vpop.f32.mrf.mxu0 }
 0x24e   : > { %v2710_v55 = vpop.f32.mrf.mxu1  ;;  %5162 = vmatmul.mubr.msk.f32.gmra.mxu1 %vm333_vm0, %v5114_v4 }
 0x24f   : > { %v7555_v30 = vadd.f32 %v3173_v39, %v2860_v32  ;;  %v2861_v46 = vadd.f32 %v2710_v55, %v7167_v44  ;;  %v3177_v8 = vpop.f32.mrf.mxu0  ;;  %5242 = vmatmul.mubr.msk.f32.gmra.mxu0 %vm333_vm0, %v7178_v61  ;;  %3743 = vmatprep.mubr.f32.mxu1 %v5407_v18  ;;  %v5116_v61 = vld [vmem:[%s5536_s26 + $0x181] sm:$0xff] }
 0x250   : > { %v2712_v54 = vpop.f32.mrf.mxu1  ;;  %4209 = vmatprep.mubr.f32.mxu0 %v5407_v18 }
 0x251   : > { %v7563_v2 = vadd.f32 %v3177_v8, %v2861_v46  ;;  %v2862_v28 = vadd.f32 %v2712_v54, %v7172_v5  ;;  %v3179_v4 = vpop.f32.mrf.mxu0 }
 0x252   : > { %v2716_v1 = vpop.f32.mrf.mxu1  ;;  %5163 = vmatmul.mubr.msk.f32.gmra.mxu1 %vm333_vm0, %v5115_v15 }
 0x253   : > { %v7567_v44 = vadd.f32 %v3179_v4, %v2862_v28  ;;  %v2863_v32 = vadd.f32 %v2716_v1, %v7181_v40  ;;  %v3183_v39 = vpop.f32.mrf.mxu0  ;;  %5243 = vmatmul.mubr.msk.f32.gmra.mxu0 %vm333_vm0, %v7193_v45  ;;  %3749 = vmatprep.mubr.f32.mxu1 %v5407_v18  ;;  %v5117_v45 = vld [vmem:[%s5536_s26 + $0x189] sm:$0xff]  ;;  %v8141_v1 = vld [vmem:[#allocation45_spill] sm:$0xff] }
 0x254   : > { %v2718_v55 = vpop.f32.mrf.mxu1  ;;  %4215 = vmatprep.mubr.f32.mxu0 %v5407_v18 }
 0x255   : > { %v7575_v5 = vadd.f32 %v3183_v39, %v2863_v32  ;;  %v2864_v46 = vadd.f32 %v2718_v55, %v7186_v25  ;;  %v3185_v8 = vpop.f32.mrf.mxu0 }
 0x256   : > { %v2722_v15 = vpop.f32.mrf.mxu1  ;;  %5164 = vmatmul.mubr.msk.f32.gmra.mxu1 %vm333_vm0, %v5116_v61 }
 0x257   : > { %v7579_v40 = vadd.f32 %v3185_v8, %v2864_v46  ;;  %v2865_v54 = vadd.f32 %v2722_v15, %v7196_v6  ;;  %v3189_v28 = vpop.f32.mrf.mxu0  ;;  %5244 = vmatmul.mubr.msk.f32.gmra.mxu0 %vm333_vm0, %v7208_v53  ;;  %3755 = vmatprep.mubr.f32.mxu1 %v5407_v18  ;;  %v5118_v46 = vld [vmem:[%s5536_s26 + $0x199] sm:$0xff] }
 0x258   : > { %v2724_v4 = vpop.f32.mrf.mxu1  ;;  %4221 = vmatprep.mubr.f32.mxu0 %v5407_v18  ;;  %v5198_v15 = vld [vmem:[%s5536_s26 + $0x19a] sm:$0xff] }
 0x259   : > { %v7587_v25 = vadd.f32 %v3189_v28, %v2865_v54  ;;  %v2866_v32 = vadd.f32 %v2724_v4, %v8141_v1  ;;  %v3191_v39 = vpop.f32.mrf.mxu0  ;;  %v8143_v28 = vld [vmem:[#allocation46_spill] sm:$0xff] }
 0x25a   : > { %v2728_v61 = vpop.f32.mrf.mxu1  ;;  %5165 = vmatmul.mubr.msk.f32.gmra.mxu1 %vm333_vm0, %v5117_v45 }
 0x25b   : > { %v7591_v6 = vadd.f32 %v3191_v39, %v2866_v32  ;;  %v2867_v55 = vadd.f32 %v2728_v61, %v7212_v9  ;;  %v3195_v53 = vpop.f32.mrf.mxu0  ;;  %5245 = vmatmul.mubr.msk.f32.gmra.mxu0 %vm333_vm0, %v7223_v62  ;;  %3761 = vmatprep.mubr.f32.mxu1 %v5407_v18  ;;  %v8144_v62 = vld [vmem:[#allocation47_spill] sm:$0xff]  ;;  %v5119_v61 = vld [vmem:[%s5536_s26 + $0x1a1] sm:$0xff] }
 0x25c   : > { %v2730_v8 = vpop.f32.mrf.mxu1  ;;  %4227 = vmatprep.mubr.f32.mxu0 %v5407_v18 }
 0x25d   : > { %8142 = vst [vmem:[#allocation31_spill] sm:$0xff] %v7591_v6  ;;  %v7600_v54 = vadd.f32 %v3195_v53, %v2867_v55  ;;  %v2868_v45 = vadd.f32 %v2730_v8, %v8143_v28  ;;  %v3197_v4 = vpop.f32.mrf.mxu0  ;;  %v5199_v55 = vld [vmem:[%s5536_s26 + $0x1a2] sm:$0xff] }
 0x25e   : > { %v2734_v1 = vpop.f32.mrf.mxu1  ;;  %5166 = vmatmul.mubr.msk.f32.gmra.mxu1 %vm333_vm0, %v5118_v46 }
 0x25f   : > { %v7604_v9 = vadd.f32 %v3197_v4, %v2868_v45  ;;  %v2869_v32 = vadd.f32 %v2734_v1, %v8144_v62  ;;  %v3201_v39 = vpop.f32.mrf.mxu0  ;;  %5246 = vmatmul.mubr.msk.f32.gmra.mxu0 %vm333_vm0, %v5198_v15  ;;  %3767 = vmatprep.mubr.f32.mxu1 %v5407_v18 }
 0x260   : > { %v2736_v6 = vpop.f32.mrf.mxu1  ;;  %4233 = vmatprep.mubr.f32.mxu0 %v5407_v18 }
 0x261   : > { %v7612_v53 = vadd.f32 %v3201_v39, %v2869_v32  ;;  %v2870_v8 = vadd.f32 %v2736_v6, %v7232_v49  ;;  %v3203_v28 = vpop.f32.mrf.mxu0 }
 0x262   : > { %v2740_v46 = vpop.f32.mrf.mxu1  ;;  %5167 = vmatmul.mubr.msk.f32.gmra.mxu1 %vm333_vm0, %v5119_v61 }
 0x263   : > { %8145 = vst [vmem:[#allocation18_spill] sm:$0xff] %v7612_v53  ;;  %v7616_v45 = vadd.f32 %v3203_v28, %v2870_v8  ;;  %v2871_v4 = vadd.f32 %v2740_v46, %v7239_v35  ;;  %v3207_v15 = vpop.f32.mrf.mxu0  ;;  %5247 = vmatmul.mubr.msk.f32.gmra.mxu0 %vm333_vm0, %v5199_v55 }
 0x264   : > { %v2742_v1 = vpop.f32.mrf.mxu1 }
 0x265   : > { %v7620_v62 = vadd.f32 %v3207_v15, %v2871_v4  ;;  %v2872_v18 = vadd.f32 %v2742_v1, %v7243_v23  ;;  %v3209_v32 = vpop.f32.mrf.mxu0 }
 0x266   : > { %v2746_v39 = vpop.f32.mrf.mxu1 }
 0x267   : > { %v7623_v53 = vadd.f32 %v3209_v32, %v2872_v18  ;;  %v2873_v49 = vadd.f32 %v2746_v39, %v7251_v12  ;;  %v3213_v6 = vpop.f32.mrf.mxu0 }
 0x268   : > { %v2748_v61 = vpop.f32.mrf.mxu1 }
 0x269   : > { %v7626_v8 = vadd.f32 %v3213_v6, %v2873_v49  ;;  %v2874_v35 = vadd.f32 %v2748_v61, %v7255_v52  ;;  %v3215_v28 = vpop.f32.mrf.mxu0 }
 0x26a   : > { %v2752_v46 = vpop.f32.mrf.mxu1 }
 0x26b   : > { %v7629_v55 = vadd.f32 %v3215_v28, %v2874_v35  ;;  %v2875_v4 = vadd.f32 %v2752_v46, %v7263_v14  ;;  %v3219_v15 = vpop.f32.mrf.mxu0 }
 0x26c   : > { %v2754_v23 = vpop.f32.mrf.mxu1 }
 0x26d   : > { %v7632_v1 = vadd.f32 %v3219_v15, %v2875_v4  ;;  %v2876_v18 = vadd.f32 %v2754_v23, %v7267_v38  ;;  %v3221_v32 = vpop.f32.mrf.mxu0 }
 0x26e   : > { %v2758_v12 = vpop.f32.mrf.mxu1 }
 0x26f   : > { %v7635_v39 = vadd.f32 %v3221_v32, %v2876_v18  ;;  %v2877_v49 = vadd.f32 %v2758_v12, %v7275_v0  ;;  %v3225_v6 = vpop.f32.mrf.mxu0 }
 0x270   : > { %v2760_v52 = vpop.f32.mrf.mxu1 }
 0x271   : > { %v7638_v61 = vadd.f32 %v3225_v6, %v2877_v49  ;;  %v2878_v35 = vadd.f32 %v2760_v52, %v7279_v13  ;;  %v3227_v28 = vpop.f32.mrf.mxu0 }
 0x272   : > { %v2764_v14 = vpop.f32.mrf.mxu1 }
 0x273   : > { %v7641_v46 = vadd.f32 %v3227_v28, %v2878_v35  ;;  %v2879_v4 = vadd.f32 %v2764_v14, %v7287_v57  ;;  %v3231_v15 = vpop.f32.mrf.mxu0 }
 0x274   : > { %v2766_v38 = vpop.f32.mrf.mxu1 }
 0x275   : > { %v7644_v23 = vadd.f32 %v3231_v15, %v2879_v4  ;;  %v2880_v18 = vadd.f32 %v2766_v38, %v7291_v41  ;;  %v3233_v32 = vpop.f32.mrf.mxu0 }
 0x276   : > { %v2770_v0 = vpop.f32.mrf.mxu1 }
 0x277   : > { %v7647_v12 = vadd.f32 %v3233_v32, %v2880_v18  ;;  %v2881_v49 = vadd.f32 %v2770_v0, %v7299_v36  ;;  %v3237_v6 = vpop.f32.mrf.mxu0  ;;  %v8150_v18 = vld [vmem:[#allocation6_spill] sm:$0xff] }
 0x278   : > { %v2772_v13 = vpop.f32.mrf.mxu1 }
 0x279   : > { %8146 = vst [vmem:[#allocation17_spill] sm:$0xff] %v7647_v12  ;;  %v7650_v52 = vadd.f32 %v3237_v6, %v2881_v49  ;;  %v2882_v35 = vadd.f32 %v2772_v13, %v7303_v50  ;;  %v3239_v28 = vpop.f32.mrf.mxu0  ;;  %v8152_v49 = vld [vmem:[#allocation5_spill] sm:$0xff] }
 0x27a   : > { %v2776_v57 = vpop.f32.mrf.mxu1 }
 0x27b   : > { %8147 = vst [vmem:[#allocation32_spill] sm:$0xff] %v7650_v52  ;;  %v7653_v14 = vadd.f32 %v3239_v28, %v2882_v35  ;;  %v2883_v4 = vadd.f32 %v2776_v57, %v7311_v33  ;;  %v3243_v15 = vpop.f32.mrf.mxu0  ;;  %v8154_v35 = vld [vmem:[#allocation7_spill] sm:$0xff] }
 0x27c   : > { %v2778_v41 = vpop.f32.mrf.mxu1 }
 0x27d   : > { %8148 = vst [vmem:[#allocation20_spill] sm:$0xff] %v7653_v14  ;;  %v7656_v38 = vadd.f32 %v3243_v15, %v2883_v4  ;;  %v2884_v32 = vadd.f32 %v2778_v41, %v8150_v18  ;;  %v3245_v12 = vpop.f32.mrf.mxu0  ;;  %v8156_v4 = vld [vmem:[#allocation9_spill] sm:$0xff] }
 0x27e   : > { %v2782_v36 = vpop.f32.mrf.mxu1 }
 0x27f   : > { %8149 = vst [vmem:[#allocation19_spill] sm:$0xff] %v7656_v38  ;;  %v7659_v0 = vadd.f32 %v3245_v12, %v2884_v32  ;;  %v2885_v6 = vadd.f32 %v2782_v36, %v8152_v49  ;;  %v3249_v52 = vpop.f32.mrf.mxu0  ;;  %v8158_v12 = vld [vmem:[#allocation8_spill] sm:$0xff] }
 0x280   : > { %v2784_v50 = vpop.f32.mrf.mxu1 }
 0x281   : > { %8151 = vst [vmem:[#allocation33_spill] sm:$0xff] %v7659_v0  ;;  %v7662_v13 = vadd.f32 %v3249_v52, %v2885_v6  ;;  %v2886_v28 = vadd.f32 %v2784_v50, %v8154_v35  ;;  %v3251_v14 = vpop.f32.mrf.mxu0  ;;  %v8160_v52 = vld [vmem:[#allocation10_spill] sm:$0xff] }
 0x282   : > { %v2788_v33 = vpop.f32.mrf.mxu1 }
 0x283   : > { %8153 = vst [vmem:[#allocation22_spill] sm:$0xff] %v7662_v13  ;;  %v7665_v57 = vadd.f32 %v3251_v14, %v2886_v28  ;;  %v2887_v15 = vadd.f32 %v2788_v33, %v8156_v4  ;;  %v3255_v38 = vpop.f32.mrf.mxu0  ;;  %v8162_v14 = vld [vmem:[#allocation11_spill] sm:$0xff] }
 0x284   : > { %v2790_v41 = vpop.f32.mrf.mxu1 }
 0x285   : > { %8155 = vst [vmem:[#allocation21_spill] sm:$0xff] %v7665_v57  ;;  %v7668_v18 = vadd.f32 %v3255_v38, %v2887_v15  ;;  %v2888_v32 = vadd.f32 %v2790_v41, %v8158_v12  ;;  %v3257_v0 = vpop.f32.mrf.mxu0  ;;  %v8164_v38 = vld [vmem:[#allocation12_spill] sm:$0xff] }
 0x286   : > { %v2794_v36 = vpop.f32.mrf.mxu1 }
 0x287   : > { %8157 = vst [vmem:[#allocation34_spill] sm:$0xff] %v7668_v18  ;;  %v7671_v49 = vadd.f32 %v3257_v0, %v2888_v32  ;;  %v2889_v6 = vadd.f32 %v2794_v36, %v8160_v52  ;;  %v3261_v13 = vpop.f32.mrf.mxu0  ;;  %v8165_v0 = vld [vmem:[#allocation14_spill] sm:$0xff] }
 0x288   : > { %v2796_v50 = vpop.f32.mrf.mxu1 }
 0x289   : > { %8159 = vst [vmem:[#allocation24_spill] sm:$0xff] %v7671_v49  ;;  %v7674_v35 = vadd.f32 %v3261_v13, %v2889_v6  ;;  %v2890_v28 = vadd.f32 %v2796_v50, %v8162_v14  ;;  %v3263_v57 = vpop.f32.mrf.mxu0  ;;  %v8167_v13 = vld [vmem:[#allocation13_spill] sm:$0xff] }
 0x28a   : > { %v2800_v33 = vpop.f32.mrf.mxu1 }
 0x28b   : > { %8161 = vst [vmem:[#allocation23_spill] sm:$0xff] %v7674_v35  ;;  %v7677_v4 = vadd.f32 %v3263_v57, %v2890_v28  ;;  %v2891_v15 = vadd.f32 %v2800_v33, %v8164_v38  ;;  %v3267_v18 = vpop.f32.mrf.mxu0  ;;  %v8168_v57 = vld [vmem:[#allocation30_spill] sm:$0xff] }
 0x28c   : > { %v2802_v41 = vpop.f32.mrf.mxu1 }
 0x28d   : > { %8163 = vst [vmem:[#allocation35_spill] sm:$0xff] %v7677_v4  ;;  %v7680_v12 = vadd.f32 %v3267_v18, %v2891_v15  ;;  %v2892_v32 = vadd.f32 %v2802_v41, %v8165_v0  ;;  %v3269_v49 = vpop.f32.mrf.mxu0 }
 0x28e   : > { %v2806_v36 = vpop.f32.mrf.mxu1 }
 0x28f   : > { %v7683_v52 = vadd.f32 %v3269_v49, %v2892_v32  ;;  %v2893_v6 = vadd.f32 %v2806_v36, %v8167_v13  ;;  %v3273_v35 = vpop.f32.mrf.mxu0  ;;  %v8171_v49 = vld [vmem:[#allocation16_spill] sm:$0xff] }
 0x290   : > { %v2808_v50 = vpop.f32.mrf.mxu1 }
 0x291   : > { %8166 = vst [vmem:[#allocation25_spill] sm:$0xff] %v7683_v52  ;;  %v7686_v14 = vadd.f32 %v3273_v35, %v2893_v6  ;;  %v2894_v28 = vadd.f32 %v2808_v50, %v8168_v57  ;;  %v3275_v4 = vpop.f32.mrf.mxu0 }
 0x292   : > { %v2812_v33 = vpop.f32.mrf.mxu1 }
 0x293   : > { %v7689_v38 = vadd.f32 %v3275_v4, %v2894_v28  ;;  %v2895_v18 = vadd.f32 %v2812_v33, %v7383_v21  ;;  %v3279_v15 = vpop.f32.mrf.mxu0  ;;  %v8172_v4 = vld [vmem:[#allocation15_spill] sm:$0xff] }
 0x294   : > { %v2814_v41 = vpop.f32.mrf.mxu1 }
 0x295   : > { %8169 = vst [vmem:[#allocation26_spill] sm:$0xff] %v7689_v38  ;;  %v7692_v0 = vadd.f32 %v3279_v15, %v2895_v18  ;;  %v2896_v32 = vadd.f32 %v2814_v41, %v8171_v49  ;;  %v3281_v52 = vpop.f32.mrf.mxu0  ;;  %v4305_v41 = vlaneseq }
 0x296   : > { %v2818_v36 = vpop.f32.mrf.mxu1 }
 0x297   : > { %8170 = vst [vmem:[#allocation27_spill] sm:$0xff] %v7692_v0  ;;  %v7695_v13 = vadd.f32 %v3281_v52, %v2896_v32  ;;  %v2897_v35 = vadd.f32 %v2818_v36, %v7395_v3  ;;  %v3285_v6 = vpop.f32.mrf.mxu0 }
 0x298   : > { %v2820_v50 = vpop.f32.mrf.mxu1 }
 0x299   : > { %v7698_v57 = vadd.f32 %v3285_v6, %v2897_v35  ;;  %v2898_v28 = vadd.f32 %v2820_v50, %v8172_v4  ;;  %v3287_v38 = vpop.f32.mrf.mxu0  ;;  %v4306_v50 = vshrl.u32 %v4305_v41, 7 }
 0x29a   : > { %v2824_v21 = vpop.f32.mrf.mxu1 }
 0x29b   : > { %v7701_v33 = vadd.f32 %v3287_v38, %v2898_v28  ;;  %v2899_v18 = vadd.f32 %v2824_v21, %v7407_v56  ;;  %v3291_v15 = vpop.f32.mrf.mxu0 }
 0x29c   : > { %v2826_v49 = vpop.f32.mrf.mxu1 }
 0x29d   : > { %v7704_v0 = vadd.f32 %v3291_v15, %v2899_v18  ;;  %v2900_v52 = vadd.f32 %v2826_v49, %v7411_v11  ;;  %v3293_v3 = vpop.f32.mrf.mxu0  ;;  %v4307_v49 = vsub.s32 0, %v4306_v50 }
 0x29e   : > { %v2830_v32 = vpop.f32.mrf.mxu1 }
 0x29f   : > { %v7707_v36 = vadd.f32 %v3293_v3, %v2900_v52  ;;  %v2901_v35 = vadd.f32 %v2830_v32, %v7419_v34  ;;  %v3297_v6 = vpop.f32.mrf.mxu0  ;;  %v235_v34 = vld [vmem:[%s7983_s2] sm:$0x3] }
 0x2a0   : > { %v2832_v4 = vpop.f32.mrf.mxu1 }
 0x2a1   : > { %v7710_v38 = vadd.f32 %v3297_v6, %v2901_v35  ;;  %v2902_v56 = vadd.f32 %v2832_v4, %v7423_v20  ;;  %v3299_v28 = vpop.f32.mrf.mxu0  ;;  %v4311_v20 = vsub.s32 1, %v4306_v50 }
 0x2a2   : > { %v2836_v21 = vpop.f32.mrf.mxu1 }
 0x2a3   : > { %v7713_v18 = vadd.f32 %v3299_v28, %v2902_v56  ;;  %v2903_v11 = vadd.f32 %v2836_v21, %v7431_v29  ;;  %v3303_v15 = vpop.f32.mrf.mxu0  ;;  %v7726_v56 = vrot.slane %v235_v34, %v4307_v49 }
 0x2a4   : > { %v2838_v52 = vpop.f32.mrf.mxu1 }
 0x2a5   : > { %8173 = vst [vmem:[#allocation28_spill] sm:$0xff] %v7713_v18  ;;  %v7719_v41 = vadd.f32 %v3303_v15, %v2903_v11  ;;  %v2904_v3 = vadd.f32 %v2838_v52, %v7435_v47  ;;  %v3305_v32 = vpop.f32.mrf.mxu0 }
 0x2a6   : > { %v3583_v35 = vpop.f32.mrf.mxu1 }
 0x2a7   : > { %8174 = vst [vmem:[#allocation29_spill] sm:$0xff] %v7719_v41  ;;  %v7723_v6 = vadd.f32 %v3305_v32, %v2904_v3  ;;  %v3774_v29 = vadd.f32 %v3583_v35, %v7443_v48  ;;  %v4049_v4 = vpop.f32.mrf.mxu0  ;;  %v7731_v41 = vrot.slane %v235_v34, %v4311_v20 }
 0x2a8   : > { %v3585_v28 = vpop.f32.mrf.mxu1 }
 0x2a9   : > { %8175 = vst [vmem:[#allocation36_spill] sm:$0xff] %v7723_v6  ;;  %v4240_v21 = vadd.f32 %v4049_v4, %v3774_v29  ;;  %v3775_v11 = vadd.f32 %v3585_v28, %v7447_v43  ;;  %v4051_v15 = vpop.f32.mrf.mxu0 }
 0x2aa   : > { %v3589_v47 = vpop.f32.mrf.mxu1 }
 0x2ab   : > { %v4315_v50 = vadd.f32 %v7726_v56, %v4240_v21  ;;  %v4241_v52 = vadd.f32 %v4051_v15, %v3775_v11  ;;  %v3776_v3 = vadd.f32 %v3589_v47, %v7455_v27  ;;  %v4055_v32 = vpop.f32.mrf.mxu0 }
 0x2ac   : > { %v3591_v48 = vpop.f32.mrf.mxu1 }
 0x2ad   : > { %v4379_v35 = vmax.f32 %v4315_v50, 0.0  ;;  %v4316_v49 = vadd.f32 %v7731_v41, %v4241_v52  ;;  %v4242_v6 = vadd.f32 %v4055_v32, %v3776_v3  ;;  %v3777_v18 = vadd.f32 %v3591_v48, %v7459_v7  ;;  %v4057_v29 = vpop.f32.mrf.mxu0 }
 0x2ae   : > { %v3595_v4 = vpop.f32.mrf.mxu1 }
 0x2af   : > { %4443 = vst [vmem:[%s7737_s5] sm:$0xff] %v4379_v35  ;;  %v4380_v43 = vmax.f32 %v4316_v49, 0.0  ;;  %v4317_v34 = vadd.f32 %v7726_v56, %v4242_v6  ;;  %v4243_v27 = vadd.f32 %v4057_v29, %v3777_v18  ;;  %v3778_v20 = vadd.f32 %v3595_v4, %v7467_v58  ;;  %v4061_v28 = vpop.f32.mrf.mxu0 }
 0x2b0   : > { %v3597_v21 = vpop.f32.mrf.mxu1 }
 0x2b1   : > { %4444 = vst [vmem:[%s7737_s5 + $0x8] sm:$0xff] %v4380_v43  ;;  %v4381_v11 = vmax.f32 %v4317_v34, 0.0  ;;  %v4318_v7 = vadd.f32 %v7731_v41, %v4243_v27  ;;  %v4244_v15 = vadd.f32 %v4061_v28, %v3778_v20  ;;  %v3779_v47 = vadd.f32 %v3597_v21, %v7471_v63  ;;  %v4063_v50 = vpop.f32.mrf.mxu0 }
 0x2b2   : > { %v3601_v52 = vpop.f32.mrf.mxu1 }
 0x2b3   : > { %4445 = vst [vmem:[%s7737_s5 + $0x10] sm:$0xff] %v4381_v11  ;;  %v4382_v3 = vmax.f32 %v4318_v7, 0.0  ;;  %v4319_v6 = vadd.f32 %v7726_v56, %v4244_v15  ;;  %v4245_v18 = vadd.f32 %v4063_v50, %v3779_v47  ;;  %v3780_v58 = vadd.f32 %v3601_v52, %v7479_v59  ;;  %v4067_v32 = vpop.f32.mrf.mxu0 }
 0x2b4   : > { %v3603_v48 = vpop.f32.mrf.mxu1 }
 0x2b5   : > { %4446 = vst [vmem:[%s7737_s5 + $0x18] sm:$0xff] %v4382_v3  ;;  %v4383_v35 = vmax.f32 %v4319_v6, 0.0  ;;  %v4320_v49 = vadd.f32 %v7731_v41, %v4245_v18  ;;  %v4246_v29 = vadd.f32 %v4067_v32, %v3780_v58  ;;  %v3781_v63 = vadd.f32 %v3603_v48, %v7483_v51  ;;  %v4069_v4 = vpop.f32.mrf.mxu0 }
 0x2b6   : > { %v3607_v43 = vpop.f32.mrf.mxu1 }
 0x2b7   : > { %4447 = vst [vmem:[%s7737_s5 + $0x20] sm:$0xff] %v4383_v35  ;;  %v4384_v34 = vmax.f32 %v4320_v49, 0.0  ;;  %v4321_v27 = vadd.f32 %v7726_v56, %v4246_v29  ;;  %v4247_v20 = vadd.f32 %v4069_v4, %v3781_v63  ;;  %v3782_v59 = vadd.f32 %v3607_v43, %v7491_v60  ;;  %v4073_v28 = vpop.f32.mrf.mxu0 }
 0x2b8   : > { %v3609_v21 = vpop.f32.mrf.mxu1 }
 0x2b9   : > { %4448 = vst [vmem:[%s7737_s5 + $0x28] sm:$0xff] %v4384_v34  ;;  %v4385_v11 = vmax.f32 %v4321_v27, 0.0  ;;  %v4322_v7 = vadd.f32 %v7731_v41, %v4247_v20  ;;  %v4248_v15 = vadd.f32 %v4073_v28, %v3782_v59  ;;  %v3783_v51 = vadd.f32 %v3609_v21, %v7495_v37  ;;  %v4075_v47 = vpop.f32.mrf.mxu0 }
 0x2ba   : > { %v3613_v50 = vpop.f32.mrf.mxu1 }
 0x2bb   : > { %4449 = vst [vmem:[%s7737_s5 + $0x30] sm:$0xff] %v4385_v11  ;;  %v4386_v52 = vmax.f32 %v4322_v7, 0.0  ;;  %v4323_v3 = vadd.f32 %v7726_v56, %v4248_v15  ;;  %v4249_v6 = vadd.f32 %v4075_v47, %v3783_v51  ;;  %v3784_v60 = vadd.f32 %v3613_v50, %v7503_v16  ;;  %v4079_v18 = vpop.f32.mrf.mxu0 }
 0x2bc   : > { %v3615_v58 = vpop.f32.mrf.mxu1 }
 0x2bd   : > { %4450 = vst [vmem:[%s7737_s5 + $0x38] sm:$0xff] %v4386_v52  ;;  %v4387_v32 = vmax.f32 %v4323_v3, 0.0  ;;  %v4324_v48 = vadd.f32 %v7731_v41, %v4249_v6  ;;  %v4250_v35 = vadd.f32 %v4079_v18, %v3784_v60  ;;  %v3785_v37 = vadd.f32 %v3615_v58, %v7507_v10  ;;  %v4081_v49 = vpop.f32.mrf.mxu0 }
 0x2be   : > { %v3619_v29 = vpop.f32.mrf.mxu1 }
 0x2bf   : > { %4451 = vst [vmem:[%s7737_s5 + $0x40] sm:$0xff] %v4387_v32  ;;  %v4388_v63 = vmax.f32 %v4324_v48, 0.0  ;;  %v4325_v4 = vadd.f32 %v7726_v56, %v4250_v35  ;;  %v4251_v43 = vadd.f32 %v4081_v49, %v3785_v37  ;;  %v3786_v16 = vadd.f32 %v3619_v29, %v7515_v22  ;;  %v4085_v34 = vpop.f32.mrf.mxu0 }
 0x2c0   : > { %v3621_v27 = vpop.f32.mrf.mxu1 }
 0x2c1   : > { %4452 = vst [vmem:[%s7737_s5 + $0x48] sm:$0xff] %v4388_v63  ;;  %v4389_v20 = vmax.f32 %v4325_v4, 0.0  ;;  %v4326_v59 = vadd.f32 %v7731_v41, %v4251_v43  ;;  %v4252_v28 = vadd.f32 %v4085_v34, %v3786_v16  ;;  %v3787_v10 = vadd.f32 %v3621_v27, %v7519_v42  ;;  %v4087_v21 = vpop.f32.mrf.mxu0 }
 0x2c2   : > { %v3625_v11 = vpop.f32.mrf.mxu1 }
 0x2c3   : > { %4453 = vst [vmem:[%s7737_s5 + $0x50] sm:$0xff] %v4389_v20  ;;  %v4390_v7 = vmax.f32 %v4326_v59, 0.0  ;;  %v4327_v15 = vadd.f32 %v7726_v56, %v4252_v28  ;;  %v4253_v51 = vadd.f32 %v4087_v21, %v3787_v10  ;;  %v3788_v22 = vadd.f32 %v3625_v11, %v7527_v19  ;;  %v4091_v47 = vpop.f32.mrf.mxu0 }
 0x2c4   : > { %v3627_v50 = vpop.f32.mrf.mxu1 }
 0x2c5   : > { %4454 = vst [vmem:[%s7737_s5 + $0x58] sm:$0xff] %v4390_v7  ;;  %v4391_v52 = vmax.f32 %v4327_v15, 0.0  ;;  %v4328_v3 = vadd.f32 %v7731_v41, %v4253_v51  ;;  %v4254_v6 = vadd.f32 %v4091_v47, %v3788_v22  ;;  %v3789_v42 = vadd.f32 %v3627_v50, %v7531_v31  ;;  %v4093_v60 = vpop.f32.mrf.mxu0 }
 0x2c6   : > { %v3631_v18 = vpop.f32.mrf.mxu1 }
 0x2c7   : > { %4455 = vst [vmem:[%s7737_s5 + $0x60] sm:$0xff] %v4391_v52  ;;  %v4392_v58 = vmax.f32 %v4328_v3, 0.0  ;;  %v4329_v32 = vadd.f32 %v7726_v56, %v4254_v6  ;;  %v4255_v48 = vadd.f32 %v4093_v60, %v3789_v42  ;;  %v3790_v19 = vadd.f32 %v3631_v18, %v7539_v24  ;;  %v4097_v35 = vpop.f32.mrf.mxu0 }
 0x2c8   : > { %v3633_v37 = vpop.f32.mrf.mxu1 }
 0x2c9   : > { %4456 = vst [vmem:[%s7737_s5 + $0x68] sm:$0xff] %v4392_v58  ;;  %v4393_v49 = vmax.f32 %v4329_v32, 0.0  ;;  %v4330_v29 = vadd.f32 %v7731_v41, %v4255_v48  ;;  %v4256_v63 = vadd.f32 %v4097_v35, %v3790_v19  ;;  %v3791_v31 = vadd.f32 %v3633_v37, %v7543_v17  ;;  %v4099_v4 = vpop.f32.mrf.mxu0 }
 0x2ca   : > { %v3637_v43 = vpop.f32.mrf.mxu1 }
 0x2cb   : > { %4457 = vst [vmem:[%s7737_s5 + $0x70] sm:$0xff] %v4393_v49  ;;  %v4394_v16 = vmax.f32 %v4330_v29, 0.0  ;;  %v4331_v34 = vadd.f32 %v7726_v56, %v4256_v63  ;;  %v4257_v27 = vadd.f32 %v4099_v4, %v3791_v31  ;;  %v3792_v24 = vadd.f32 %v3637_v43, %v7551_v26  ;;  %v4103_v20 = vpop.f32.mrf.mxu0 }
 0x2cc   : > { %v3639_v59 = vpop.f32.mrf.mxu1 }
 0x2cd   : > { %4458 = vst [vmem:[%s7737_s5 + $0x78] sm:$0xff] %v4394_v16  ;;  %v4395_v28 = vmax.f32 %v4331_v34, 0.0  ;;  %v4332_v10 = vadd.f32 %v7731_v41, %v4257_v27  ;;  %v4258_v21 = vadd.f32 %v4103_v20, %v3792_v24  ;;  %v3793_v17 = vadd.f32 %v3639_v59, %v7555_v30  ;;  %v4105_v11 = vpop.f32.mrf.mxu0  ;;  %v8176_v59 = vld [vmem:[#allocation31_spill] sm:$0xff] }
 0x2ce   : > { %v3643_v7 = vpop.f32.mrf.mxu1 }
 0x2cf   : > { %4459 = vst [vmem:[%s7737_s5 + $0x80] sm:$0xff] %v4395_v28  ;;  %v4396_v15 = vmax.f32 %v4332_v10, 0.0  ;;  %v4333_v51 = vadd.f32 %v7726_v56, %v4258_v21  ;;  %v4259_v22 = vadd.f32 %v4105_v11, %v3793_v17  ;;  %v3794_v26 = vadd.f32 %v3643_v7, %v7563_v2  ;;  %v4109_v47 = vpop.f32.mrf.mxu0 }
 0x2d0   : > { %v3645_v50 = vpop.f32.mrf.mxu1 }
 0x2d1   : > { %4460 = vst [vmem:[%s7737_s5 + $0x88] sm:$0xff] %v4396_v15  ;;  %v4397_v52 = vmax.f32 %v4333_v51, 0.0  ;;  %v4334_v3 = vadd.f32 %v7731_v41, %v4259_v22  ;;  %v4260_v6 = vadd.f32 %v4109_v47, %v3794_v26  ;;  %v3795_v30 = vadd.f32 %v3645_v50, %v7567_v44  ;;  %v4111_v42 = vpop.f32.mrf.mxu0 }
 0x2d2   : > { %v3649_v60 = vpop.f32.mrf.mxu1 }
 0x2d3   : > { %4461 = vst [vmem:[%s7737_s5 + $0x90] sm:$0xff] %v4397_v52  ;;  %v4398_v18 = vmax.f32 %v4334_v3, 0.0  ;;  %v4335_v58 = vadd.f32 %v7726_v56, %v4260_v6  ;;  %v4261_v32 = vadd.f32 %v4111_v42, %v3795_v30  ;;  %v3796_v2 = vadd.f32 %v3649_v60, %v7575_v5  ;;  %v4115_v48 = vpop.f32.mrf.mxu0  ;;  %v8177_v42 = vld [vmem:[#allocation18_spill] sm:$0xff] }
 0x2d4   : > { %v3651_v19 = vpop.f32.mrf.mxu1 }
 0x2d5   : > { %4462 = vst [vmem:[%s7737_s5 + $0x98] sm:$0xff] %v4398_v18  ;;  %v4399_v35 = vmax.f32 %v4335_v58, 0.0  ;;  %v4336_v37 = vadd.f32 %v7731_v41, %v4261_v32  ;;  %v4262_v49 = vadd.f32 %v4115_v48, %v3796_v2  ;;  %v3797_v44 = vadd.f32 %v3651_v19, %v7579_v40  ;;  %v4117_v29 = vpop.f32.mrf.mxu0 }
 0x2d6   : > { %v3655_v63 = vpop.f32.mrf.mxu1 }
 0x2d7   : > { %4463 = vst [vmem:[%s7737_s5 + $0xa0] sm:$0xff] %v4399_v35  ;;  %v4400_v31 = vmax.f32 %v4336_v37, 0.0  ;;  %v4337_v4 = vadd.f32 %v7726_v56, %v4262_v49  ;;  %v4263_v43 = vadd.f32 %v4117_v29, %v3797_v44  ;;  %v3798_v5 = vadd.f32 %v3655_v63, %v7587_v25  ;;  %v4121_v16 = vpop.f32.mrf.mxu0 }
 0x2d8   : > { %v3657_v34 = vpop.f32.mrf.mxu1 }
 0x2d9   : > { %4464 = vst [vmem:[%s7737_s5 + $0xa8] sm:$0xff] %v4400_v31  ;;  %v4401_v27 = vmax.f32 %v4337_v4, 0.0  ;;  %v4338_v24 = vadd.f32 %v7731_v41, %v4263_v43  ;;  %v4264_v20 = vadd.f32 %v4121_v16, %v3798_v5  ;;  %v3799_v40 = vadd.f32 %v3657_v34, %v8176_v59  ;;  %v4123_v28 = vpop.f32.mrf.mxu0 }
 0x2da   : > { %v3661_v10 = vpop.f32.mrf.mxu1 }
 0x2db   : > { %4465 = vst [vmem:[%s7737_s5 + $0xb0] sm:$0xff] %v4401_v27  ;;  %v4402_v21 = vmax.f32 %v4338_v24, 0.0  ;;  %v4339_v17 = vadd.f32 %v7726_v56, %v4264_v20  ;;  %v4265_v11 = vadd.f32 %v4123_v28, %v3799_v40  ;;  %v3800_v25 = vadd.f32 %v3661_v10, %v7600_v54  ;;  %v4127_v7 = vpop.f32.mrf.mxu0 }
 0x2dc   : > { %v3663_v15 = vpop.f32.mrf.mxu1 }
 0x2dd   : > { %4466 = vst [vmem:[%s7737_s5 + $0xb8] sm:$0xff] %v4402_v21  ;;  %v4403_v51 = vmax.f32 %v4339_v17, 0.0  ;;  %v4340_v22 = vadd.f32 %v7731_v41, %v4265_v11  ;;  %v4266_v26 = vadd.f32 %v4127_v7, %v3800_v25  ;;  %v3801_v47 = vadd.f32 %v3663_v15, %v7604_v9  ;;  %v4129_v50 = vpop.f32.mrf.mxu0 }
 0x2de   : > { %v3667_v52 = vpop.f32.mrf.mxu1 }
 0x2df   : > { %4467 = vst [vmem:[%s7737_s5 + $0xc0] sm:$0xff] %v4403_v51  ;;  %v4404_v3 = vmax.f32 %v4340_v22, 0.0  ;;  %v4341_v6 = vadd.f32 %v7726_v56, %v4266_v26  ;;  %v4267_v30 = vadd.f32 %v4129_v50, %v3801_v47  ;;  %v3802_v54 = vadd.f32 %v3667_v52, %v8177_v42  ;;  %v4133_v60 = vpop.f32.mrf.mxu0 }
 0x2e0   : > { %v3669_v18 = vpop.f32.mrf.mxu1 }
 0x2e1   : > { %4468 = vst [vmem:[%s7737_s5 + $0xc8] sm:$0xff] %v4404_v3  ;;  %v4405_v58 = vmax.f32 %v4341_v6, 0.0  ;;  %v4342_v32 = vadd.f32 %v7731_v41, %v4267_v30  ;;  %v4268_v2 = vadd.f32 %v4133_v60, %v3802_v54  ;;  %v3803_v9 = vadd.f32 %v3669_v18, %v7616_v45  ;;  %v4135_v48 = vpop.f32.mrf.mxu0 }
 0x2e2   : > { %v3673_v19 = vpop.f32.mrf.mxu1 }
 0x2e3   : > { %4469 = vst [vmem:[%s7737_s5 + $0xd0] sm:$0xff] %v4405_v58  ;;  %v4406_v35 = vmax.f32 %v4342_v32, 0.0  ;;  %v4343_v37 = vadd.f32 %v7726_v56, %v4268_v2  ;;  %v4269_v49 = vadd.f32 %v4135_v48, %v3803_v9  ;;  %v3804_v44 = vadd.f32 %v3673_v19, %v7620_v62  ;;  %v4139_v29 = vpop.f32.mrf.mxu0 }
 0x2e4   : > { %v3675_v63 = vpop.f32.mrf.mxu1 }
 0x2e5   : > { %4470 = vst [vmem:[%s7737_s5 + $0xd8] sm:$0xff] %v4406_v35  ;;  %v4407_v31 = vmax.f32 %v4343_v37, 0.0  ;;  %v4344_v4 = vadd.f32 %v7731_v41, %v4269_v49  ;;  %v4270_v43 = vadd.f32 %v4139_v29, %v3804_v44  ;;  %v3805_v45 = vadd.f32 %v3675_v63, %v7623_v53  ;;  %v4141_v5 = vpop.f32.mrf.mxu0  ;;  %v8178_v63 = vld [vmem:[#allocation17_spill] sm:$0xff] }
 0x2e6   : > { %v3679_v16 = vpop.f32.mrf.mxu1 }
 0x2e7   : > { %4471 = vst [vmem:[%s7737_s5 + $0xe0] sm:$0xff] %v4407_v31  ;;  %v4408_v34 = vmax.f32 %v4344_v4, 0.0  ;;  %v4345_v27 = vadd.f32 %v7726_v56, %v4270_v43  ;;  %v4271_v24 = vadd.f32 %v4141_v5, %v3805_v45  ;;  %v3806_v62 = vadd.f32 %v3679_v16, %v7626_v8  ;;  %v4145_v20 = vpop.f32.mrf.mxu0  ;;  %v8179_v16 = vld [vmem:[#allocation32_spill] sm:$0xff] }
 0x2e8   : > { %v3681_v59 = vpop.f32.mrf.mxu1 }
 0x2e9   : > { %4472 = vst [vmem:[%s7737_s5 + $0xe8] sm:$0xff] %v4408_v34  ;;  %v4409_v40 = vmax.f32 %v4345_v27, 0.0  ;;  %v4346_v28 = vadd.f32 %v7731_v41, %v4271_v24  ;;  %v4272_v10 = vadd.f32 %v4145_v20, %v3806_v62  ;;  %v3807_v53 = vadd.f32 %v3681_v59, %v7629_v55  ;;  %v4147_v21 = vpop.f32.mrf.mxu0  ;;  %v8180_v59 = vld [vmem:[#allocation20_spill] sm:$0xff] }
 0x2ea   : > { %v3685_v17 = vpop.f32.mrf.mxu1 }
 0x2eb   : > { %4473 = vst [vmem:[%s7737_s5 + $0xf0] sm:$0xff] %v4409_v40  ;;  %v4410_v11 = vmax.f32 %v4346_v28, 0.0  ;;  %v4347_v25 = vadd.f32 %v7726_v56, %v4272_v10  ;;  %v4273_v7 = vadd.f32 %v4147_v21, %v3807_v53  ;;  %v3808_v8 = vadd.f32 %v3685_v17, %v7632_v1  ;;  %v4151_v15 = vpop.f32.mrf.mxu0 }
 0x2ec   : > { %v3687_v51 = vpop.f32.mrf.mxu1 }
 0x2ed   : > { %4474 = vst [vmem:[%s7737_s5 + $0xf8] sm:$0xff] %v4410_v11  ;;  %v4411_v22 = vmax.f32 %v4347_v25, 0.0  ;;  %v4348_v26 = vadd.f32 %v7731_v41, %v4273_v7  ;;  %v4274_v47 = vadd.f32 %v4151_v15, %v3808_v8  ;;  %v3809_v55 = vadd.f32 %v3687_v51, %v7635_v39  ;;  %v4153_v50 = vpop.f32.mrf.mxu0  ;;  %v8181_v11 = vld [vmem:[#allocation19_spill] sm:$0xff] }
 0x2ee   : > { %v3691_v52 = vpop.f32.mrf.mxu1 }
 0x2ef   : > { %4475 = vst [vmem:[%s7737_s5 + $0x100] sm:$0xff] %v4411_v22  ;;  %v4412_v3 = vmax.f32 %v4348_v26, 0.0  ;;  %v4349_v6 = vadd.f32 %v7726_v56, %v4274_v47  ;;  %v4275_v30 = vadd.f32 %v4153_v50, %v3809_v55  ;;  %v3810_v1 = vadd.f32 %v3691_v52, %v7638_v61  ;;  %v4157_v42 = vpop.f32.mrf.mxu0  ;;  %v8182_v26 = vld [vmem:[#allocation33_spill] sm:$0xff] }
 0x2f0   : > { %v3693_v54 = vpop.f32.mrf.mxu1 }
 0x2f1   : > { %4476 = vst [vmem:[%s7737_s5 + $0x108] sm:$0xff] %v4412_v3  ;;  %v4413_v60 = vmax.f32 %v4349_v6, 0.0  ;;  %v4350_v18 = vadd.f32 %v7731_v41, %v4275_v30  ;;  %v4276_v58 = vadd.f32 %v4157_v42, %v3810_v1  ;;  %v3811_v39 = vadd.f32 %v3693_v54, %v7641_v46  ;;  %v4159_v32 = vpop.f32.mrf.mxu0  ;;  %v8183_v30 = vld [vmem:[#allocation22_spill] sm:$0xff] }
 0x2f2   : > { %v3697_v2 = vpop.f32.mrf.mxu1 }
 0x2f3   : > { %4477 = vst [vmem:[%s7737_s5 + $0x110] sm:$0xff] %v4413_v60  ;;  %v4414_v9 = vmax.f32 %v4350_v18, 0.0  ;;  %v4351_v48 = vadd.f32 %v7726_v56, %v4276_v58  ;;  %v4277_v19 = vadd.f32 %v4159_v32, %v3811_v39  ;;  %v3812_v61 = vadd.f32 %v3697_v2, %v7644_v23  ;;  %v4163_v35 = vpop.f32.mrf.mxu0  ;;  %v8184_v39 = vld [vmem:[#allocation21_spill] sm:$0xff] }
 0x2f4   : > { %v3699_v37 = vpop.f32.mrf.mxu1 }
 0x2f5   : > { %4478 = vst [vmem:[%s7737_s5 + $0x118] sm:$0xff] %v4414_v9  ;;  %v4415_v49 = vmax.f32 %v4351_v48, 0.0  ;;  %v4352_v44 = vadd.f32 %v7731_v41, %v4277_v19  ;;  %v4278_v29 = vadd.f32 %v4163_v35, %v3812_v61  ;;  %v3813_v46 = vadd.f32 %v3699_v37, %v8178_v63  ;;  %v4165_v31 = vpop.f32.mrf.mxu0  ;;  %v8185_v35 = vld [vmem:[#allocation34_spill] sm:$0xff] }
 0x2f6   : > { %v3703_v4 = vpop.f32.mrf.mxu1 }
 0x2f7   : > { %4479 = vst [vmem:[%s7737_s5 + $0x120] sm:$0xff] %v4415_v49  ;;  %v4416_v43 = vmax.f32 %v4352_v44, 0.0  ;;  %v4353_v45 = vadd.f32 %v7726_v56, %v4278_v29  ;;  %v4279_v5 = vadd.f32 %v4165_v31, %v3813_v46  ;;  %v3814_v23 = vadd.f32 %v3703_v4, %v8179_v16  ;;  %v4169_v34 = vpop.f32.mrf.mxu0  ;;  %v8186_v31 = vld [vmem:[#allocation24_spill] sm:$0xff] }
 0x2f8   : > { %v3705_v27 = vpop.f32.mrf.mxu1 }
 0x2f9   : > { %4480 = vst [vmem:[%s7737_s5 + $0x128] sm:$0xff] %v4416_v43  ;;  %v4417_v24 = vmax.f32 %v4353_v45, 0.0  ;;  %v4354_v62 = vadd.f32 %v7731_v41, %v4279_v5  ;;  %v4280_v20 = vadd.f32 %v4169_v34, %v3814_v23  ;;  %v3815_v40 = vadd.f32 %v3705_v27, %v8180_v59  ;;  %v4171_v28 = vpop.f32.mrf.mxu0  ;;  %v8187_v34 = vld [vmem:[#allocation23_spill] sm:$0xff] }
 0x2fa   : > { %v3709_v10 = vpop.f32.mrf.mxu1 }
 0x2fb   : > { %4481 = vst [vmem:[%s7737_s5 + $0x130] sm:$0xff] %v4417_v24  ;;  %v4418_v53 = vmax.f32 %v4354_v62, 0.0  ;;  %v4355_v21 = vadd.f32 %v7726_v56, %v4280_v20  ;;  %v4281_v17 = vadd.f32 %v4171_v28, %v3815_v40  ;;  %v3816_v25 = vadd.f32 %v3709_v10, %v8181_v11  ;;  %v4175_v7 = vpop.f32.mrf.mxu0  ;;  %v8188_v28 = vld [vmem:[#allocation35_spill] sm:$0xff] }
 0x2fc   : > { %v3711_v8 = vpop.f32.mrf.mxu1 }
 0x2fd   : > { %4482 = vst [vmem:[%s7737_s5 + $0x138] sm:$0xff] %v4418_v53  ;;  %v4419_v15 = vmax.f32 %v4355_v21, 0.0  ;;  %v4356_v51 = vadd.f32 %v7731_v41, %v4281_v17  ;;  %v4282_v22 = vadd.f32 %v4175_v7, %v3816_v25  ;;  %v3817_v47 = vadd.f32 %v3711_v8, %v8182_v26  ;;  %v4177_v55 = vpop.f32.mrf.mxu0 }
 0x2fe   : > { %v3715_v50 = vpop.f32.mrf.mxu1 }
 0x2ff   : > { %4483 = vst [vmem:[%s7737_s5 + $0x140] sm:$0xff] %v4419_v15  ;;  %v4420_v52 = vmax.f32 %v4356_v51, 0.0  ;;  %v4357_v3 = vadd.f32 %v7726_v56, %v4282_v22  ;;  %v4283_v6 = vadd.f32 %v4177_v55, %v3817_v47  ;;  %v3818_v1 = vadd.f32 %v3715_v50, %v8183_v30  ;;  %v4181_v42 = vpop.f32.mrf.mxu0  ;;  %v8189_v47 = vld [vmem:[#allocation25_spill] sm:$0xff] }
 0x300   : > { %v3717_v54 = vpop.f32.mrf.mxu1 }
 0x301   : > { %4484 = vst [vmem:[%s7737_s5 + $0x148] sm:$0xff] %v4420_v52  ;;  %v4421_v60 = vmax.f32 %v4357_v3, 0.0  ;;  %v4358_v18 = vadd.f32 %v7731_v41, %v4283_v6  ;;  %v4284_v58 = vadd.f32 %v4181_v42, %v3818_v1  ;;  %v3819_v32 = vadd.f32 %v3717_v54, %v8184_v39  ;;  %v4183_v2 = vpop.f32.mrf.mxu0 }
 0x302   : > { %v3721_v9 = vpop.f32.mrf.mxu1 }
 0x303   : > { %4485 = vst [vmem:[%s7737_s5 + $0x150] sm:$0xff] %v4421_v60  ;;  %v4422_v48 = vmax.f32 %v4358_v18, 0.0  ;;  %v4359_v19 = vadd.f32 %v7726_v56, %v4284_v58  ;;  %v4285_v61 = vadd.f32 %v4183_v2, %v3819_v32  ;;  %v3820_v37 = vadd.f32 %v3721_v9, %v8185_v35  ;;  %v4187_v49 = vpop.f32.mrf.mxu0  ;;  %v8190_v58 = vld [vmem:[#allocation26_spill] sm:$0xff] }
 0x304   : > { %v3723_v44 = vpop.f32.mrf.mxu1 }
 0x305   : > { %4486 = vst [vmem:[%s7737_s5 + $0x158] sm:$0xff] %v4422_v48  ;;  %v4423_v29 = vmax.f32 %v4359_v19, 0.0  ;;  %v4360_v63 = vadd.f32 %v7731_v41, %v4285_v61  ;;  %v4286_v46 = vadd.f32 %v4187_v49, %v3820_v37  ;;  %v3821_v4 = vadd.f32 %v3723_v44, %v8186_v31  ;;  %v4189_v43 = vpop.f32.mrf.mxu0  ;;  %v8191_v61 = vld [vmem:[#allocation27_spill] sm:$0xff] }
 0x306   : > { %v3727_v45 = vpop.f32.mrf.mxu1 }
 0x307   : > { %4487 = vst [vmem:[%s7737_s5 + $0x160] sm:$0xff] %v4423_v29  ;;  %v4424_v5 = vmax.f32 %v4360_v63, 0.0  ;;  %v4361_v16 = vadd.f32 %v7726_v56, %v4286_v46  ;;  %v4287_v23 = vadd.f32 %v4189_v43, %v3821_v4  ;;  %v3822_v27 = vadd.f32 %v3727_v45, %v8187_v34  ;;  %v4193_v24 = vpop.f32.mrf.mxu0 }
 0x308   : > { %v3729_v62 = vpop.f32.mrf.mxu1 }
 0x309   : > { %4488 = vst [vmem:[%s7737_s5 + $0x168] sm:$0xff] %v4424_v5  ;;  %v4425_v20 = vmax.f32 %v4361_v16, 0.0  ;;  %v4362_v59 = vadd.f32 %v7731_v41, %v4287_v23  ;;  %v4288_v40 = vadd.f32 %v4193_v24, %v3822_v27  ;;  %v3823_v10 = vadd.f32 %v3729_v62, %v8188_v28  ;;  %v4195_v53 = vpop.f32.mrf.mxu0 }
 0x30a   : > { %v3733_v21 = vpop.f32.mrf.mxu1 }
 0x30b   : > { %4489 = vst [vmem:[%s7737_s5 + $0x170] sm:$0xff] %v4425_v20  ;;  %v4426_v17 = vmax.f32 %v4362_v59, 0.0  ;;  %v4363_v11 = vadd.f32 %v7726_v56, %v4288_v40  ;;  %v4289_v25 = vadd.f32 %v4195_v53, %v3823_v10  ;;  %v3824_v7 = vadd.f32 %v3733_v21, %v7680_v12  ;;  %v4199_v8 = vpop.f32.mrf.mxu0 }
 0x30c   : > { %v3735_v15 = vpop.f32.mrf.mxu1 }
 0x30d   : > { %4490 = vst [vmem:[%s7737_s5 + $0x178] sm:$0xff] %v4426_v17  ;;  %v4427_v51 = vmax.f32 %v4363_v11, 0.0  ;;  %v4364_v22 = vadd.f32 %v7731_v41, %v4289_v25  ;;  %v4290_v26 = vadd.f32 %v4199_v8, %v3824_v7  ;;  %v3825_v55 = vadd.f32 %v3735_v15, %v8189_v47  ;;  %v4201_v50 = vpop.f32.mrf.mxu0 }
 0x30e   : > { %v3739_v52 = vpop.f32.mrf.mxu1 }
 0x30f   : > { %4491 = vst [vmem:[%s7737_s5 + $0x180] sm:$0xff] %v4427_v51  ;;  %v4428_v3 = vmax.f32 %v4364_v22, 0.0  ;;  %v4365_v6 = vadd.f32 %v7726_v56, %v4290_v26  ;;  %v4291_v30 = vadd.f32 %v4201_v50, %v3825_v55  ;;  %v3826_v12 = vadd.f32 %v3739_v52, %v7686_v14  ;;  %v4205_v1 = vpop.f32.mrf.mxu0  ;;  %v8192_v52 = vld [vmem:[#allocation28_spill] sm:$0xff] }
 0x310   : > { %v3741_v42 = vpop.f32.mrf.mxu1 }
 0x311   : > { %4492 = vst [vmem:[%s7737_s5 + $0x188] sm:$0xff] %v4428_v3  ;;  %v4429_v54 = vmax.f32 %v4365_v6, 0.0  ;;  %v4366_v60 = vadd.f32 %v7731_v41, %v4291_v30  ;;  %v4292_v18 = vadd.f32 %v4205_v1, %v3826_v12  ;;  %v3827_v39 = vadd.f32 %v3741_v42, %v8190_v58  ;;  %v4207_v32 = vpop.f32.mrf.mxu0  ;;  %v8193_v1 = vld [vmem:[#allocation29_spill] sm:$0xff] }
 0x312   : > { %v3745_v2 = vpop.f32.mrf.mxu1 }
 0x313   : > { %4493 = vst [vmem:[%s7737_s5 + $0x190] sm:$0xff] %v4429_v54  ;;  %v4430_v9 = vmax.f32 %v4366_v60, 0.0  ;;  %v4367_v48 = vadd.f32 %v7726_v56, %v4292_v18  ;;  %v4293_v19 = vadd.f32 %v4207_v32, %v3827_v39  ;;  %v3828_v14 = vadd.f32 %v3745_v2, %v8191_v61  ;;  %v4211_v35 = vpop.f32.mrf.mxu0  ;;  %v8194_v32 = vld [vmem:[#allocation36_spill] sm:$0xff] }
 0x314   : > { %v3747_v37 = vpop.f32.mrf.mxu1 }
 0x315   : > { %4494 = vst [vmem:[%s7737_s5 + $0x198] sm:$0xff] %v4430_v9  ;;  %v4431_v49 = vmax.f32 %v4367_v48, 0.0  ;;  %v4368_v44 = vadd.f32 %v7731_v41, %v4293_v19  ;;  %v4294_v29 = vadd.f32 %v4211_v35, %v3828_v14  ;;  %v3829_v63 = vadd.f32 %v3747_v37, %v7695_v13  ;;  %v4213_v46 = vpop.f32.mrf.mxu0 }
 0x316   : > { %v3751_v31 = vpop.f32.mrf.mxu1 }
 0x317   : > { %4495 = vst [vmem:[%s7737_s5 + $0x1a0] sm:$0xff] %v4431_v49  ;;  %v4432_v4 = vmax.f32 %v4368_v44, 0.0  ;;  %v4369_v43 = vadd.f32 %v7726_v56, %v4294_v29  ;;  %v4295_v45 = vadd.f32 %v4213_v46, %v3829_v63  ;;  %v3830_v5 = vadd.f32 %v3751_v31, %v7698_v57  ;;  %v4217_v16 = vpop.f32.mrf.mxu0 }
 0x318   : > { %v3753_v23 = vpop.f32.mrf.mxu1 }
 0x319   : > { %4496 = vst [vmem:[%s7737_s5 + $0x1a8] sm:$0xff] %v4432_v4  ;;  %v4433_v34 = vmax.f32 %v4369_v43, 0.0  ;;  %v4370_v27 = vadd.f32 %v7731_v41, %v4295_v45  ;;  %v4296_v24 = vadd.f32 %v4217_v16, %v3830_v5  ;;  %v3831_v13 = vadd.f32 %v3753_v23, %v7701_v33  ;;  %v4219_v62 = vpop.f32.mrf.mxu0 }
 0x31a   : > { %v3757_v20 = vpop.f32.mrf.mxu1 }
 0x31b   : > { %4497 = vst [vmem:[%s7737_s5 + $0x1b0] sm:$0xff] %v4433_v34  ;;  %v4434_v59 = vmax.f32 %v4370_v27, 0.0  ;;  %v4371_v40 = vadd.f32 %v7726_v56, %v4296_v24  ;;  %v4297_v28 = vadd.f32 %v4219_v62, %v3831_v13  ;;  %v3832_v57 = vadd.f32 %v3757_v20, %v7704_v0  ;;  %v4223_v10 = vpop.f32.mrf.mxu0 }
 0x31c   : > { %v3759_v53 = vpop.f32.mrf.mxu1 }
 0x31d   : > { %4498 = vst [vmem:[%s7737_s5 + $0x1b8] sm:$0xff] %v4434_v59  ;;  %v4435_v21 = vmax.f32 %v4371_v40, 0.0  ;;  %v4372_v17 = vadd.f32 %v7731_v41, %v4297_v28  ;;  %v4298_v11 = vadd.f32 %v4223_v10, %v3832_v57  ;;  %v3833_v33 = vadd.f32 %v3759_v53, %v7707_v36  ;;  %v4225_v25 = vpop.f32.mrf.mxu0 }
 0x31e   : > { %v3763_v7 = vpop.f32.mrf.mxu1 }
 0x31f   : > { %4499 = vst [vmem:[%s7737_s5 + $0x1c0] sm:$0xff] %v4435_v21  ;;  %v4436_v8 = vmax.f32 %v4372_v17, 0.0  ;;  %v4373_v15 = vadd.f32 %v7726_v56, %v4298_v11  ;;  %v4299_v51 = vadd.f32 %v4225_v25, %v3833_v33  ;;  %v3834_v0 = vadd.f32 %v3763_v7, %v7710_v38  ;;  %v4229_v22 = vpop.f32.mrf.mxu0 }
 0x320   : > { %v3765_v26 = vpop.f32.mrf.mxu1 }
 0x321   : > { %4500 = vst [vmem:[%s7737_s5 + $0x1c8] sm:$0xff] %v4436_v8  ;;  %v4437_v47 = vmax.f32 %v4373_v15, 0.0  ;;  %v4374_v55 = vadd.f32 %v7731_v41, %v4299_v51  ;;  %v4300_v50 = vadd.f32 %v4229_v22, %v3834_v0  ;;  %v3835_v36 = vadd.f32 %v3765_v26, %v8192_v52  ;;  %v4231_v3 = vpop.f32.mrf.mxu0 }
 0x322   : > { %v3769_v6 = vpop.f32.mrf.mxu1 }
 0x323   : > { %4501 = vst [vmem:[%s7737_s5 + $0x1d0] sm:$0xff] %v4437_v47  ;;  %v4438_v30 = vmax.f32 %v4374_v55, 0.0  ;;  %v4375_v12 = vadd.f32 %v7726_v56, %v4300_v50  ;;  %v4301_v38 = vadd.f32 %v4231_v3, %v3835_v36  ;;  %v3836_v42 = vadd.f32 %v3769_v6, %v8193_v1  ;;  %v4235_v54 = vpop.f32.mrf.mxu0 }
 0x324   : > { %v3771_v60 = vpop.f32.mrf.mxu1 }
 0x325   : > { %4502 = vst [vmem:[%s7737_s5 + $0x1d8] sm:$0xff] %v4438_v30  ;;  %v4439_v18 = vmax.f32 %v4375_v12, 0.0  ;;  %v4376_v58 = vadd.f32 %v7731_v41, %v4301_v38  ;;  %v4302_v39 = vadd.f32 %v4235_v54, %v3836_v42  ;;  %v3837_v2 = vadd.f32 %v3771_v60, %v8194_v32  ;;  %v4237_v9 = vpop.f32.mrf.mxu0 }
 0x327   : > { %4503 = vst [vmem:[%s7737_s5 + $0x1e0] sm:$0xff] %v4439_v18  ;;  %v4440_v48 = vmax.f32 %v4376_v58, 0.0  ;;  %v4377_v19 = vadd.f32 %v7726_v56, %v4302_v39  ;;  %v4303_v61 = vadd.f32 %v4237_v9, %v3837_v2 }
 0x329   : > { %4504 = vst [vmem:[%s7737_s5 + $0x1e8] sm:$0xff] %v4440_v48  ;;  %v4441_v14 = vmax.f32 %v4377_v19, 0.0  ;;  %v4378_v35 = vadd.f32 %v7731_v41, %v4303_v61 }
 0x32b   : > { %4505 = vst [vmem:[%s7737_s5 + $0x1f0] sm:$0xff] %v4441_v14  ;;  %v4442_v37 = vmax.f32 %v4378_v35, 0.0 }
 0x32d   : > { %4506 = vst [vmem:[%s7737_s5 + $0x1f8] sm:$0xff] %v4442_v37 }
 0x32e   : > { %5342 = shalt.err (!%p5339_p5)
}
 0x32f   : > { %s5343_s23 = scalar_lea.hbm %s7928_s10, 8192  ;;  %s5347_s26 = scalar_lea.hbm %s7984_s3, 16384 }
 0x330   : > { %p5344_p6 = scmp.ne.s32.totalorder %s7928_s10, %s5343_s23  ;;  %p5348_p10 = scmp.lt.s32.totalorder %s7928_s10, %s7984_s3 }
 0x331   : > { %p5349_p11 = scmp.lt.s32.totalorder %s5347_s26, %s5343_s23 }
 0x332   : > { %p5345_p7 = pnand %p5344_p6, %p5471_p4 }
 0x333   : > { %p5350_p12 = por %p5349_p11, %p5348_p10 }
 0x334   : > { %p5346_p9 = pneg %p5345_p7 }
 0x336   : > { %p5351_p13 = pnand %p5350_p12, %p5346_p9 }
 0x338   : > { %5354 = shalt.err (!%p5351_p13)
}
 0x339   : > { %s5409_s4 = smov 256   ;;  %s5410_s5 = smov 16  }
 0x33a   : > { %5271 = dma.vmem_to_hbm [thread:$0]  (%p5471_p4), %s7930_s7, 8192, %s7928_s10, %s7936_s15, %s5409_s4, %s5409_s4, %s5410_s5  }
 0x33b PF: > { %p5277_p0 = scmp.ge.s32.totalorder %s5405_s17, 2  ;;  %s4541_s6 = sand.u32 1, %s5385_s12  }
 0x33c   : > { %s4542_s8 = scalar_lea.sflag [#allocation3], %s4541_s6 }
 0x33d   : > { %p5274_p1 = pnand %p5277_p0, %p5478_p8 }
 0x33f   : > { %p5275_p2 = pneg %p5274_p1 }
 0x341   : > { %5380 = dma.done.wait (%p5275_p2), %s4542_s8, 8192  }
 0x342   : > { %5382 = vsyncadd (%p5275_p2), %s4542_s8, 4294959104  ;;  %s16_s17 = sadd.s32 1, %s5405_s17   ;;  %s8195_s12 = smov %s5389_s13 }
 0x343   : > { %p13_p3 = scmp.ge.s32.totalorder %s16_s17, 4   ;;  %s8196_s13 = smov %s5393_s14 }
 0x344   : > { %s8197_s14 = smov %s5484_s25  ;;  %s8198_s15 = smov %s5401_s16 }
 0x345   : > { %s8199_s16 = smov %s8201_s20  ;;  %15 = sbr.rel (!%p13_p3) target bundleno = 4 (0x4), region = 83 }
 0x34a   :  { %4547 = vsyncpa [#allocation3], 1 }
 0x34b   :  { %4549 = vsyncpa [#allocation3 + $0x1], 1 }

</bundles_post_ra>
